<compile_context>
chip_gen: v7x
topology: tpu7x:2x2x1
jax: 0.10.0
libtpu: 0.0.40
codegen_flags: <defaults>
</compile_context>

<pallas_src>
import jax
import jax.numpy as jnp
from jax.experimental import pallas as pl
from jax.experimental.pallas import tpu as pltpu

# ----------------------------- tiny BERT config -----------------------------
VOCAB = 128
HIDDEN = 32
LAYERS = 2
HEADS = 4
HEAD_DIM = HIDDEN // HEADS
INTERMEDIATE = 64
MAX_POS = 16
TYPE_VOCAB = 2
LN_EPS = 1e-12

# ---------------- slab row layout (all small vectors, one DMA) ---------------
R_EMB_G, R_EMB_B = 0, 1
_LAYER_BASE = 2
R_BQ = 0                       # + h   (HEADS rows)
R_BK = R_BQ + HEADS
R_BV = R_BK + HEADS
R_BO = R_BV + HEADS
R_LN1G = R_BO + 1
R_LN1B = R_LN1G + 1
R_B1 = R_LN1B + 1
R_B2 = R_B1 + 1
R_LN2G = R_B2 + 1
R_LN2B = R_LN2G + 1
ROWS_PER_LAYER = R_LN2B + 1
R_TR_B = _LAYER_BASE + LAYERS * ROWS_PER_LAYER
R_TR_G = R_TR_B + 1
R_TR_BETA = R_TR_B + 2
R_OUT_B = R_TR_B + 3
SLAB_ROWS = ((R_OUT_B + 1 + 7) // 8) * 8    # pad row count to a multiple of 8


# ------------------------------ fused kernel --------------------------------
def _fused_bert_kernel(x_ref, bias_ref, slab_ref, wqkv_ref, wo_ref,
                       w1_ref, w2_ref, tr_w_ref, wvt_ref, o_ref):
    """Whole (folded-batch) forward in one invocation; everything VMEM-resident."""
    scale = 1.0 / (HEAD_DIM ** 0.5)

    def ln(v, g, b):
        mean = jnp.mean(v, axis=-1, keepdims=True)
        var = jnp.mean(jnp.square(v - mean), axis=-1, keepdims=True)
        return (v - mean) * jax.lax.rsqrt(var + LN_EPS) * g + b

    def mm(a_bf16, w_bf16):
        # bf16 MXU operands, f32 accumulation.
        return jnp.dot(a_bf16, w_bf16, preferred_element_type=jnp.float32)

    def row(r, n):
        # Static slab row r, first n lanes -> [1, n] f32 (broadcasts over rows).
        return slab_ref[r:r + 1, :][:, :n]

    bias = bias_ref[...]                                    # [M, M] block-diag
    x = ln(x_ref[...], row(R_EMB_G, HIDDEN), row(R_EMB_B, HIDDEN))

    for l in range(LAYERS):
        base = _LAYER_BASE + l * ROWS_PER_LAYER
        xb = x.astype(jnp.bfloat16)                         # cast once per layer

        attn = None
        for h in range(HEADS):
            wq = wqkv_ref[(l * 3 + 0) * HEADS + h]          # [H, dh] bf16
            wk = wqkv_ref[(l * 3 + 1) * HEADS + h]
            wv = wqkv_ref[(l * 3 + 2) * HEADS + h]
            q = mm(xb, wq) + row(base + R_BQ + h, HEAD_DIM)  # [M, dh] f32
            k = mm(xb, wk) + row(base + R_BK + h, HEAD_DIM)
            v = mm(xb, wv) + row(base + R_BV + h, HEAD_DIM)

            s = jax.lax.dot_general(
                q.astype(jnp.bfloat16), k.astype(jnp.bfloat16),
                (((1,), (1,)), ((), ())),
                preferred_element_type=jnp.float32)          # [M, M]
            s = s * scale + bias
            s = s - jnp.max(s, axis=-1, keepdims=True)
            p = jnp.exp(s)
            p = p * pl.reciprocal(jnp.sum(p, axis=-1, keepdims=True),
                                  approx=True)
            ctx = mm(p.astype(jnp.bfloat16), v.astype(jnp.bfloat16))   # [M, dh]
            part = mm(ctx.astype(jnp.bfloat16), wo_ref[l * HEADS + h])  # [M, H]
            attn = part if attn is None else attn + part

        attn = attn + row(base + R_BO, HIDDEN)
        x = ln(x + attn, row(base + R_LN1G, HIDDEN), row(base + R_LN1B, HIDDEN))

        # TODO(synk): jax.nn.gelu defaults to tanh-approx GELU; PyTorch nn.GELU
        # defaults to erf — swap to approximate=False to bit-match PyTorch.
        xb = x.astype(jnp.bfloat16)
        ff = jax.nn.gelu(mm(xb, w1_ref[l]) + row(base + R_B1, INTERMEDIATE))
        ff = mm(ff.astype(jnp.bfloat16), w2_ref[l]) + row(base + R_B2, HIDDEN)
        x = ln(x + ff, row(base + R_LN2G, HIDDEN), row(base + R_LN2B, HIDDEN))

    # transform = dense + layer_norm
    t = mm(x.astype(jnp.bfloat16), tr_w_ref[...]) + row(R_TR_B, HIDDEN)
    t = ln(t, row(R_TR_G, HIDDEN), row(R_TR_BETA, HIDDEN))

    # Tied-embedding projection + softmax over vocab (lane-dense, V=128).
    logits = mm(t.astype(jnp.bfloat16), wvt_ref[...]) + row(R_OUT_B, VOCAB)
    logits = logits - jnp.max(logits, axis=-1, keepdims=True)
    e = jnp.exp(logits)
    o_ref[...] = e * pl.reciprocal(jnp.sum(e, axis=-1, keepdims=True),
                                   approx=False)


# ------------------------ deterministic parameter init ----------------------
def init_params(key):
    keys = iter(jax.random.split(key, 16 + LAYERS * 16))

    def w(shape):
        return jax.random.normal(next(keys), shape, jnp.float32) * 0.02

    params = {
        "word_emb": w((VOCAB, HIDDEN)),
        "pos_emb": w((MAX_POS, HIDDEN)),
        "seg_emb": w((TYPE_VOCAB, HIDDEN)),
        "emb_ln_g": jnp.ones((HIDDEN,), jnp.float32),
        "emb_ln_b": jnp.zeros((HIDDEN,), jnp.float32),
        "layers": [],
        "tr_w": w((HIDDEN, HIDDEN)),
        "tr_b": jnp.zeros((HIDDEN,), jnp.float32),
        "tr_ln_g": jnp.ones((HIDDEN,), jnp.float32),
        "tr_ln_b": jnp.zeros((HIDDEN,), jnp.float32),
        "out_bias": jnp.zeros((VOCAB,), jnp.float32),
        # seq_relationship Linear(hidden, 2) — defined but unused in forward
        "nsp_w": w((HIDDEN, 2)),
        "nsp_b": jnp.zeros((2,), jnp.float32),
    }
    for _ in range(LAYERS):
        params["layers"].append({
            "wq": w((HIDDEN, HIDDEN)), "bq": jnp.zeros((HIDDEN,), jnp.float32),
            "wk": w((HIDDEN, HIDDEN)), "bk": jnp.zeros((HIDDEN,), jnp.float32),
            "wv": w((HIDDEN, HIDDEN)), "bv": jnp.zeros((HIDDEN,), jnp.float32),
            "wo": w((HIDDEN, HIDDEN)), "bo": jnp.zeros((HIDDEN,), jnp.float32),
            "ln1_g": jnp.ones((HIDDEN,), jnp.float32),
            "ln1_b": jnp.zeros((HIDDEN,), jnp.float32),
            "w1": w((HIDDEN, INTERMEDIATE)),
            "b1": jnp.zeros((INTERMEDIATE,), jnp.float32),
            "w2": w((INTERMEDIATE, HIDDEN)),
            "b2": jnp.zeros((HIDDEN,), jnp.float32),
            "ln2_g": jnp.ones((HIDDEN,), jnp.float32),
            "ln2_b": jnp.zeros((HIDDEN,), jnp.float32),
        })
    return params


def build_fused_params(params):
    """Host-side packing for the kernel:
       * one f32 [SLAB_ROWS, 128] slab with every small bias/scale vector,
       * per-head Q/K/V weights [L*3*HEADS, H, dh] bf16 (head_dim at lane 0),
       * per-head output-proj weights [L*HEADS, dh, H] bf16,
       * stacked FFN weights, transform dense, and the tied vocab matrix
         pre-transposed to [H, V] bf16 (once)."""
    L = params["layers"]

    def vec_row(v):
        v = jnp.asarray(v, jnp.float32).reshape(-1)
        return jnp.pad(v, (0, 128 - v.shape[0]))

    rows = [vec_row(params["emb_ln_g"]), vec_row(params["emb_ln_b"])]
    for lp in L:
        for name in ("bq", "bk", "bv"):
            for h in range(HEADS):
                rows.append(vec_row(lp[name][h * HEAD_DIM:(h + 1) * HEAD_DIM]))
        for name in ("bo", "ln1_g", "ln1_b", "b1", "b2", "ln2_g", "ln2_b"):
            rows.append(vec_row(lp[name]))
    for name in ("tr_b", "tr_ln_g", "tr_ln_b", "out_bias"):
        rows.append(vec_row(params[name]))
    assert len(rows) == R_OUT_B + 1
    while len(rows) < SLAB_ROWS:
        rows.append(jnp.zeros((128,), jnp.float32))
    slab = jnp.stack(rows)

    def split_out_heads(w):      # [H, H] -> [HEADS, H, dh] (output cols per head)
        return w.reshape(HIDDEN, HEADS, HEAD_DIM).transpose(1, 0, 2)

    wqkv_h = jnp.concatenate(
        [split_out_heads(lp[name]) for lp in L for name in ("wq", "wk", "wv")],
        axis=0).astype(jnp.bfloat16)                      # [L*3*HEADS, H, dh]
    wo_h = jnp.concatenate(
        [lp["wo"].reshape(HEADS, HEAD_DIM, HIDDEN) for lp in L],
        axis=0).astype(jnp.bfloat16)                      # [L*HEADS, dh, H]

    return {
        # embedding tables kept f32 for the XLA gather
        "word_emb": params["word_emb"],
        "pos_emb": params["pos_emb"],
        "seg_emb": params["seg_emb"],
        "slab": slab,
        "wqkv_h": wqkv_h,
        "wo_h": wo_h,
        "w1": jnp.stack([lp["w1"] for lp in L]).astype(jnp.bfloat16),
        "w2": jnp.stack([lp["w2"] for lp in L]).astype(jnp.bfloat16),
        "tr_w": params["tr_w"].astype(jnp.bfloat16),
        "wv_t": params["word_emb"].T.astype(jnp.bfloat16),   # tied, [H, V]
    }


# ------------------------------- model glue ---------------------------------
def bert_pretrain_forward(fp, input_ids, position_ids, segment_ids,
                          attention_mask):
    B, S = input_ids.shape
    M = B * S
    # Embedding gathers stay in XLA (data-dependent gather), summed to [M, H].
    emb = (fp["word_emb"][input_ids]
           + fp["pos_emb"][position_ids]
           + fp["seg_emb"][segment_ids]).reshape(M, HIDDEN)

    # Block-diagonal additive attention bias over the folded rows: rows may
    # only attend keys of the same batch element, with padded keys masked.
    key_bias = ((1.0 - attention_mask.astype(jnp.float32)) * -1e9).reshape(M)
    batch_of_row = jnp.repeat(jnp.arange(B, dtype=jnp.int32), S)
    same_batch = batch_of_row[:, None] == batch_of_row[None, :]
    bias = jnp.where(same_batch, key_bias[None, :], jnp.float32(-1e9))   # [M, M]

    vmem = lambda: pl.BlockSpec(memory_space=pltpu.MemorySpace.VMEM)
    probs = pl.pallas_call(
        _fused_bert_kernel,
        out_shape=jax.ShapeDtypeStruct((M, VOCAB), jnp.float32),
        in_specs=[vmem() for _ in range(9)],    # untiled, whole-array in VMEM
        out_specs=vmem(),
    )(emb, bias, fp["slab"], fp["wqkv_h"], fp["wo_h"],
      fp["w1"], fp["w2"], fp["tr_w"], fp["wv_t"])
    return probs.reshape(B, S, VOCAB)


# ----------------- pure-JAX reference on the ORIGINAL params ----------------
def reference_forward(params, input_ids, position_ids, segment_ids,
                      attention_mask):
    B, S = input_ids.shape
    scale = 1.0 / (HEAD_DIM ** 0.5)

    def ln(v, g, b):
        m = jnp.mean(v, -1, keepdims=True)
        var = jnp.mean(jnp.square(v - m), -1, keepdims=True)
        return (v - m) * jax.lax.rsqrt(var + LN_EPS) * g + b

    def mm(a, w):
        return jnp.dot(a.astype(jnp.bfloat16), w.astype(jnp.bfloat16),
                       preferred_element_type=jnp.float32)

    emb = (params["word_emb"][input_ids] + params["pos_emb"][position_ids]
           + params["seg_emb"][segment_ids]).reshape(B * S, HIDDEN)
    x = ln(emb, params["emb_ln_g"], params["emb_ln_b"])
    bias = ((1.0 - attention_mask.astype(jnp.float32)) * -1e9)[:, None, None, :]

    def to_heads(t):
        return t.reshape(B, S, HEADS, HEAD_DIM).transpose(0, 2, 1, 3)

    for lp in params["layers"]:
        q = to_heads(mm(x, lp["wq"]) + lp["bq"])
        k = to_heads(mm(x, lp["wk"]) + lp["bk"])
        v = to_heads(mm(x, lp["wv"]) + lp["bv"])
        s = jnp.einsum("bhqd,bhkd->bhqk", q.astype(jnp.bfloat16),
                       k.astype(jnp.bfloat16),
                       preferred_element_type=jnp.float32) * scale + bias
        p = jax.nn.softmax(s, axis=-1)
        ctx = jnp.einsum("bhqk,bhkd->bhqd", p.astype(jnp.bfloat16),
                         v.astype(jnp.bfloat16),
                         preferred_element_type=jnp.float32)
        ctx = ctx.transpose(0, 2, 1, 3).reshape(B * S, HIDDEN)
        x = ln(x + mm(ctx, lp["wo"]) + lp["bo"], lp["ln1_g"], lp["ln1_b"])
        ff = jax.nn.gelu(mm(x, lp["w1"]) + lp["b1"])
        x = ln(x + mm(ff, lp["w2"]) + lp["b2"], lp["ln2_g"], lp["ln2_b"])

    t = ln(mm(x, params["tr_w"]) + params["tr_b"],
           params["tr_ln_g"], params["tr_ln_b"])
    logits = mm(t, params["word_emb"].T) + params["out_bias"]
    return jax.nn.softmax(logits, axis=-1).reshape(B, S, VOCAB)


# ---------------------------------- main -------------------------------------
if __name__ == "__main__":
    root = jax.random.PRNGKey(0)
    k_param, k_ids = jax.random.split(root)

    params = init_params(k_param)
    fused_params = build_fused_params(params)

    B, S = 2, 8
    input_ids = jax.random.randint(k_ids, (B, S), 0, VOCAB, dtype=jnp.int32)
    position_ids = jnp.tile(jnp.arange(S, dtype=jnp.int32)[None, :], (B, 1))
    segment_ids = jnp.zeros((B, S), dtype=jnp.int32)
    attention_mask = jnp.ones((B, S), dtype=jnp.int32)

    fwd = jax.jit(bert_pretrain_forward)
    word_probs = jax.block_until_ready(
        fwd(fused_params, input_ids, position_ids, segment_ids, attention_mask))

    # Reference consumes the ORIGINAL (unfused, f32) params, so the check
    # validates the per-head packing, slab assembly and batch folding.
    ref_probs = reference_forward(params, input_ids, position_ids,
                                  segment_ids, attention_mask)

    assert word_probs.shape == (B, S, VOCAB)
    assert bool(jnp.all(jnp.isfinite(word_probs)))
    assert bool(jnp.allclose(word_probs.sum(-1), 1.0, atol=1e-3))
    assert bool(jnp.allclose(word_probs, ref_probs, atol=3e-3))
    print("KERNEL_OK")
</pallas_src>

<mosaic_0001>
module attributes {stable_mosaic.version = 11 : i64} {
  func.func @_fused_bert_kernel(%arg0: memref<16x32xf32, #tpu.memory_space<vmem>>, %arg1: memref<16x16xf32, #tpu.memory_space<vmem>>, %arg2: memref<48x128xf32, #tpu.memory_space<vmem>>, %arg3: memref<24x32x8xbf16, #tpu.memory_space<vmem>>, %arg4: memref<8x8x32xbf16, #tpu.memory_space<vmem>>, %arg5: memref<2x32x64xbf16, #tpu.memory_space<vmem>>, %arg6: memref<2x64x32xbf16, #tpu.memory_space<vmem>>, %arg7: memref<32x32xbf16, #tpu.memory_space<vmem>>, %arg8: memref<32x128xbf16, #tpu.memory_space<vmem>>, %arg9: memref<16x128xf32, #tpu.memory_space<vmem>>) attributes {dimension_semantics = [], scalar_prefetch = 0 : i64, scratch_operands = 0 : i64, tpu.core_type = #tpu.core_type<tc>} {
    %c0 = arith.constant 0 : index
    %c0_0 = arith.constant 0 : index
    %0 = vector.load %arg1[%c0, %c0_0] : memref<16x16xf32, #tpu.memory_space<vmem>>, vector<16x16xf32>
    %c0_1 = arith.constant 0 : index
    %c0_2 = arith.constant 0 : index
    %1 = vector.load %arg0[%c0_1, %c0_2] : memref<16x32xf32, #tpu.memory_space<vmem>>, vector<16x32xf32>
    %c0_3 = arith.constant 0 : index
    %c0_4 = arith.constant 0 : index
    %2 = vector.load %arg2[%c0_3, %c0_4] : memref<48x128xf32, #tpu.memory_space<vmem>>, vector<1x128xf32>
    %3 = vector.extract_strided_slice %2 {offsets = [0, 0], sizes = [1, 32], strides = [1, 1]} : vector<1x128xf32> to vector<1x32xf32>
    %c1 = arith.constant 1 : index
    %c0_5 = arith.constant 0 : index
    %4 = vector.load %arg2[%c1, %c0_5] : memref<48x128xf32, #tpu.memory_space<vmem>>, vector<1x128xf32>
    %5 = vector.extract_strided_slice %4 {offsets = [0, 0], sizes = [1, 32], strides = [1, 1]} : vector<1x128xf32> to vector<1x32xf32>
    %cst = arith.constant dense<0.000000e+00> : vector<16xf32>
    %6 = vector.multi_reduction <add>, %1, %cst [1] : vector<16x32xf32> to vector<16xf32>
    %7 = vector.shape_cast %6 : vector<16xf32> to vector<16x1xf32>
    %cst_6 = arith.constant 3.200000e+01 : f32
    %8 = vector.broadcast %cst_6 : f32 to vector<16x1xf32>
    %9 = arith.divf %7, %8 : vector<16x1xf32>
    %10 = vector.broadcast %9 : vector<16x1xf32> to vector<16x32xf32>
    %11 = arith.subf %1, %10 : vector<16x32xf32>
    %12 = arith.mulf %11, %11 : vector<16x32xf32>
    %cst_7 = arith.constant dense<0.000000e+00> : vector<16xf32>
    %13 = vector.multi_reduction <add>, %12, %cst_7 [1] : vector<16x32xf32> to vector<16xf32>
    %14 = vector.shape_cast %13 : vector<16xf32> to vector<16x1xf32>
    %cst_8 = arith.constant 3.200000e+01 : f32
    %15 = vector.broadcast %cst_8 : f32 to vector<16x1xf32>
    %16 = arith.divf %14, %15 : vector<16x1xf32>
    %17 = vector.broadcast %9 : vector<16x1xf32> to vector<16x32xf32>
    %18 = arith.subf %1, %17 : vector<16x32xf32>
    %cst_9 = arith.constant 9.99999996E-13 : f32
    %19 = vector.broadcast %cst_9 : f32 to vector<16x1xf32>
    %20 = arith.addf %16, %19 : vector<16x1xf32>
    %21 = math.rsqrt %20 : vector<16x1xf32>
    %22 = vector.broadcast %21 : vector<16x1xf32> to vector<16x32xf32>
    %23 = arith.mulf %18, %22 : vector<16x32xf32>
    %24 = vector.broadcast %3 : vector<1x32xf32> to vector<16x32xf32>
    %25 = arith.mulf %23, %24 : vector<16x32xf32>
    %26 = vector.broadcast %5 : vector<1x32xf32> to vector<16x32xf32>
    %27 = arith.addf %25, %26 : vector<16x32xf32>
    %28 = arith.truncf %27 : vector<16x32xf32> to vector<16x32xbf16>
    %c0_10 = arith.constant 0 : index
    %c0_11 = arith.constant 0 : index
    %c0_12 = arith.constant 0 : index
    %29 = vector.load %arg3[%c0_10, %c0_11, %c0_12] : memref<24x32x8xbf16, #tpu.memory_space<vmem>>, vector<1x32x8xbf16>
    %30 = vector.shape_cast %29 : vector<1x32x8xbf16> to vector<32x8xbf16>
    %c4 = arith.constant 4 : index
    %c0_13 = arith.constant 0 : index
    %c0_14 = arith.constant 0 : index
    %31 = vector.load %arg3[%c4, %c0_13, %c0_14] : memref<24x32x8xbf16, #tpu.memory_space<vmem>>, vector<1x32x8xbf16>
    %32 = vector.shape_cast %31 : vector<1x32x8xbf16> to vector<32x8xbf16>
    %c8 = arith.constant 8 : index
    %c0_15 = arith.constant 0 : index
    %c0_16 = arith.constant 0 : index
    %33 = vector.load %arg3[%c8, %c0_15, %c0_16] : memref<24x32x8xbf16, #tpu.memory_space<vmem>>, vector<1x32x8xbf16>
    %34 = vector.shape_cast %33 : vector<1x32x8xbf16> to vector<32x8xbf16>
    %cst_17 = arith.constant dense<0.000000e+00> : vector<16x8xf32>
    %35 = tpu.matmul %28, %30, %cst_17 {dimension_numbers = #tpu.dot_dimension_numbers<[1], [0], [0], [1], [0, 0, 1, 1], [], []>} : vector<16x32xbf16>, vector<32x8xbf16>, vector<16x8xf32> -> vector<16x8xf32>
    %c2 = arith.constant 2 : index
    %c0_18 = arith.constant 0 : index
    %36 = vector.load %arg2[%c2, %c0_18] : memref<48x128xf32, #tpu.memory_space<vmem>>, vector<1x128xf32>
    %37 = vector.extract_strided_slice %36 {offsets = [0, 0], sizes = [1, 8], strides = [1, 1]} : vector<1x128xf32> to vector<1x8xf32>
    %38 = vector.broadcast %37 : vector<1x8xf32> to vector<16x8xf32>
    %39 = arith.addf %35, %38 : vector<16x8xf32>
    %cst_19 = arith.constant dense<0.000000e+00> : vector<16x8xf32>
    %40 = tpu.matmul %28, %32, %cst_19 {dimension_numbers = #tpu.dot_dimension_numbers<[1], [0], [0], [1], [0, 0, 1, 1], [], []>} : vector<16x32xbf16>, vector<32x8xbf16>, vector<16x8xf32> -> vector<16x8xf32>
    %c6 = arith.constant 6 : index
    %c0_20 = arith.constant 0 : index
    %41 = vector.load %arg2[%c6, %c0_20] : memref<48x128xf32, #tpu.memory_space<vmem>>, vector<1x128xf32>
    %42 = vector.extract_strided_slice %41 {offsets = [0, 0], sizes = [1, 8], strides = [1, 1]} : vector<1x128xf32> to vector<1x8xf32>
    %43 = vector.broadcast %42 : vector<1x8xf32> to vector<16x8xf32>
    %44 = arith.addf %40, %43 : vector<16x8xf32>
    %cst_21 = arith.constant dense<0.000000e+00> : vector<16x8xf32>
    %45 = tpu.matmul %28, %34, %cst_21 {dimension_numbers = #tpu.dot_dimension_numbers<[1], [0], [0], [1], [0, 0, 1, 1], [], []>} : vector<16x32xbf16>, vector<32x8xbf16>, vector<16x8xf32> -> vector<16x8xf32>
    %c10 = arith.constant 10 : index
    %c0_22 = arith.constant 0 : index
    %46 = vector.load %arg2[%c10, %c0_22] : memref<48x128xf32, #tpu.memory_space<vmem>>, vector<1x128xf32>
    %47 = vector.extract_strided_slice %46 {offsets = [0, 0], sizes = [1, 8], strides = [1, 1]} : vector<1x128xf32> to vector<1x8xf32>
    %48 = vector.broadcast %47 : vector<1x8xf32> to vector<16x8xf32>
    %49 = arith.addf %45, %48 : vector<16x8xf32>
    %50 = arith.truncf %39 : vector<16x8xf32> to vector<16x8xbf16>
    %51 = arith.truncf %44 : vector<16x8xf32> to vector<16x8xbf16>
    %cst_23 = arith.constant dense<0.000000e+00> : vector<16x16xf32>
    %52 = tpu.matmul %50, %51, %cst_23 {dimension_numbers = #tpu.dot_dimension_numbers<[1], [1], [0], [0], [0, 0, 1, 0], [], []>} : vector<16x8xbf16>, vector<16x8xbf16>, vector<16x16xf32> -> vector<16x16xf32>
    %cst_24 = arith.constant 0.353553385 : f32
    %53 = vector.broadcast %cst_24 : f32 to vector<16x16xf32>
    %54 = arith.mulf %52, %53 : vector<16x16xf32>
    %55 = arith.addf %54, %0 : vector<16x16xf32>
    %cst_25 = arith.constant dense<0xFF800000> : vector<16xf32>
    %56 = vector.multi_reduction <maximumf>, %55, %cst_25 [1] : vector<16x16xf32> to vector<16xf32>
    %57 = vector.shape_cast %56 : vector<16xf32> to vector<16x1xf32>
    %58 = vector.broadcast %57 : vector<16x1xf32> to vector<16x16xf32>
    %59 = arith.subf %55, %58 : vector<16x16xf32>
    %60 = math.exp %59 : vector<16x16xf32>
    %cst_26 = arith.constant dense<0.000000e+00> : vector<16xf32>
    %61 = vector.multi_reduction <add>, %60, %cst_26 [1] : vector<16x16xf32> to vector<16xf32>
    %62 = vector.shape_cast %61 : vector<16xf32> to vector<16x1xf32>
    %63 = tpu.reciprocal %62 {approx = true} : vector<16x1xf32> -> vector<16x1xf32>
    %64 = vector.broadcast %63 : vector<16x1xf32> to vector<16x16xf32>
    %65 = arith.mulf %60, %64 : vector<16x16xf32>
    %66 = arith.truncf %65 : vector<16x16xf32> to vector<16x16xbf16>
    %67 = arith.truncf %49 : vector<16x8xf32> to vector<16x8xbf16>
    %cst_27 = arith.constant dense<0.000000e+00> : vector<16x8xf32>
    %68 = tpu.matmul %66, %67, %cst_27 {dimension_numbers = #tpu.dot_dimension_numbers<[1], [0], [0], [1], [0, 0, 1, 1], [], []>} : vector<16x16xbf16>, vector<16x8xbf16>, vector<16x8xf32> -> vector<16x8xf32>
    %69 = arith.truncf %68 : vector<16x8xf32> to vector<16x8xbf16>
    %c0_28 = arith.constant 0 : index
    %c0_29 = arith.constant 0 : index
    %c0_30 = arith.constant 0 : index
    %70 = vector.load %arg4[%c0_28, %c0_29, %c0_30] : memref<8x8x32xbf16, #tpu.memory_space<vmem>>, vector<1x8x32xbf16>
    %71 = vector.shape_cast %70 : vector<1x8x32xbf16> to vector<8x32xbf16>
    %cst_31 = arith.constant dense<0.000000e+00> : vector<16x32xf32>
    %72 = tpu.matmul %69, %71, %cst_31 {dimension_numbers = #tpu.dot_dimension_numbers<[1], [0], [0], [1], [0, 0, 1, 1], [], []>} : vector<16x8xbf16>, vector<8x32xbf16>, vector<16x32xf32> -> vector<16x32xf32>
    %c1_32 = arith.constant 1 : index
    %c0_33 = arith.constant 0 : index
    %c0_34 = arith.constant 0 : index
    %73 = vector.load %arg3[%c1_32, %c0_33, %c0_34] : memref<24x32x8xbf16, #tpu.memory_space<vmem>>, vector<1x32x8xbf16>
    %74 = vector.shape_cast %73 : vector<1x32x8xbf16> to vector<32x8xbf16>
    %c5 = arith.constant 5 : index
    %c0_35 = arith.constant 0 : index
    %c0_36 = arith.constant 0 : index
    %75 = vector.load %arg3[%c5, %c0_35, %c0_36] : memref<24x32x8xbf16, #tpu.memory_space<vmem>>, vector<1x32x8xbf16>
    %76 = vector.shape_cast %75 : vector<1x32x8xbf16> to vector<32x8xbf16>
    %c9 = arith.constant 9 : index
    %c0_37 = arith.constant 0 : index
    %c0_38 = arith.constant 0 : index
    %77 = vector.load %arg3[%c9, %c0_37, %c0_38] : memref<24x32x8xbf16, #tpu.memory_space<vmem>>, vector<1x32x8xbf16>
    %78 = vector.shape_cast %77 : vector<1x32x8xbf16> to vector<32x8xbf16>
    %cst_39 = arith.constant dense<0.000000e+00> : vector<16x8xf32>
    %79 = tpu.matmul %28, %74, %cst_39 {dimension_numbers = #tpu.dot_dimension_numbers<[1], [0], [0], [1], [0, 0, 1, 1], [], []>} : vector<16x32xbf16>, vector<32x8xbf16>, vector<16x8xf32> -> vector<16x8xf32>
    %c3 = arith.constant 3 : index
    %c0_40 = arith.constant 0 : index
    %80 = vector.load %arg2[%c3, %c0_40] : memref<48x128xf32, #tpu.memory_space<vmem>>, vector<1x128xf32>
    %81 = vector.extract_strided_slice %80 {offsets = [0, 0], sizes = [1, 8], strides = [1, 1]} : vector<1x128xf32> to vector<1x8xf32>
    %82 = vector.broadcast %81 : vector<1x8xf32> to vector<16x8xf32>
    %83 = arith.addf %79, %82 : vector<16x8xf32>
    %cst_41 = arith.constant dense<0.000000e+00> : vector<16x8xf32>
    %84 = tpu.matmul %28, %76, %cst_41 {dimension_numbers = #tpu.dot_dimension_numbers<[1], [0], [0], [1], [0, 0, 1, 1], [], []>} : vector<16x32xbf16>, vector<32x8xbf16>, vector<16x8xf32> -> vector<16x8xf32>
    %c7 = arith.constant 7 : index
    %c0_42 = arith.constant 0 : index
    %85 = vector.load %arg2[%c7, %c0_42] : memref<48x128xf32, #tpu.memory_space<vmem>>, vector<1x128xf32>
    %86 = vector.extract_strided_slice %85 {offsets = [0, 0], sizes = [1, 8], strides = [1, 1]} : vector<1x128xf32> to vector<1x8xf32>
    %87 = vector.broadcast %86 : vector<1x8xf32> to vector<16x8xf32>
    %88 = arith.addf %84, %87 : vector<16x8xf32>
    %cst_43 = arith.constant dense<0.000000e+00> : vector<16x8xf32>
    %89 = tpu.matmul %28, %78, %cst_43 {dimension_numbers = #tpu.dot_dimension_numbers<[1], [0], [0], [1], [0, 0, 1, 1], [], []>} : vector<16x32xbf16>, vector<32x8xbf16>, vector<16x8xf32> -> vector<16x8xf32>
    %c11 = arith.constant 11 : index
    %c0_44 = arith.constant 0 : index
    %90 = vector.load %arg2[%c11, %c0_44] : memref<48x128xf32, #tpu.memory_space<vmem>>, vector<1x128xf32>
    %91 = vector.extract_strided_slice %90 {offsets = [0, 0], sizes = [1, 8], strides = [1, 1]} : vector<1x128xf32> to vector<1x8xf32>
    %92 = vector.broadcast %91 : vector<1x8xf32> to vector<16x8xf32>
    %93 = arith.addf %89, %92 : vector<16x8xf32>
    %94 = arith.truncf %83 : vector<16x8xf32> to vector<16x8xbf16>
    %95 = arith.truncf %88 : vector<16x8xf32> to vector<16x8xbf16>
    %cst_45 = arith.constant dense<0.000000e+00> : vector<16x16xf32>
    %96 = tpu.matmul %94, %95, %cst_45 {dimension_numbers = #tpu.dot_dimension_numbers<[1], [1], [0], [0], [0, 0, 1, 0], [], []>} : vector<16x8xbf16>, vector<16x8xbf16>, vector<16x16xf32> -> vector<16x16xf32>
    %cst_46 = arith.constant 0.353553385 : f32
    %97 = vector.broadcast %cst_46 : f32 to vector<16x16xf32>
    %98 = arith.mulf %96, %97 : vector<16x16xf32>
    %99 = arith.addf %98, %0 : vector<16x16xf32>
    %cst_47 = arith.constant dense<0xFF800000> : vector<16xf32>
    %100 = vector.multi_reduction <maximumf>, %99, %cst_47 [1] : vector<16x16xf32> to vector<16xf32>
    %101 = vector.shape_cast %100 : vector<16xf32> to vector<16x1xf32>
    %102 = vector.broadcast %101 : vector<16x1xf32> to vector<16x16xf32>
    %103 = arith.subf %99, %102 : vector<16x16xf32>
    %104 = math.exp %103 : vector<16x16xf32>
    %cst_48 = arith.constant dense<0.000000e+00> : vector<16xf32>
    %105 = vector.multi_reduction <add>, %104, %cst_48 [1] : vector<16x16xf32> to vector<16xf32>
    %106 = vector.shape_cast %105 : vector<16xf32> to vector<16x1xf32>
    %107 = tpu.reciprocal %106 {approx = true} : vector<16x1xf32> -> vector<16x1xf32>
    %108 = vector.broadcast %107 : vector<16x1xf32> to vector<16x16xf32>
    %109 = arith.mulf %104, %108 : vector<16x16xf32>
    %110 = arith.truncf %109 : vector<16x16xf32> to vector<16x16xbf16>
    %111 = arith.truncf %93 : vector<16x8xf32> to vector<16x8xbf16>
    %cst_49 = arith.constant dense<0.000000e+00> : vector<16x8xf32>
    %112 = tpu.matmul %110, %111, %cst_49 {dimension_numbers = #tpu.dot_dimension_numbers<[1], [0], [0], [1], [0, 0, 1, 1], [], []>} : vector<16x16xbf16>, vector<16x8xbf16>, vector<16x8xf32> -> vector<16x8xf32>
    %113 = arith.truncf %112 : vector<16x8xf32> to vector<16x8xbf16>
    %c1_50 = arith.constant 1 : index
    %c0_51 = arith.constant 0 : index
    %c0_52 = arith.constant 0 : index
    %114 = vector.load %arg4[%c1_50, %c0_51, %c0_52] : memref<8x8x32xbf16, #tpu.memory_space<vmem>>, vector<1x8x32xbf16>
    %115 = vector.shape_cast %114 : vector<1x8x32xbf16> to vector<8x32xbf16>
    %cst_53 = arith.constant dense<0.000000e+00> : vector<16x32xf32>
    %116 = tpu.matmul %113, %115, %cst_53 {dimension_numbers = #tpu.dot_dimension_numbers<[1], [0], [0], [1], [0, 0, 1, 1], [], []>} : vector<16x8xbf16>, vector<8x32xbf16>, vector<16x32xf32> -> vector<16x32xf32>
    %117 = arith.addf %72, %116 : vector<16x32xf32>
    %c2_54 = arith.constant 2 : index
    %c0_55 = arith.constant 0 : index
    %c0_56 = arith.constant 0 : index
    %118 = vector.load %arg3[%c2_54, %c0_55, %c0_56] : memref<24x32x8xbf16, #tpu.memory_space<vmem>>, vector<1x32x8xbf16>
    %119 = vector.shape_cast %118 : vector<1x32x8xbf16> to vector<32x8xbf16>
    %c6_57 = arith.constant 6 : index
    %c0_58 = arith.constant 0 : index
    %c0_59 = arith.constant 0 : index
    %120 = vector.load %arg3[%c6_57, %c0_58, %c0_59] : memref<24x32x8xbf16, #tpu.memory_space<vmem>>, vector<1x32x8xbf16>
    %121 = vector.shape_cast %120 : vector<1x32x8xbf16> to vector<32x8xbf16>
    %c10_60 = arith.constant 10 : index
    %c0_61 = arith.constant 0 : index
    %c0_62 = arith.constant 0 : index
    %122 = vector.load %arg3[%c10_60, %c0_61, %c0_62] : memref<24x32x8xbf16, #tpu.memory_space<vmem>>, vector<1x32x8xbf16>
    %123 = vector.shape_cast %122 : vector<1x32x8xbf16> to vector<32x8xbf16>
    %cst_63 = arith.constant dense<0.000000e+00> : vector<16x8xf32>
    %124 = tpu.matmul %28, %119, %cst_63 {dimension_numbers = #tpu.dot_dimension_numbers<[1], [0], [0], [1], [0, 0, 1, 1], [], []>} : vector<16x32xbf16>, vector<32x8xbf16>, vector<16x8xf32> -> vector<16x8xf32>
    %c4_64 = arith.constant 4 : index
    %c0_65 = arith.constant 0 : index
    %125 = vector.load %arg2[%c4_64, %c0_65] : memref<48x128xf32, #tpu.memory_space<vmem>>, vector<1x128xf32>
    %126 = vector.extract_strided_slice %125 {offsets = [0, 0], sizes = [1, 8], strides = [1, 1]} : vector<1x128xf32> to vector<1x8xf32>
    %127 = vector.broadcast %126 : vector<1x8xf32> to vector<16x8xf32>
    %128 = arith.addf %124, %127 : vector<16x8xf32>
    %cst_66 = arith.constant dense<0.000000e+00> : vector<16x8xf32>
    %129 = tpu.matmul %28, %121, %cst_66 {dimension_numbers = #tpu.dot_dimension_numbers<[1], [0], [0], [1], [0, 0, 1, 1], [], []>} : vector<16x32xbf16>, vector<32x8xbf16>, vector<16x8xf32> -> vector<16x8xf32>
    %c8_67 = arith.constant 8 : index
    %c0_68 = arith.constant 0 : index
    %130 = vector.load %arg2[%c8_67, %c0_68] : memref<48x128xf32, #tpu.memory_space<vmem>>, vector<1x128xf32>
    %131 = vector.extract_strided_slice %130 {offsets = [0, 0], sizes = [1, 8], strides = [1, 1]} : vector<1x128xf32> to vector<1x8xf32>
    %132 = vector.broadcast %131 : vector<1x8xf32> to vector<16x8xf32>
    %133 = arith.addf %129, %132 : vector<16x8xf32>
    %cst_69 = arith.constant dense<0.000000e+00> : vector<16x8xf32>
    %134 = tpu.matmul %28, %123, %cst_69 {dimension_numbers = #tpu.dot_dimension_numbers<[1], [0], [0], [1], [0, 0, 1, 1], [], []>} : vector<16x32xbf16>, vector<32x8xbf16>, vector<16x8xf32> -> vector<16x8xf32>
    %c12 = arith.constant 12 : index
    %c0_70 = arith.constant 0 : index
    %135 = vector.load %arg2[%c12, %c0_70] : memref<48x128xf32, #tpu.memory_space<vmem>>, vector<1x128xf32>
    %136 = vector.extract_strided_slice %135 {offsets = [0, 0], sizes = [1, 8], strides = [1, 1]} : vector<1x128xf32> to vector<1x8xf32>
    %137 = vector.broadcast %136 : vector<1x8xf32> to vector<16x8xf32>
    %138 = arith.addf %134, %137 : vector<16x8xf32>
    %139 = arith.truncf %128 : vector<16x8xf32> to vector<16x8xbf16>
    %140 = arith.truncf %133 : vector<16x8xf32> to vector<16x8xbf16>
    %cst_71 = arith.constant dense<0.000000e+00> : vector<16x16xf32>
    %141 = tpu.matmul %139, %140, %cst_71 {dimension_numbers = #tpu.dot_dimension_numbers<[1], [1], [0], [0], [0, 0, 1, 0], [], []>} : vector<16x8xbf16>, vector<16x8xbf16>, vector<16x16xf32> -> vector<16x16xf32>
    %cst_72 = arith.constant 0.353553385 : f32
    %142 = vector.broadcast %cst_72 : f32 to vector<16x16xf32>
    %143 = arith.mulf %141, %142 : vector<16x16xf32>
    %144 = arith.addf %143, %0 : vector<16x16xf32>
    %cst_73 = arith.constant dense<0xFF800000> : vector<16xf32>
    %145 = vector.multi_reduction <maximumf>, %144, %cst_73 [1] : vector<16x16xf32> to vector<16xf32>
    %146 = vector.shape_cast %145 : vector<16xf32> to vector<16x1xf32>
    %147 = vector.broadcast %146 : vector<16x1xf32> to vector<16x16xf32>
    %148 = arith.subf %144, %147 : vector<16x16xf32>
    %149 = math.exp %148 : vector<16x16xf32>
    %cst_74 = arith.constant dense<0.000000e+00> : vector<16xf32>
    %150 = vector.multi_reduction <add>, %149, %cst_74 [1] : vector<16x16xf32> to vector<16xf32>
    %151 = vector.shape_cast %150 : vector<16xf32> to vector<16x1xf32>
    %152 = tpu.reciprocal %151 {approx = true} : vector<16x1xf32> -> vector<16x1xf32>
    %153 = vector.broadcast %152 : vector<16x1xf32> to vector<16x16xf32>
    %154 = arith.mulf %149, %153 : vector<16x16xf32>
    %155 = arith.truncf %154 : vector<16x16xf32> to vector<16x16xbf16>
    %156 = arith.truncf %138 : vector<16x8xf32> to vector<16x8xbf16>
    %cst_75 = arith.constant dense<0.000000e+00> : vector<16x8xf32>
    %157 = tpu.matmul %155, %156, %cst_75 {dimension_numbers = #tpu.dot_dimension_numbers<[1], [0], [0], [1], [0, 0, 1, 1], [], []>} : vector<16x16xbf16>, vector<16x8xbf16>, vector<16x8xf32> -> vector<16x8xf32>
    %158 = arith.truncf %157 : vector<16x8xf32> to vector<16x8xbf16>
    %c2_76 = arith.constant 2 : index
    %c0_77 = arith.constant 0 : index
    %c0_78 = arith.constant 0 : index
    %159 = vector.load %arg4[%c2_76, %c0_77, %c0_78] : memref<8x8x32xbf16, #tpu.memory_space<vmem>>, vector<1x8x32xbf16>
    %160 = vector.shape_cast %159 : vector<1x8x32xbf16> to vector<8x32xbf16>
    %cst_79 = arith.constant dense<0.000000e+00> : vector<16x32xf32>
    %161 = tpu.matmul %158, %160, %cst_79 {dimension_numbers = #tpu.dot_dimension_numbers<[1], [0], [0], [1], [0, 0, 1, 1], [], []>} : vector<16x8xbf16>, vector<8x32xbf16>, vector<16x32xf32> -> vector<16x32xf32>
    %162 = arith.addf %117, %161 : vector<16x32xf32>
    %c3_80 = arith.constant 3 : index
    %c0_81 = arith.constant 0 : index
    %c0_82 = arith.constant 0 : index
    %163 = vector.load %arg3[%c3_80, %c0_81, %c0_82] : memref<24x32x8xbf16, #tpu.memory_space<vmem>>, vector<1x32x8xbf16>
    %164 = vector.shape_cast %163 : vector<1x32x8xbf16> to vector<32x8xbf16>
    %c7_83 = arith.constant 7 : index
    %c0_84 = arith.constant 0 : index
    %c0_85 = arith.constant 0 : index
    %165 = vector.load %arg3[%c7_83, %c0_84, %c0_85] : memref<24x32x8xbf16, #tpu.memory_space<vmem>>, vector<1x32x8xbf16>
    %166 = vector.shape_cast %165 : vector<1x32x8xbf16> to vector<32x8xbf16>
    %c11_86 = arith.constant 11 : index
    %c0_87 = arith.constant 0 : index
    %c0_88 = arith.constant 0 : index
    %167 = vector.load %arg3[%c11_86, %c0_87, %c0_88] : memref<24x32x8xbf16, #tpu.memory_space<vmem>>, vector<1x32x8xbf16>
    %168 = vector.shape_cast %167 : vector<1x32x8xbf16> to vector<32x8xbf16>
    %cst_89 = arith.constant dense<0.000000e+00> : vector<16x8xf32>
    %169 = tpu.matmul %28, %164, %cst_89 {dimension_numbers = #tpu.dot_dimension_numbers<[1], [0], [0], [1], [0, 0, 1, 1], [], []>} : vector<16x32xbf16>, vector<32x8xbf16>, vector<16x8xf32> -> vector<16x8xf32>
    %c5_90 = arith.constant 5 : index
    %c0_91 = arith.constant 0 : index
    %170 = vector.load %arg2[%c5_90, %c0_91] : memref<48x128xf32, #tpu.memory_space<vmem>>, vector<1x128xf32>
    %171 = vector.extract_strided_slice %170 {offsets = [0, 0], sizes = [1, 8], strides = [1, 1]} : vector<1x128xf32> to vector<1x8xf32>
    %172 = vector.broadcast %171 : vector<1x8xf32> to vector<16x8xf32>
    %173 = arith.addf %169, %172 : vector<16x8xf32>
    %cst_92 = arith.constant dense<0.000000e+00> : vector<16x8xf32>
    %174 = tpu.matmul %28, %166, %cst_92 {dimension_numbers = #tpu.dot_dimension_numbers<[1], [0], [0], [1], [0, 0, 1, 1], [], []>} : vector<16x32xbf16>, vector<32x8xbf16>, vector<16x8xf32> -> vector<16x8xf32>
    %c9_93 = arith.constant 9 : index
    %c0_94 = arith.constant 0 : index
    %175 = vector.load %arg2[%c9_93, %c0_94] : memref<48x128xf32, #tpu.memory_space<vmem>>, vector<1x128xf32>
    %176 = vector.extract_strided_slice %175 {offsets = [0, 0], sizes = [1, 8], strides = [1, 1]} : vector<1x128xf32> to vector<1x8xf32>
    %177 = vector.broadcast %176 : vector<1x8xf32> to vector<16x8xf32>
    %178 = arith.addf %174, %177 : vector<16x8xf32>
    %cst_95 = arith.constant dense<0.000000e+00> : vector<16x8xf32>
    %179 = tpu.matmul %28, %168, %cst_95 {dimension_numbers = #tpu.dot_dimension_numbers<[1], [0], [0], [1], [0, 0, 1, 1], [], []>} : vector<16x32xbf16>, vector<32x8xbf16>, vector<16x8xf32> -> vector<16x8xf32>
    %c13 = arith.constant 13 : index
    %c0_96 = arith.constant 0 : index
    %180 = vector.load %arg2[%c13, %c0_96] : memref<48x128xf32, #tpu.memory_space<vmem>>, vector<1x128xf32>
    %181 = vector.extract_strided_slice %180 {offsets = [0, 0], sizes = [1, 8], strides = [1, 1]} : vector<1x128xf32> to vector<1x8xf32>
    %182 = vector.broadcast %181 : vector<1x8xf32> to vector<16x8xf32>
    %183 = arith.addf %179, %182 : vector<16x8xf32>
    %184 = arith.truncf %173 : vector<16x8xf32> to vector<16x8xbf16>
    %185 = arith.truncf %178 : vector<16x8xf32> to vector<16x8xbf16>
    %cst_97 = arith.constant dense<0.000000e+00> : vector<16x16xf32>
    %186 = tpu.matmul %184, %185, %cst_97 {dimension_numbers = #tpu.dot_dimension_numbers<[1], [1], [0], [0], [0, 0, 1, 0], [], []>} : vector<16x8xbf16>, vector<16x8xbf16>, vector<16x16xf32> -> vector<16x16xf32>
    %cst_98 = arith.constant 0.353553385 : f32
    %187 = vector.broadcast %cst_98 : f32 to vector<16x16xf32>
    %188 = arith.mulf %186, %187 : vector<16x16xf32>
    %189 = arith.addf %188, %0 : vector<16x16xf32>
    %cst_99 = arith.constant dense<0xFF800000> : vector<16xf32>
    %190 = vector.multi_reduction <maximumf>, %189, %cst_99 [1] : vector<16x16xf32> to vector<16xf32>
    %191 = vector.shape_cast %190 : vector<16xf32> to vector<16x1xf32>
    %192 = vector.broadcast %191 : vector<16x1xf32> to vector<16x16xf32>
    %193 = arith.subf %189, %192 : vector<16x16xf32>
    %194 = math.exp %193 : vector<16x16xf32>
    %cst_100 = arith.constant dense<0.000000e+00> : vector<16xf32>
    %195 = vector.multi_reduction <add>, %194, %cst_100 [1] : vector<16x16xf32> to vector<16xf32>
    %196 = vector.shape_cast %195 : vector<16xf32> to vector<16x1xf32>
    %197 = tpu.reciprocal %196 {approx = true} : vector<16x1xf32> -> vector<16x1xf32>
    %198 = vector.broadcast %197 : vector<16x1xf32> to vector<16x16xf32>
    %199 = arith.mulf %194, %198 : vector<16x16xf32>
    %200 = arith.truncf %199 : vector<16x16xf32> to vector<16x16xbf16>
    %201 = arith.truncf %183 : vector<16x8xf32> to vector<16x8xbf16>
    %cst_101 = arith.constant dense<0.000000e+00> : vector<16x8xf32>
    %202 = tpu.matmul %200, %201, %cst_101 {dimension_numbers = #tpu.dot_dimension_numbers<[1], [0], [0], [1], [0, 0, 1, 1], [], []>} : vector<16x16xbf16>, vector<16x8xbf16>, vector<16x8xf32> -> vector<16x8xf32>
    %203 = arith.truncf %202 : vector<16x8xf32> to vector<16x8xbf16>
    %c3_102 = arith.constant 3 : index
    %c0_103 = arith.constant 0 : index
    %c0_104 = arith.constant 0 : index
    %204 = vector.load %arg4[%c3_102, %c0_103, %c0_104] : memref<8x8x32xbf16, #tpu.memory_space<vmem>>, vector<1x8x32xbf16>
    %205 = vector.shape_cast %204 : vector<1x8x32xbf16> to vector<8x32xbf16>
    %cst_105 = arith.constant dense<0.000000e+00> : vector<16x32xf32>
    %206 = tpu.matmul %203, %205, %cst_105 {dimension_numbers = #tpu.dot_dimension_numbers<[1], [0], [0], [1], [0, 0, 1, 1], [], []>} : vector<16x8xbf16>, vector<8x32xbf16>, vector<16x32xf32> -> vector<16x32xf32>
    %207 = arith.addf %162, %206 : vector<16x32xf32>
    %c14 = arith.constant 14 : index
    %c0_106 = arith.constant 0 : index
    %208 = vector.load %arg2[%c14, %c0_106] : memref<48x128xf32, #tpu.memory_space<vmem>>, vector<1x128xf32>
    %209 = vector.extract_strided_slice %208 {offsets = [0, 0], sizes = [1, 32], strides = [1, 1]} : vector<1x128xf32> to vector<1x32xf32>
    %210 = vector.broadcast %209 : vector<1x32xf32> to vector<16x32xf32>
    %211 = arith.addf %207, %210 : vector<16x32xf32>
    %212 = arith.addf %27, %211 : vector<16x32xf32>
    %c15 = arith.constant 15 : index
    %c0_107 = arith.constant 0 : index
    %213 = vector.load %arg2[%c15, %c0_107] : memref<48x128xf32, #tpu.memory_space<vmem>>, vector<1x128xf32>
    %214 = vector.extract_strided_slice %213 {offsets = [0, 0], sizes = [1, 32], strides = [1, 1]} : vector<1x128xf32> to vector<1x32xf32>
    %c16 = arith.constant 16 : index
    %c0_108 = arith.constant 0 : index
    %215 = vector.load %arg2[%c16, %c0_108] : memref<48x128xf32, #tpu.memory_space<vmem>>, vector<1x128xf32>
    %216 = vector.extract_strided_slice %215 {offsets = [0, 0], sizes = [1, 32], strides = [1, 1]} : vector<1x128xf32> to vector<1x32xf32>
    %cst_109 = arith.constant dense<0.000000e+00> : vector<16xf32>
    %217 = vector.multi_reduction <add>, %212, %cst_109 [1] : vector<16x32xf32> to vector<16xf32>
    %218 = vector.shape_cast %217 : vector<16xf32> to vector<16x1xf32>
    %cst_110 = arith.constant 3.200000e+01 : f32
    %219 = vector.broadcast %cst_110 : f32 to vector<16x1xf32>
    %220 = arith.divf %218, %219 : vector<16x1xf32>
    %221 = vector.broadcast %220 : vector<16x1xf32> to vector<16x32xf32>
    %222 = arith.subf %212, %221 : vector<16x32xf32>
    %223 = arith.mulf %222, %222 : vector<16x32xf32>
    %cst_111 = arith.constant dense<0.000000e+00> : vector<16xf32>
    %224 = vector.multi_reduction <add>, %223, %cst_111 [1] : vector<16x32xf32> to vector<16xf32>
    %225 = vector.shape_cast %224 : vector<16xf32> to vector<16x1xf32>
    %cst_112 = arith.constant 3.200000e+01 : f32
    %226 = vector.broadcast %cst_112 : f32 to vector<16x1xf32>
    %227 = arith.divf %225, %226 : vector<16x1xf32>
    %228 = vector.broadcast %220 : vector<16x1xf32> to vector<16x32xf32>
    %229 = arith.subf %212, %228 : vector<16x32xf32>
    %cst_113 = arith.constant 9.99999996E-13 : f32
    %230 = vector.broadcast %cst_113 : f32 to vector<16x1xf32>
    %231 = arith.addf %227, %230 : vector<16x1xf32>
    %232 = math.rsqrt %231 : vector<16x1xf32>
    %233 = vector.broadcast %232 : vector<16x1xf32> to vector<16x32xf32>
    %234 = arith.mulf %229, %233 : vector<16x32xf32>
    %235 = vector.broadcast %214 : vector<1x32xf32> to vector<16x32xf32>
    %236 = arith.mulf %234, %235 : vector<16x32xf32>
    %237 = vector.broadcast %216 : vector<1x32xf32> to vector<16x32xf32>
    %238 = arith.addf %236, %237 : vector<16x32xf32>
    %239 = arith.truncf %238 : vector<16x32xf32> to vector<16x32xbf16>
    %c0_114 = arith.constant 0 : index
    %c0_115 = arith.constant 0 : index
    %c0_116 = arith.constant 0 : index
    %240 = vector.load %arg5[%c0_114, %c0_115, %c0_116] : memref<2x32x64xbf16, #tpu.memory_space<vmem>>, vector<1x32x64xbf16>
    %241 = vector.shape_cast %240 : vector<1x32x64xbf16> to vector<32x64xbf16>
    %cst_117 = arith.constant dense<0.000000e+00> : vector<16x64xf32>
    %242 = tpu.matmul %239, %241, %cst_117 {dimension_numbers = #tpu.dot_dimension_numbers<[1], [0], [0], [1], [0, 0, 1, 1], [], []>} : vector<16x32xbf16>, vector<32x64xbf16>, vector<16x64xf32> -> vector<16x64xf32>
    %c17 = arith.constant 17 : index
    %c0_118 = arith.constant 0 : index
    %243 = vector.load %arg2[%c17, %c0_118] : memref<48x128xf32, #tpu.memory_space<vmem>>, vector<1x128xf32>
    %244 = vector.extract_strided_slice %243 {offsets = [0, 0], sizes = [1, 64], strides = [1, 1]} : vector<1x128xf32> to vector<1x64xf32>
    %245 = vector.broadcast %244 : vector<1x64xf32> to vector<16x64xf32>
    %246 = arith.addf %242, %245 : vector<16x64xf32>
    %247 = arith.mulf %246, %246 : vector<16x64xf32>
    %248 = arith.mulf %246, %247 : vector<16x64xf32>
    %cst_119 = arith.constant 4.471500e-02 : f32
    %249 = vector.broadcast %cst_119 : f32 to vector<16x64xf32>
    %250 = arith.mulf %249, %248 : vector<16x64xf32>
    %251 = arith.addf %246, %250 : vector<16x64xf32>
    %cst_120 = arith.constant 0.797884583 : f32
    %252 = vector.broadcast %cst_120 : f32 to vector<16x64xf32>
    %253 = arith.mulf %252, %251 : vector<16x64xf32>
    %254 = math.tanh %253 : vector<16x64xf32>
    %cst_121 = arith.constant 1.000000e+00 : f32
    %255 = vector.broadcast %cst_121 : f32 to vector<16x64xf32>
    %256 = arith.addf %255, %254 : vector<16x64xf32>
    %cst_122 = arith.constant 5.000000e-01 : f32
    %257 = vector.broadcast %cst_122 : f32 to vector<16x64xf32>
    %258 = arith.mulf %257, %256 : vector<16x64xf32>
    %259 = arith.mulf %246, %258 : vector<16x64xf32>
    %260 = arith.truncf %259 : vector<16x64xf32> to vector<16x64xbf16>
    %c0_123 = arith.constant 0 : index
    %c0_124 = arith.constant 0 : index
    %c0_125 = arith.constant 0 : index
    %261 = vector.load %arg6[%c0_123, %c0_124, %c0_125] : memref<2x64x32xbf16, #tpu.memory_space<vmem>>, vector<1x64x32xbf16>
    %262 = vector.shape_cast %261 : vector<1x64x32xbf16> to vector<64x32xbf16>
    %cst_126 = arith.constant dense<0.000000e+00> : vector<16x32xf32>
    %263 = tpu.matmul %260, %262, %cst_126 {dimension_numbers = #tpu.dot_dimension_numbers<[1], [0], [0], [1], [0, 0, 1, 1], [], []>} : vector<16x64xbf16>, vector<64x32xbf16>, vector<16x32xf32> -> vector<16x32xf32>
    %c18 = arith.constant 18 : index
    %c0_127 = arith.constant 0 : index
    %264 = vector.load %arg2[%c18, %c0_127] : memref<48x128xf32, #tpu.memory_space<vmem>>, vector<1x128xf32>
    %265 = vector.extract_strided_slice %264 {offsets = [0, 0], sizes = [1, 32], strides = [1, 1]} : vector<1x128xf32> to vector<1x32xf32>
    %266 = vector.broadcast %265 : vector<1x32xf32> to vector<16x32xf32>
    %267 = arith.addf %263, %266 : vector<16x32xf32>
    %268 = arith.addf %238, %267 : vector<16x32xf32>
    %c19 = arith.constant 19 : index
    %c0_128 = arith.constant 0 : index
    %269 = vector.load %arg2[%c19, %c0_128] : memref<48x128xf32, #tpu.memory_space<vmem>>, vector<1x128xf32>
    %270 = vector.extract_strided_slice %269 {offsets = [0, 0], sizes = [1, 32], strides = [1, 1]} : vector<1x128xf32> to vector<1x32xf32>
    %c20 = arith.constant 20 : index
    %c0_129 = arith.constant 0 : index
    %271 = vector.load %arg2[%c20, %c0_129] : memref<48x128xf32, #tpu.memory_space<vmem>>, vector<1x128xf32>
    %272 = vector.extract_strided_slice %271 {offsets = [0, 0], sizes = [1, 32], strides = [1, 1]} : vector<1x128xf32> to vector<1x32xf32>
    %cst_130 = arith.constant dense<0.000000e+00> : vector<16xf32>
    %273 = vector.multi_reduction <add>, %268, %cst_130 [1] : vector<16x32xf32> to vector<16xf32>
    %274 = vector.shape_cast %273 : vector<16xf32> to vector<16x1xf32>
    %cst_131 = arith.constant 3.200000e+01 : f32
    %275 = vector.broadcast %cst_131 : f32 to vector<16x1xf32>
    %276 = arith.divf %274, %275 : vector<16x1xf32>
    %277 = vector.broadcast %276 : vector<16x1xf32> to vector<16x32xf32>
    %278 = arith.subf %268, %277 : vector<16x32xf32>
    %279 = arith.mulf %278, %278 : vector<16x32xf32>
    %cst_132 = arith.constant dense<0.000000e+00> : vector<16xf32>
    %280 = vector.multi_reduction <add>, %279, %cst_132 [1] : vector<16x32xf32> to vector<16xf32>
    %281 = vector.shape_cast %280 : vector<16xf32> to vector<16x1xf32>
    %cst_133 = arith.constant 3.200000e+01 : f32
    %282 = vector.broadcast %cst_133 : f32 to vector<16x1xf32>
    %283 = arith.divf %281, %282 : vector<16x1xf32>
    %284 = vector.broadcast %276 : vector<16x1xf32> to vector<16x32xf32>
    %285 = arith.subf %268, %284 : vector<16x32xf32>
    %cst_134 = arith.constant 9.99999996E-13 : f32
    %286 = vector.broadcast %cst_134 : f32 to vector<16x1xf32>
    %287 = arith.addf %283, %286 : vector<16x1xf32>
    %288 = math.rsqrt %287 : vector<16x1xf32>
    %289 = vector.broadcast %288 : vector<16x1xf32> to vector<16x32xf32>
    %290 = arith.mulf %285, %289 : vector<16x32xf32>
    %291 = vector.broadcast %270 : vector<1x32xf32> to vector<16x32xf32>
    %292 = arith.mulf %290, %291 : vector<16x32xf32>
    %293 = vector.broadcast %272 : vector<1x32xf32> to vector<16x32xf32>
    %294 = arith.addf %292, %293 : vector<16x32xf32>
    %295 = arith.truncf %294 : vector<16x32xf32> to vector<16x32xbf16>
    %c12_135 = arith.constant 12 : index
    %c0_136 = arith.constant 0 : index
    %c0_137 = arith.constant 0 : index
    %296 = vector.load %arg3[%c12_135, %c0_136, %c0_137] : memref<24x32x8xbf16, #tpu.memory_space<vmem>>, vector<1x32x8xbf16>
    %297 = vector.shape_cast %296 : vector<1x32x8xbf16> to vector<32x8xbf16>
    %c16_138 = arith.constant 16 : index
    %c0_139 = arith.constant 0 : index
    %c0_140 = arith.constant 0 : index
    %298 = vector.load %arg3[%c16_138, %c0_139, %c0_140] : memref<24x32x8xbf16, #tpu.memory_space<vmem>>, vector<1x32x8xbf16>
    %299 = vector.shape_cast %298 : vector<1x32x8xbf16> to vector<32x8xbf16>
    %c20_141 = arith.constant 20 : index
    %c0_142 = arith.constant 0 : index
    %c0_143 = arith.constant 0 : index
    %300 = vector.load %arg3[%c20_141, %c0_142, %c0_143] : memref<24x32x8xbf16, #tpu.memory_space<vmem>>, vector<1x32x8xbf16>
    %301 = vector.shape_cast %300 : vector<1x32x8xbf16> to vector<32x8xbf16>
    %cst_144 = arith.constant dense<0.000000e+00> : vector<16x8xf32>
    %302 = tpu.matmul %295, %297, %cst_144 {dimension_numbers = #tpu.dot_dimension_numbers<[1], [0], [0], [1], [0, 0, 1, 1], [], []>} : vector<16x32xbf16>, vector<32x8xbf16>, vector<16x8xf32> -> vector<16x8xf32>
    %c21 = arith.constant 21 : index
    %c0_145 = arith.constant 0 : index
    %303 = vector.load %arg2[%c21, %c0_145] : memref<48x128xf32, #tpu.memory_space<vmem>>, vector<1x128xf32>
    %304 = vector.extract_strided_slice %303 {offsets = [0, 0], sizes = [1, 8], strides = [1, 1]} : vector<1x128xf32> to vector<1x8xf32>
    %305 = vector.broadcast %304 : vector<1x8xf32> to vector<16x8xf32>
    %306 = arith.addf %302, %305 : vector<16x8xf32>
    %cst_146 = arith.constant dense<0.000000e+00> : vector<16x8xf32>
    %307 = tpu.matmul %295, %299, %cst_146 {dimension_numbers = #tpu.dot_dimension_numbers<[1], [0], [0], [1], [0, 0, 1, 1], [], []>} : vector<16x32xbf16>, vector<32x8xbf16>, vector<16x8xf32> -> vector<16x8xf32>
    %c25 = arith.constant 25 : index
    %c0_147 = arith.constant 0 : index
    %308 = vector.load %arg2[%c25, %c0_147] : memref<48x128xf32, #tpu.memory_space<vmem>>, vector<1x128xf32>
    %309 = vector.extract_strided_slice %308 {offsets = [0, 0], sizes = [1, 8], strides = [1, 1]} : vector<1x128xf32> to vector<1x8xf32>
    %310 = vector.broadcast %309 : vector<1x8xf32> to vector<16x8xf32>
    %311 = arith.addf %307, %310 : vector<16x8xf32>
    %cst_148 = arith.constant dense<0.000000e+00> : vector<16x8xf32>
    %312 = tpu.matmul %295, %301, %cst_148 {dimension_numbers = #tpu.dot_dimension_numbers<[1], [0], [0], [1], [0, 0, 1, 1], [], []>} : vector<16x32xbf16>, vector<32x8xbf16>, vector<16x8xf32> -> vector<16x8xf32>
    %c29 = arith.constant 29 : index
    %c0_149 = arith.constant 0 : index
    %313 = vector.load %arg2[%c29, %c0_149] : memref<48x128xf32, #tpu.memory_space<vmem>>, vector<1x128xf32>
    %314 = vector.extract_strided_slice %313 {offsets = [0, 0], sizes = [1, 8], strides = [1, 1]} : vector<1x128xf32> to vector<1x8xf32>
    %315 = vector.broadcast %314 : vector<1x8xf32> to vector<16x8xf32>
    %316 = arith.addf %312, %315 : vector<16x8xf32>
    %317 = arith.truncf %306 : vector<16x8xf32> to vector<16x8xbf16>
    %318 = arith.truncf %311 : vector<16x8xf32> to vector<16x8xbf16>
    %cst_150 = arith.constant dense<0.000000e+00> : vector<16x16xf32>
    %319 = tpu.matmul %317, %318, %cst_150 {dimension_numbers = #tpu.dot_dimension_numbers<[1], [1], [0], [0], [0, 0, 1, 0], [], []>} : vector<16x8xbf16>, vector<16x8xbf16>, vector<16x16xf32> -> vector<16x16xf32>
    %cst_151 = arith.constant 0.353553385 : f32
    %320 = vector.broadcast %cst_151 : f32 to vector<16x16xf32>
    %321 = arith.mulf %319, %320 : vector<16x16xf32>
    %322 = arith.addf %321, %0 : vector<16x16xf32>
    %cst_152 = arith.constant dense<0xFF800000> : vector<16xf32>
    %323 = vector.multi_reduction <maximumf>, %322, %cst_152 [1] : vector<16x16xf32> to vector<16xf32>
    %324 = vector.shape_cast %323 : vector<16xf32> to vector<16x1xf32>
    %325 = vector.broadcast %324 : vector<16x1xf32> to vector<16x16xf32>
    %326 = arith.subf %322, %325 : vector<16x16xf32>
    %327 = math.exp %326 : vector<16x16xf32>
    %cst_153 = arith.constant dense<0.000000e+00> : vector<16xf32>
    %328 = vector.multi_reduction <add>, %327, %cst_153 [1] : vector<16x16xf32> to vector<16xf32>
    %329 = vector.shape_cast %328 : vector<16xf32> to vector<16x1xf32>
    %330 = tpu.reciprocal %329 {approx = true} : vector<16x1xf32> -> vector<16x1xf32>
    %331 = vector.broadcast %330 : vector<16x1xf32> to vector<16x16xf32>
    %332 = arith.mulf %327, %331 : vector<16x16xf32>
    %333 = arith.truncf %332 : vector<16x16xf32> to vector<16x16xbf16>
    %334 = arith.truncf %316 : vector<16x8xf32> to vector<16x8xbf16>
    %cst_154 = arith.constant dense<0.000000e+00> : vector<16x8xf32>
    %335 = tpu.matmul %333, %334, %cst_154 {dimension_numbers = #tpu.dot_dimension_numbers<[1], [0], [0], [1], [0, 0, 1, 1], [], []>} : vector<16x16xbf16>, vector<16x8xbf16>, vector<16x8xf32> -> vector<16x8xf32>
    %336 = arith.truncf %335 : vector<16x8xf32> to vector<16x8xbf16>
    %c4_155 = arith.constant 4 : index
    %c0_156 = arith.constant 0 : index
    %c0_157 = arith.constant 0 : index
    %337 = vector.load %arg4[%c4_155, %c0_156, %c0_157] : memref<8x8x32xbf16, #tpu.memory_space<vmem>>, vector<1x8x32xbf16>
    %338 = vector.shape_cast %337 : vector<1x8x32xbf16> to vector<8x32xbf16>
    %cst_158 = arith.constant dense<0.000000e+00> : vector<16x32xf32>
    %339 = tpu.matmul %336, %338, %cst_158 {dimension_numbers = #tpu.dot_dimension_numbers<[1], [0], [0], [1], [0, 0, 1, 1], [], []>} : vector<16x8xbf16>, vector<8x32xbf16>, vector<16x32xf32> -> vector<16x32xf32>
    %c13_159 = arith.constant 13 : index
    %c0_160 = arith.constant 0 : index
    %c0_161 = arith.constant 0 : index
    %340 = vector.load %arg3[%c13_159, %c0_160, %c0_161] : memref<24x32x8xbf16, #tpu.memory_space<vmem>>, vector<1x32x8xbf16>
    %341 = vector.shape_cast %340 : vector<1x32x8xbf16> to vector<32x8xbf16>
    %c17_162 = arith.constant 17 : index
    %c0_163 = arith.constant 0 : index
    %c0_164 = arith.constant 0 : index
    %342 = vector.load %arg3[%c17_162, %c0_163, %c0_164] : memref<24x32x8xbf16, #tpu.memory_space<vmem>>, vector<1x32x8xbf16>
    %343 = vector.shape_cast %342 : vector<1x32x8xbf16> to vector<32x8xbf16>
    %c21_165 = arith.constant 21 : index
    %c0_166 = arith.constant 0 : index
    %c0_167 = arith.constant 0 : index
    %344 = vector.load %arg3[%c21_165, %c0_166, %c0_167] : memref<24x32x8xbf16, #tpu.memory_space<vmem>>, vector<1x32x8xbf16>
    %345 = vector.shape_cast %344 : vector<1x32x8xbf16> to vector<32x8xbf16>
    %cst_168 = arith.constant dense<0.000000e+00> : vector<16x8xf32>
    %346 = tpu.matmul %295, %341, %cst_168 {dimension_numbers = #tpu.dot_dimension_numbers<[1], [0], [0], [1], [0, 0, 1, 1], [], []>} : vector<16x32xbf16>, vector<32x8xbf16>, vector<16x8xf32> -> vector<16x8xf32>
    %c22 = arith.constant 22 : index
    %c0_169 = arith.constant 0 : index
    %347 = vector.load %arg2[%c22, %c0_169] : memref<48x128xf32, #tpu.memory_space<vmem>>, vector<1x128xf32>
    %348 = vector.extract_strided_slice %347 {offsets = [0, 0], sizes = [1, 8], strides = [1, 1]} : vector<1x128xf32> to vector<1x8xf32>
    %349 = vector.broadcast %348 : vector<1x8xf32> to vector<16x8xf32>
    %350 = arith.addf %346, %349 : vector<16x8xf32>
    %cst_170 = arith.constant dense<0.000000e+00> : vector<16x8xf32>
    %351 = tpu.matmul %295, %343, %cst_170 {dimension_numbers = #tpu.dot_dimension_numbers<[1], [0], [0], [1], [0, 0, 1, 1], [], []>} : vector<16x32xbf16>, vector<32x8xbf16>, vector<16x8xf32> -> vector<16x8xf32>
    %c26 = arith.constant 26 : index
    %c0_171 = arith.constant 0 : index
    %352 = vector.load %arg2[%c26, %c0_171] : memref<48x128xf32, #tpu.memory_space<vmem>>, vector<1x128xf32>
    %353 = vector.extract_strided_slice %352 {offsets = [0, 0], sizes = [1, 8], strides = [1, 1]} : vector<1x128xf32> to vector<1x8xf32>
    %354 = vector.broadcast %353 : vector<1x8xf32> to vector<16x8xf32>
    %355 = arith.addf %351, %354 : vector<16x8xf32>
    %cst_172 = arith.constant dense<0.000000e+00> : vector<16x8xf32>
    %356 = tpu.matmul %295, %345, %cst_172 {dimension_numbers = #tpu.dot_dimension_numbers<[1], [0], [0], [1], [0, 0, 1, 1], [], []>} : vector<16x32xbf16>, vector<32x8xbf16>, vector<16x8xf32> -> vector<16x8xf32>
    %c30 = arith.constant 30 : index
    %c0_173 = arith.constant 0 : index
    %357 = vector.load %arg2[%c30, %c0_173] : memref<48x128xf32, #tpu.memory_space<vmem>>, vector<1x128xf32>
    %358 = vector.extract_strided_slice %357 {offsets = [0, 0], sizes = [1, 8], strides = [1, 1]} : vector<1x128xf32> to vector<1x8xf32>
    %359 = vector.broadcast %358 : vector<1x8xf32> to vector<16x8xf32>
    %360 = arith.addf %356, %359 : vector<16x8xf32>
    %361 = arith.truncf %350 : vector<16x8xf32> to vector<16x8xbf16>
    %362 = arith.truncf %355 : vector<16x8xf32> to vector<16x8xbf16>
    %cst_174 = arith.constant dense<0.000000e+00> : vector<16x16xf32>
    %363 = tpu.matmul %361, %362, %cst_174 {dimension_numbers = #tpu.dot_dimension_numbers<[1], [1], [0], [0], [0, 0, 1, 0], [], []>} : vector<16x8xbf16>, vector<16x8xbf16>, vector<16x16xf32> -> vector<16x16xf32>
    %cst_175 = arith.constant 0.353553385 : f32
    %364 = vector.broadcast %cst_175 : f32 to vector<16x16xf32>
    %365 = arith.mulf %363, %364 : vector<16x16xf32>
    %366 = arith.addf %365, %0 : vector<16x16xf32>
    %cst_176 = arith.constant dense<0xFF800000> : vector<16xf32>
    %367 = vector.multi_reduction <maximumf>, %366, %cst_176 [1] : vector<16x16xf32> to vector<16xf32>
    %368 = vector.shape_cast %367 : vector<16xf32> to vector<16x1xf32>
    %369 = vector.broadcast %368 : vector<16x1xf32> to vector<16x16xf32>
    %370 = arith.subf %366, %369 : vector<16x16xf32>
    %371 = math.exp %370 : vector<16x16xf32>
    %cst_177 = arith.constant dense<0.000000e+00> : vector<16xf32>
    %372 = vector.multi_reduction <add>, %371, %cst_177 [1] : vector<16x16xf32> to vector<16xf32>
    %373 = vector.shape_cast %372 : vector<16xf32> to vector<16x1xf32>
    %374 = tpu.reciprocal %373 {approx = true} : vector<16x1xf32> -> vector<16x1xf32>
    %375 = vector.broadcast %374 : vector<16x1xf32> to vector<16x16xf32>
    %376 = arith.mulf %371, %375 : vector<16x16xf32>
    %377 = arith.truncf %376 : vector<16x16xf32> to vector<16x16xbf16>
    %378 = arith.truncf %360 : vector<16x8xf32> to vector<16x8xbf16>
    %cst_178 = arith.constant dense<0.000000e+00> : vector<16x8xf32>
    %379 = tpu.matmul %377, %378, %cst_178 {dimension_numbers = #tpu.dot_dimension_numbers<[1], [0], [0], [1], [0, 0, 1, 1], [], []>} : vector<16x16xbf16>, vector<16x8xbf16>, vector<16x8xf32> -> vector<16x8xf32>
    %380 = arith.truncf %379 : vector<16x8xf32> to vector<16x8xbf16>
    %c5_179 = arith.constant 5 : index
    %c0_180 = arith.constant 0 : index
    %c0_181 = arith.constant 0 : index
    %381 = vector.load %arg4[%c5_179, %c0_180, %c0_181] : memref<8x8x32xbf16, #tpu.memory_space<vmem>>, vector<1x8x32xbf16>
    %382 = vector.shape_cast %381 : vector<1x8x32xbf16> to vector<8x32xbf16>
    %cst_182 = arith.constant dense<0.000000e+00> : vector<16x32xf32>
    %383 = tpu.matmul %380, %382, %cst_182 {dimension_numbers = #tpu.dot_dimension_numbers<[1], [0], [0], [1], [0, 0, 1, 1], [], []>} : vector<16x8xbf16>, vector<8x32xbf16>, vector<16x32xf32> -> vector<16x32xf32>
    %384 = arith.addf %339, %383 : vector<16x32xf32>
    %c14_183 = arith.constant 14 : index
    %c0_184 = arith.constant 0 : index
    %c0_185 = arith.constant 0 : index
    %385 = vector.load %arg3[%c14_183, %c0_184, %c0_185] : memref<24x32x8xbf16, #tpu.memory_space<vmem>>, vector<1x32x8xbf16>
    %386 = vector.shape_cast %385 : vector<1x32x8xbf16> to vector<32x8xbf16>
    %c18_186 = arith.constant 18 : index
    %c0_187 = arith.constant 0 : index
    %c0_188 = arith.constant 0 : index
    %387 = vector.load %arg3[%c18_186, %c0_187, %c0_188] : memref<24x32x8xbf16, #tpu.memory_space<vmem>>, vector<1x32x8xbf16>
    %388 = vector.shape_cast %387 : vector<1x32x8xbf16> to vector<32x8xbf16>
    %c22_189 = arith.constant 22 : index
    %c0_190 = arith.constant 0 : index
    %c0_191 = arith.constant 0 : index
    %389 = vector.load %arg3[%c22_189, %c0_190, %c0_191] : memref<24x32x8xbf16, #tpu.memory_space<vmem>>, vector<1x32x8xbf16>
    %390 = vector.shape_cast %389 : vector<1x32x8xbf16> to vector<32x8xbf16>
    %cst_192 = arith.constant dense<0.000000e+00> : vector<16x8xf32>
    %391 = tpu.matmul %295, %386, %cst_192 {dimension_numbers = #tpu.dot_dimension_numbers<[1], [0], [0], [1], [0, 0, 1, 1], [], []>} : vector<16x32xbf16>, vector<32x8xbf16>, vector<16x8xf32> -> vector<16x8xf32>
    %c23 = arith.constant 23 : index
    %c0_193 = arith.constant 0 : index
    %392 = vector.load %arg2[%c23, %c0_193] : memref<48x128xf32, #tpu.memory_space<vmem>>, vector<1x128xf32>
    %393 = vector.extract_strided_slice %392 {offsets = [0, 0], sizes = [1, 8], strides = [1, 1]} : vector<1x128xf32> to vector<1x8xf32>
    %394 = vector.broadcast %393 : vector<1x8xf32> to vector<16x8xf32>
    %395 = arith.addf %391, %394 : vector<16x8xf32>
    %cst_194 = arith.constant dense<0.000000e+00> : vector<16x8xf32>
    %396 = tpu.matmul %295, %388, %cst_194 {dimension_numbers = #tpu.dot_dimension_numbers<[1], [0], [0], [1], [0, 0, 1, 1], [], []>} : vector<16x32xbf16>, vector<32x8xbf16>, vector<16x8xf32> -> vector<16x8xf32>
    %c27 = arith.constant 27 : index
    %c0_195 = arith.constant 0 : index
    %397 = vector.load %arg2[%c27, %c0_195] : memref<48x128xf32, #tpu.memory_space<vmem>>, vector<1x128xf32>
    %398 = vector.extract_strided_slice %397 {offsets = [0, 0], sizes = [1, 8], strides = [1, 1]} : vector<1x128xf32> to vector<1x8xf32>
    %399 = vector.broadcast %398 : vector<1x8xf32> to vector<16x8xf32>
    %400 = arith.addf %396, %399 : vector<16x8xf32>
    %cst_196 = arith.constant dense<0.000000e+00> : vector<16x8xf32>
    %401 = tpu.matmul %295, %390, %cst_196 {dimension_numbers = #tpu.dot_dimension_numbers<[1], [0], [0], [1], [0, 0, 1, 1], [], []>} : vector<16x32xbf16>, vector<32x8xbf16>, vector<16x8xf32> -> vector<16x8xf32>
    %c31 = arith.constant 31 : index
    %c0_197 = arith.constant 0 : index
    %402 = vector.load %arg2[%c31, %c0_197] : memref<48x128xf32, #tpu.memory_space<vmem>>, vector<1x128xf32>
    %403 = vector.extract_strided_slice %402 {offsets = [0, 0], sizes = [1, 8], strides = [1, 1]} : vector<1x128xf32> to vector<1x8xf32>
    %404 = vector.broadcast %403 : vector<1x8xf32> to vector<16x8xf32>
    %405 = arith.addf %401, %404 : vector<16x8xf32>
    %406 = arith.truncf %395 : vector<16x8xf32> to vector<16x8xbf16>
    %407 = arith.truncf %400 : vector<16x8xf32> to vector<16x8xbf16>
    %cst_198 = arith.constant dense<0.000000e+00> : vector<16x16xf32>
    %408 = tpu.matmul %406, %407, %cst_198 {dimension_numbers = #tpu.dot_dimension_numbers<[1], [1], [0], [0], [0, 0, 1, 0], [], []>} : vector<16x8xbf16>, vector<16x8xbf16>, vector<16x16xf32> -> vector<16x16xf32>
    %cst_199 = arith.constant 0.353553385 : f32
    %409 = vector.broadcast %cst_199 : f32 to vector<16x16xf32>
    %410 = arith.mulf %408, %409 : vector<16x16xf32>
    %411 = arith.addf %410, %0 : vector<16x16xf32>
    %cst_200 = arith.constant dense<0xFF800000> : vector<16xf32>
    %412 = vector.multi_reduction <maximumf>, %411, %cst_200 [1] : vector<16x16xf32> to vector<16xf32>
    %413 = vector.shape_cast %412 : vector<16xf32> to vector<16x1xf32>
    %414 = vector.broadcast %413 : vector<16x1xf32> to vector<16x16xf32>
    %415 = arith.subf %411, %414 : vector<16x16xf32>
    %416 = math.exp %415 : vector<16x16xf32>
    %cst_201 = arith.constant dense<0.000000e+00> : vector<16xf32>
    %417 = vector.multi_reduction <add>, %416, %cst_201 [1] : vector<16x16xf32> to vector<16xf32>
    %418 = vector.shape_cast %417 : vector<16xf32> to vector<16x1xf32>
    %419 = tpu.reciprocal %418 {approx = true} : vector<16x1xf32> -> vector<16x1xf32>
    %420 = vector.broadcast %419 : vector<16x1xf32> to vector<16x16xf32>
    %421 = arith.mulf %416, %420 : vector<16x16xf32>
    %422 = arith.truncf %421 : vector<16x16xf32> to vector<16x16xbf16>
    %423 = arith.truncf %405 : vector<16x8xf32> to vector<16x8xbf16>
    %cst_202 = arith.constant dense<0.000000e+00> : vector<16x8xf32>
    %424 = tpu.matmul %422, %423, %cst_202 {dimension_numbers = #tpu.dot_dimension_numbers<[1], [0], [0], [1], [0, 0, 1, 1], [], []>} : vector<16x16xbf16>, vector<16x8xbf16>, vector<16x8xf32> -> vector<16x8xf32>
    %425 = arith.truncf %424 : vector<16x8xf32> to vector<16x8xbf16>
    %c6_203 = arith.constant 6 : index
    %c0_204 = arith.constant 0 : index
    %c0_205 = arith.constant 0 : index
    %426 = vector.load %arg4[%c6_203, %c0_204, %c0_205] : memref<8x8x32xbf16, #tpu.memory_space<vmem>>, vector<1x8x32xbf16>
    %427 = vector.shape_cast %426 : vector<1x8x32xbf16> to vector<8x32xbf16>
    %cst_206 = arith.constant dense<0.000000e+00> : vector<16x32xf32>
    %428 = tpu.matmul %425, %427, %cst_206 {dimension_numbers = #tpu.dot_dimension_numbers<[1], [0], [0], [1], [0, 0, 1, 1], [], []>} : vector<16x8xbf16>, vector<8x32xbf16>, vector<16x32xf32> -> vector<16x32xf32>
    %429 = arith.addf %384, %428 : vector<16x32xf32>
    %c15_207 = arith.constant 15 : index
    %c0_208 = arith.constant 0 : index
    %c0_209 = arith.constant 0 : index
    %430 = vector.load %arg3[%c15_207, %c0_208, %c0_209] : memref<24x32x8xbf16, #tpu.memory_space<vmem>>, vector<1x32x8xbf16>
    %431 = vector.shape_cast %430 : vector<1x32x8xbf16> to vector<32x8xbf16>
    %c19_210 = arith.constant 19 : index
    %c0_211 = arith.constant 0 : index
    %c0_212 = arith.constant 0 : index
    %432 = vector.load %arg3[%c19_210, %c0_211, %c0_212] : memref<24x32x8xbf16, #tpu.memory_space<vmem>>, vector<1x32x8xbf16>
    %433 = vector.shape_cast %432 : vector<1x32x8xbf16> to vector<32x8xbf16>
    %c23_213 = arith.constant 23 : index
    %c0_214 = arith.constant 0 : index
    %c0_215 = arith.constant 0 : index
    %434 = vector.load %arg3[%c23_213, %c0_214, %c0_215] : memref<24x32x8xbf16, #tpu.memory_space<vmem>>, vector<1x32x8xbf16>
    %435 = vector.shape_cast %434 : vector<1x32x8xbf16> to vector<32x8xbf16>
    %cst_216 = arith.constant dense<0.000000e+00> : vector<16x8xf32>
    %436 = tpu.matmul %295, %431, %cst_216 {dimension_numbers = #tpu.dot_dimension_numbers<[1], [0], [0], [1], [0, 0, 1, 1], [], []>} : vector<16x32xbf16>, vector<32x8xbf16>, vector<16x8xf32> -> vector<16x8xf32>
    %c24 = arith.constant 24 : index
    %c0_217 = arith.constant 0 : index
    %437 = vector.load %arg2[%c24, %c0_217] : memref<48x128xf32, #tpu.memory_space<vmem>>, vector<1x128xf32>
    %438 = vector.extract_strided_slice %437 {offsets = [0, 0], sizes = [1, 8], strides = [1, 1]} : vector<1x128xf32> to vector<1x8xf32>
    %439 = vector.broadcast %438 : vector<1x8xf32> to vector<16x8xf32>
    %440 = arith.addf %436, %439 : vector<16x8xf32>
    %cst_218 = arith.constant dense<0.000000e+00> : vector<16x8xf32>
    %441 = tpu.matmul %295, %433, %cst_218 {dimension_numbers = #tpu.dot_dimension_numbers<[1], [0], [0], [1], [0, 0, 1, 1], [], []>} : vector<16x32xbf16>, vector<32x8xbf16>, vector<16x8xf32> -> vector<16x8xf32>
    %c28 = arith.constant 28 : index
    %c0_219 = arith.constant 0 : index
    %442 = vector.load %arg2[%c28, %c0_219] : memref<48x128xf32, #tpu.memory_space<vmem>>, vector<1x128xf32>
    %443 = vector.extract_strided_slice %442 {offsets = [0, 0], sizes = [1, 8], strides = [1, 1]} : vector<1x128xf32> to vector<1x8xf32>
    %444 = vector.broadcast %443 : vector<1x8xf32> to vector<16x8xf32>
    %445 = arith.addf %441, %444 : vector<16x8xf32>
    %cst_220 = arith.constant dense<0.000000e+00> : vector<16x8xf32>
    %446 = tpu.matmul %295, %435, %cst_220 {dimension_numbers = #tpu.dot_dimension_numbers<[1], [0], [0], [1], [0, 0, 1, 1], [], []>} : vector<16x32xbf16>, vector<32x8xbf16>, vector<16x8xf32> -> vector<16x8xf32>
    %c32 = arith.constant 32 : index
    %c0_221 = arith.constant 0 : index
    %447 = vector.load %arg2[%c32, %c0_221] : memref<48x128xf32, #tpu.memory_space<vmem>>, vector<1x128xf32>
    %448 = vector.extract_strided_slice %447 {offsets = [0, 0], sizes = [1, 8], strides = [1, 1]} : vector<1x128xf32> to vector<1x8xf32>
    %449 = vector.broadcast %448 : vector<1x8xf32> to vector<16x8xf32>
    %450 = arith.addf %446, %449 : vector<16x8xf32>
    %451 = arith.truncf %440 : vector<16x8xf32> to vector<16x8xbf16>
    %452 = arith.truncf %445 : vector<16x8xf32> to vector<16x8xbf16>
    %cst_222 = arith.constant dense<0.000000e+00> : vector<16x16xf32>
    %453 = tpu.matmul %451, %452, %cst_222 {dimension_numbers = #tpu.dot_dimension_numbers<[1], [1], [0], [0], [0, 0, 1, 0], [], []>} : vector<16x8xbf16>, vector<16x8xbf16>, vector<16x16xf32> -> vector<16x16xf32>
    %cst_223 = arith.constant 0.353553385 : f32
    %454 = vector.broadcast %cst_223 : f32 to vector<16x16xf32>
    %455 = arith.mulf %453, %454 : vector<16x16xf32>
    %456 = arith.addf %455, %0 : vector<16x16xf32>
    %cst_224 = arith.constant dense<0xFF800000> : vector<16xf32>
    %457 = vector.multi_reduction <maximumf>, %456, %cst_224 [1] : vector<16x16xf32> to vector<16xf32>
    %458 = vector.shape_cast %457 : vector<16xf32> to vector<16x1xf32>
    %459 = vector.broadcast %458 : vector<16x1xf32> to vector<16x16xf32>
    %460 = arith.subf %456, %459 : vector<16x16xf32>
    %461 = math.exp %460 : vector<16x16xf32>
    %cst_225 = arith.constant dense<0.000000e+00> : vector<16xf32>
    %462 = vector.multi_reduction <add>, %461, %cst_225 [1] : vector<16x16xf32> to vector<16xf32>
    %463 = vector.shape_cast %462 : vector<16xf32> to vector<16x1xf32>
    %464 = tpu.reciprocal %463 {approx = true} : vector<16x1xf32> -> vector<16x1xf32>
    %465 = vector.broadcast %464 : vector<16x1xf32> to vector<16x16xf32>
    %466 = arith.mulf %461, %465 : vector<16x16xf32>
    %467 = arith.truncf %466 : vector<16x16xf32> to vector<16x16xbf16>
    %468 = arith.truncf %450 : vector<16x8xf32> to vector<16x8xbf16>
    %cst_226 = arith.constant dense<0.000000e+00> : vector<16x8xf32>
    %469 = tpu.matmul %467, %468, %cst_226 {dimension_numbers = #tpu.dot_dimension_numbers<[1], [0], [0], [1], [0, 0, 1, 1], [], []>} : vector<16x16xbf16>, vector<16x8xbf16>, vector<16x8xf32> -> vector<16x8xf32>
    %470 = arith.truncf %469 : vector<16x8xf32> to vector<16x8xbf16>
    %c7_227 = arith.constant 7 : index
    %c0_228 = arith.constant 0 : index
    %c0_229 = arith.constant 0 : index
    %471 = vector.load %arg4[%c7_227, %c0_228, %c0_229] : memref<8x8x32xbf16, #tpu.memory_space<vmem>>, vector<1x8x32xbf16>
    %472 = vector.shape_cast %471 : vector<1x8x32xbf16> to vector<8x32xbf16>
    %cst_230 = arith.constant dense<0.000000e+00> : vector<16x32xf32>
    %473 = tpu.matmul %470, %472, %cst_230 {dimension_numbers = #tpu.dot_dimension_numbers<[1], [0], [0], [1], [0, 0, 1, 1], [], []>} : vector<16x8xbf16>, vector<8x32xbf16>, vector<16x32xf32> -> vector<16x32xf32>
    %474 = arith.addf %429, %473 : vector<16x32xf32>
    %c33 = arith.constant 33 : index
    %c0_231 = arith.constant 0 : index
    %475 = vector.load %arg2[%c33, %c0_231] : memref<48x128xf32, #tpu.memory_space<vmem>>, vector<1x128xf32>
    %476 = vector.extract_strided_slice %475 {offsets = [0, 0], sizes = [1, 32], strides = [1, 1]} : vector<1x128xf32> to vector<1x32xf32>
    %477 = vector.broadcast %476 : vector<1x32xf32> to vector<16x32xf32>
    %478 = arith.addf %474, %477 : vector<16x32xf32>
    %479 = arith.addf %294, %478 : vector<16x32xf32>
    %c34 = arith.constant 34 : index
    %c0_232 = arith.constant 0 : index
    %480 = vector.load %arg2[%c34, %c0_232] : memref<48x128xf32, #tpu.memory_space<vmem>>, vector<1x128xf32>
    %481 = vector.extract_strided_slice %480 {offsets = [0, 0], sizes = [1, 32], strides = [1, 1]} : vector<1x128xf32> to vector<1x32xf32>
    %c35 = arith.constant 35 : index
    %c0_233 = arith.constant 0 : index
    %482 = vector.load %arg2[%c35, %c0_233] : memref<48x128xf32, #tpu.memory_space<vmem>>, vector<1x128xf32>
    %483 = vector.extract_strided_slice %482 {offsets = [0, 0], sizes = [1, 32], strides = [1, 1]} : vector<1x128xf32> to vector<1x32xf32>
    %cst_234 = arith.constant dense<0.000000e+00> : vector<16xf32>
    %484 = vector.multi_reduction <add>, %479, %cst_234 [1] : vector<16x32xf32> to vector<16xf32>
    %485 = vector.shape_cast %484 : vector<16xf32> to vector<16x1xf32>
    %cst_235 = arith.constant 3.200000e+01 : f32
    %486 = vector.broadcast %cst_235 : f32 to vector<16x1xf32>
    %487 = arith.divf %485, %486 : vector<16x1xf32>
    %488 = vector.broadcast %487 : vector<16x1xf32> to vector<16x32xf32>
    %489 = arith.subf %479, %488 : vector<16x32xf32>
    %490 = arith.mulf %489, %489 : vector<16x32xf32>
    %cst_236 = arith.constant dense<0.000000e+00> : vector<16xf32>
    %491 = vector.multi_reduction <add>, %490, %cst_236 [1] : vector<16x32xf32> to vector<16xf32>
    %492 = vector.shape_cast %491 : vector<16xf32> to vector<16x1xf32>
    %cst_237 = arith.constant 3.200000e+01 : f32
    %493 = vector.broadcast %cst_237 : f32 to vector<16x1xf32>
    %494 = arith.divf %492, %493 : vector<16x1xf32>
    %495 = vector.broadcast %487 : vector<16x1xf32> to vector<16x32xf32>
    %496 = arith.subf %479, %495 : vector<16x32xf32>
    %cst_238 = arith.constant 9.99999996E-13 : f32
    %497 = vector.broadcast %cst_238 : f32 to vector<16x1xf32>
    %498 = arith.addf %494, %497 : vector<16x1xf32>
    %499 = math.rsqrt %498 : vector<16x1xf32>
    %500 = vector.broadcast %499 : vector<16x1xf32> to vector<16x32xf32>
    %501 = arith.mulf %496, %500 : vector<16x32xf32>
    %502 = vector.broadcast %481 : vector<1x32xf32> to vector<16x32xf32>
    %503 = arith.mulf %501, %502 : vector<16x32xf32>
    %504 = vector.broadcast %483 : vector<1x32xf32> to vector<16x32xf32>
    %505 = arith.addf %503, %504 : vector<16x32xf32>
    %506 = arith.truncf %505 : vector<16x32xf32> to vector<16x32xbf16>
    %c1_239 = arith.constant 1 : index
    %c0_240 = arith.constant 0 : index
    %c0_241 = arith.constant 0 : index
    %507 = vector.load %arg5[%c1_239, %c0_240, %c0_241] : memref<2x32x64xbf16, #tpu.memory_space<vmem>>, vector<1x32x64xbf16>
    %508 = vector.shape_cast %507 : vector<1x32x64xbf16> to vector<32x64xbf16>
    %cst_242 = arith.constant dense<0.000000e+00> : vector<16x64xf32>
    %509 = tpu.matmul %506, %508, %cst_242 {dimension_numbers = #tpu.dot_dimension_numbers<[1], [0], [0], [1], [0, 0, 1, 1], [], []>} : vector<16x32xbf16>, vector<32x64xbf16>, vector<16x64xf32> -> vector<16x64xf32>
    %c36 = arith.constant 36 : index
    %c0_243 = arith.constant 0 : index
    %510 = vector.load %arg2[%c36, %c0_243] : memref<48x128xf32, #tpu.memory_space<vmem>>, vector<1x128xf32>
    %511 = vector.extract_strided_slice %510 {offsets = [0, 0], sizes = [1, 64], strides = [1, 1]} : vector<1x128xf32> to vector<1x64xf32>
    %512 = vector.broadcast %511 : vector<1x64xf32> to vector<16x64xf32>
    %513 = arith.addf %509, %512 : vector<16x64xf32>
    %514 = arith.mulf %513, %513 : vector<16x64xf32>
    %515 = arith.mulf %513, %514 : vector<16x64xf32>
    %cst_244 = arith.constant 4.471500e-02 : f32
    %516 = vector.broadcast %cst_244 : f32 to vector<16x64xf32>
    %517 = arith.mulf %516, %515 : vector<16x64xf32>
    %518 = arith.addf %513, %517 : vector<16x64xf32>
    %cst_245 = arith.constant 0.797884583 : f32
    %519 = vector.broadcast %cst_245 : f32 to vector<16x64xf32>
    %520 = arith.mulf %519, %518 : vector<16x64xf32>
    %521 = math.tanh %520 : vector<16x64xf32>
    %cst_246 = arith.constant 1.000000e+00 : f32
    %522 = vector.broadcast %cst_246 : f32 to vector<16x64xf32>
    %523 = arith.addf %522, %521 : vector<16x64xf32>
    %cst_247 = arith.constant 5.000000e-01 : f32
    %524 = vector.broadcast %cst_247 : f32 to vector<16x64xf32>
    %525 = arith.mulf %524, %523 : vector<16x64xf32>
    %526 = arith.mulf %513, %525 : vector<16x64xf32>
    %527 = arith.truncf %526 : vector<16x64xf32> to vector<16x64xbf16>
    %c1_248 = arith.constant 1 : index
    %c0_249 = arith.constant 0 : index
    %c0_250 = arith.constant 0 : index
    %528 = vector.load %arg6[%c1_248, %c0_249, %c0_250] : memref<2x64x32xbf16, #tpu.memory_space<vmem>>, vector<1x64x32xbf16>
    %529 = vector.shape_cast %528 : vector<1x64x32xbf16> to vector<64x32xbf16>
    %cst_251 = arith.constant dense<0.000000e+00> : vector<16x32xf32>
    %530 = tpu.matmul %527, %529, %cst_251 {dimension_numbers = #tpu.dot_dimension_numbers<[1], [0], [0], [1], [0, 0, 1, 1], [], []>} : vector<16x64xbf16>, vector<64x32xbf16>, vector<16x32xf32> -> vector<16x32xf32>
    %c37 = arith.constant 37 : index
    %c0_252 = arith.constant 0 : index
    %531 = vector.load %arg2[%c37, %c0_252] : memref<48x128xf32, #tpu.memory_space<vmem>>, vector<1x128xf32>
    %532 = vector.extract_strided_slice %531 {offsets = [0, 0], sizes = [1, 32], strides = [1, 1]} : vector<1x128xf32> to vector<1x32xf32>
    %533 = vector.broadcast %532 : vector<1x32xf32> to vector<16x32xf32>
    %534 = arith.addf %530, %533 : vector<16x32xf32>
    %535 = arith.addf %505, %534 : vector<16x32xf32>
    %c38 = arith.constant 38 : index
    %c0_253 = arith.constant 0 : index
    %536 = vector.load %arg2[%c38, %c0_253] : memref<48x128xf32, #tpu.memory_space<vmem>>, vector<1x128xf32>
    %537 = vector.extract_strided_slice %536 {offsets = [0, 0], sizes = [1, 32], strides = [1, 1]} : vector<1x128xf32> to vector<1x32xf32>
    %c39 = arith.constant 39 : index
    %c0_254 = arith.constant 0 : index
    %538 = vector.load %arg2[%c39, %c0_254] : memref<48x128xf32, #tpu.memory_space<vmem>>, vector<1x128xf32>
    %539 = vector.extract_strided_slice %538 {offsets = [0, 0], sizes = [1, 32], strides = [1, 1]} : vector<1x128xf32> to vector<1x32xf32>
    %cst_255 = arith.constant dense<0.000000e+00> : vector<16xf32>
    %540 = vector.multi_reduction <add>, %535, %cst_255 [1] : vector<16x32xf32> to vector<16xf32>
    %541 = vector.shape_cast %540 : vector<16xf32> to vector<16x1xf32>
    %cst_256 = arith.constant 3.200000e+01 : f32
    %542 = vector.broadcast %cst_256 : f32 to vector<16x1xf32>
    %543 = arith.divf %541, %542 : vector<16x1xf32>
    %544 = vector.broadcast %543 : vector<16x1xf32> to vector<16x32xf32>
    %545 = arith.subf %535, %544 : vector<16x32xf32>
    %546 = arith.mulf %545, %545 : vector<16x32xf32>
    %cst_257 = arith.constant dense<0.000000e+00> : vector<16xf32>
    %547 = vector.multi_reduction <add>, %546, %cst_257 [1] : vector<16x32xf32> to vector<16xf32>
    %548 = vector.shape_cast %547 : vector<16xf32> to vector<16x1xf32>
    %cst_258 = arith.constant 3.200000e+01 : f32
    %549 = vector.broadcast %cst_258 : f32 to vector<16x1xf32>
    %550 = arith.divf %548, %549 : vector<16x1xf32>
    %551 = vector.broadcast %543 : vector<16x1xf32> to vector<16x32xf32>
    %552 = arith.subf %535, %551 : vector<16x32xf32>
    %cst_259 = arith.constant 9.99999996E-13 : f32
    %553 = vector.broadcast %cst_259 : f32 to vector<16x1xf32>
    %554 = arith.addf %550, %553 : vector<16x1xf32>
    %555 = math.rsqrt %554 : vector<16x1xf32>
    %556 = vector.broadcast %555 : vector<16x1xf32> to vector<16x32xf32>
    %557 = arith.mulf %552, %556 : vector<16x32xf32>
    %558 = vector.broadcast %537 : vector<1x32xf32> to vector<16x32xf32>
    %559 = arith.mulf %557, %558 : vector<16x32xf32>
    %560 = vector.broadcast %539 : vector<1x32xf32> to vector<16x32xf32>
    %561 = arith.addf %559, %560 : vector<16x32xf32>
    %562 = arith.truncf %561 : vector<16x32xf32> to vector<16x32xbf16>
    %c0_260 = arith.constant 0 : index
    %c0_261 = arith.constant 0 : index
    %563 = vector.load %arg7[%c0_260, %c0_261] : memref<32x32xbf16, #tpu.memory_space<vmem>>, vector<32x32xbf16>
    %cst_262 = arith.constant dense<0.000000e+00> : vector<16x32xf32>
    %564 = tpu.matmul %562, %563, %cst_262 {dimension_numbers = #tpu.dot_dimension_numbers<[1], [0], [0], [1], [0, 0, 1, 1], [], []>} : vector<16x32xbf16>, vector<32x32xbf16>, vector<16x32xf32> -> vector<16x32xf32>
    %c40 = arith.constant 40 : index
    %c0_263 = arith.constant 0 : index
    %565 = vector.load %arg2[%c40, %c0_263] : memref<48x128xf32, #tpu.memory_space<vmem>>, vector<1x128xf32>
    %566 = vector.extract_strided_slice %565 {offsets = [0, 0], sizes = [1, 32], strides = [1, 1]} : vector<1x128xf32> to vector<1x32xf32>
    %567 = vector.broadcast %566 : vector<1x32xf32> to vector<16x32xf32>
    %568 = arith.addf %564, %567 : vector<16x32xf32>
    %c41 = arith.constant 41 : index
    %c0_264 = arith.constant 0 : index
    %569 = vector.load %arg2[%c41, %c0_264] : memref<48x128xf32, #tpu.memory_space<vmem>>, vector<1x128xf32>
    %570 = vector.extract_strided_slice %569 {offsets = [0, 0], sizes = [1, 32], strides = [1, 1]} : vector<1x128xf32> to vector<1x32xf32>
    %c42 = arith.constant 42 : index
    %c0_265 = arith.constant 0 : index
    %571 = vector.load %arg2[%c42, %c0_265] : memref<48x128xf32, #tpu.memory_space<vmem>>, vector<1x128xf32>
    %572 = vector.extract_strided_slice %571 {offsets = [0, 0], sizes = [1, 32], strides = [1, 1]} : vector<1x128xf32> to vector<1x32xf32>
    %cst_266 = arith.constant dense<0.000000e+00> : vector<16xf32>
    %573 = vector.multi_reduction <add>, %568, %cst_266 [1] : vector<16x32xf32> to vector<16xf32>
    %574 = vector.shape_cast %573 : vector<16xf32> to vector<16x1xf32>
    %cst_267 = arith.constant 3.200000e+01 : f32
    %575 = vector.broadcast %cst_267 : f32 to vector<16x1xf32>
    %576 = arith.divf %574, %575 : vector<16x1xf32>
    %577 = vector.broadcast %576 : vector<16x1xf32> to vector<16x32xf32>
    %578 = arith.subf %568, %577 : vector<16x32xf32>
    %579 = arith.mulf %578, %578 : vector<16x32xf32>
    %cst_268 = arith.constant dense<0.000000e+00> : vector<16xf32>
    %580 = vector.multi_reduction <add>, %579, %cst_268 [1] : vector<16x32xf32> to vector<16xf32>
    %581 = vector.shape_cast %580 : vector<16xf32> to vector<16x1xf32>
    %cst_269 = arith.constant 3.200000e+01 : f32
    %582 = vector.broadcast %cst_269 : f32 to vector<16x1xf32>
    %583 = arith.divf %581, %582 : vector<16x1xf32>
    %584 = vector.broadcast %576 : vector<16x1xf32> to vector<16x32xf32>
    %585 = arith.subf %568, %584 : vector<16x32xf32>
    %cst_270 = arith.constant 9.99999996E-13 : f32
    %586 = vector.broadcast %cst_270 : f32 to vector<16x1xf32>
    %587 = arith.addf %583, %586 : vector<16x1xf32>
    %588 = math.rsqrt %587 : vector<16x1xf32>
    %589 = vector.broadcast %588 : vector<16x1xf32> to vector<16x32xf32>
    %590 = arith.mulf %585, %589 : vector<16x32xf32>
    %591 = vector.broadcast %570 : vector<1x32xf32> to vector<16x32xf32>
    %592 = arith.mulf %590, %591 : vector<16x32xf32>
    %593 = vector.broadcast %572 : vector<1x32xf32> to vector<16x32xf32>
    %594 = arith.addf %592, %593 : vector<16x32xf32>
    %595 = arith.truncf %594 : vector<16x32xf32> to vector<16x32xbf16>
    %c0_271 = arith.constant 0 : index
    %c0_272 = arith.constant 0 : index
    %596 = vector.load %arg8[%c0_271, %c0_272] : memref<32x128xbf16, #tpu.memory_space<vmem>>, vector<32x128xbf16>
    %cst_273 = arith.constant dense<0.000000e+00> : vector<16x128xf32>
    %597 = tpu.matmul %595, %596, %cst_273 {dimension_numbers = #tpu.dot_dimension_numbers<[1], [0], [0], [1], [0, 0, 1, 1], [], []>} : vector<16x32xbf16>, vector<32x128xbf16>, vector<16x128xf32> -> vector<16x128xf32>
    %c43 = arith.constant 43 : index
    %c0_274 = arith.constant 0 : index
    %598 = vector.load %arg2[%c43, %c0_274] : memref<48x128xf32, #tpu.memory_space<vmem>>, vector<1x128xf32>
    %599 = vector.broadcast %598 : vector<1x128xf32> to vector<16x128xf32>
    %600 = arith.addf %597, %599 : vector<16x128xf32>
    %cst_275 = arith.constant dense<0xFF800000> : vector<16xf32>
    %601 = vector.multi_reduction <maximumf>, %600, %cst_275 [1] : vector<16x128xf32> to vector<16xf32>
    %602 = vector.shape_cast %601 : vector<16xf32> to vector<16x1xf32>
    %603 = vector.broadcast %602 : vector<16x1xf32> to vector<16x128xf32>
    %604 = arith.subf %600, %603 : vector<16x128xf32>
    %605 = math.exp %604 : vector<16x128xf32>
    %cst_276 = arith.constant dense<0.000000e+00> : vector<16xf32>
    %606 = vector.multi_reduction <add>, %605, %cst_276 [1] : vector<16x128xf32> to vector<16xf32>
    %607 = vector.shape_cast %606 : vector<16xf32> to vector<16x1xf32>
    %608 = tpu.reciprocal %607 : vector<16x1xf32> -> vector<16x1xf32>
    %609 = vector.broadcast %608 : vector<16x1xf32> to vector<16x128xf32>
    %610 = arith.mulf %605, %609 : vector<16x128xf32>
    %c0_277 = arith.constant 0 : index
    %c0_278 = arith.constant 0 : index
    %611 = vector.load %arg9[%c0_277, %c0_278] : memref<16x128xf32, #tpu.memory_space<vmem>>, vector<16x128xf32>
    tpu.vector_store %arg9[%c0_277, %c0_278], %610 {strides = array<i32>} : memref<16x128xf32, #tpu.memory_space<vmem>>, vector<16x128xf32>,
    return
  }
}

</mosaic_0001>

<bundles_post_ra>
// kernel: bert_pretrain_forward.1
= control target key start
LH: loop header
LB: loop body
LE: loop exit
PB: predicated region body
PF: predicated region fallthrough
CT: control target
= control target key end

     0   :  { %vm40_vm0 = vcmask 261120   ;;  %s5579_s0 = inlined_call_operand.vmem [shape: f32[16,32], index: 0, kind: input, shape index: {}]   ;;  %s5580_s1 = inlined_call_operand.vmem [shape: f32[16,16], index: 1, kind: input, shape index: {}]   ;;  %s5581_s2 = inlined_call_operand.vmem [shape: f32[48,128], index: 2, kind: input, shape index: {}]   ;;  %s5582_s3 = inlined_call_operand.vmem [shape: bf16[24,32,8], index: 3, kind: input, shape index: {}]   ;;  %s5583_s4 = inlined_call_operand.vmem [shape: bf16[8,8,32], index: 4, kind: input, shape index: {}]   ;;  %s5584_s5 = inlined_call_operand.vmem [shape: bf16[2,32,64], index: 5, kind: input, shape index: {}]   ;;  %s5585_s6 = inlined_call_operand.vmem [shape: bf16[2,64,32], index: 6, kind: input, shape index: {}]   ;;  %s5586_s7 = inlined_call_operand.vmem [shape: bf16[32,32], index: 7, kind: input, shape index: {}]   ;;  %s5587_s8 = inlined_call_operand.vmem [shape: bf16[32,128], index: 8, kind: input, shape index: {}]   ;;  %s5588_s9 = inlined_call_operand.hbm [shape: f32[16,128], index: 9, kind: output, shape index: {}]  }
   0x1   :  { %v36_v0 = vld [vmem:[%s5579_s0] sm:$0xff]  ;;  %v37_v1 = vld [vmem:[%s5579_s0 + $0x8] sm:$0xff] }
   0x2   :  { %v41_v2 = vsel %vm40_vm0, %v36_v0, 0.0  ;;  %v44_v3 = vsel %vm40_vm0, %v37_v1, 0.0 }
   0x3   :  { %42 = vadd.xlane.f32.xlu0 %v41_v2 }
   0x7   :  { %45 = vadd.xlane.f32.xlu0 %v44_v3 }
   0x8   :  { %14 = vsyncpa [#allocation3], 0  ;;  %v4514_v14 = vld [vmem:[%s5582_s3] sm:$0xff]   ;;  %v4708_v16 = vmov 0.0   ;;  %v4516_v17 = vld [vmem:[%s5582_s3 + $0x8] sm:$0xff]   ;;  %vm4709_vm1 = vmmov 0  }
   0x9   :  { %v4515_v15 = vld [vmem:[%s5582_s3 + $0x40] sm:$0xff]   ;;  %4117 = vmatprep.subr.bf16.mxu0 %v4708_v16  ;;  %4125 = vmatprep.subr.bf16.mxu1 %v4708_v16  ;;  %v4517_v18 = vld [vmem:[%s5582_s3 + $0x48] sm:$0xff]   ;;  %vm274_vm2 = vcmask 64512   ;;  %v4520_v62 = vld [vmem:[%s5582_s3 + $0x10] sm:$0xff]   ;;  %vm326_vm3 = vcmask 130048   ;;  %vm713_vm4 = vcmask 1043456  }
   0xa   :  { %4118 = vmatpush3.bf16.msra.mxu0 %v4514_v14  ;;  %4126 = vmatpush3.bf16.msra.mxu1 %v4515_v15  ;;  %v3702_v27 = vld [vmem:[%s5581_s2] ss:$0 sm:$0xff]  ;;  %v3703_v31 = vld [vmem:[%s5581_s2 + $0x1] ss:$0 sm:$0xff]  ;;  %v4519_v37 = vld [vmem:[%s5582_s3 + $0x88] sm:$0xff]   ;;  %vm1700_vm5 = vcmask 523264  }
   0xb   :  { %4119 = vmatprep.subr.bf16.mxu0 %v4708_v16  ;;  %4127 = vmatprep.subr.bf16.mxu1 %v4708_v16  ;;  %v4518_v35 = vld [vmem:[%s5582_s3 + $0x80] sm:$0xff]   ;;  %v3720_v55 = vld [vmem:[%s5581_s2 + $0xa] ss:$0 sm:$0xff]  ;;  %v4523_v2 = vld [vmem:[%s5582_s3 + $0x98] sm:$0xff]  }
   0xc   :  { %4121 = vmatprep.mubr.msk.bf16.mxu0 %vm4709_vm1, %v4708_v16  ;;  %4129 = vmatprep.mubr.msk.bf16.mxu1 %vm4709_vm1, %v4708_v16  ;;  %v3712_v38 = vld [vmem:[%s5581_s2 + $0x2] ss:$0 sm:$0xff]  ;;  %v3716_v40 = vld [vmem:[%s5581_s2 + $0x6] ss:$0 sm:$0xff]  ;;  %v3738_v15 = vld [vmem:[%s5581_s2 + $0x3] ss:$0 sm:$0xff] }
   0xe   :  { %4120 = vmatpush3.bf16.msra.mxu0 %v4516_v17  ;;  %4128 = vmatpush3.bf16.msra.mxu1 %v4517_v18 }
   0xf   :  { %4133 = vmatprep.subr.bf16.mxu0 %v4708_v16  ;;  %4141 = vmatprep.subr.bf16.mxu1 %v4708_v16 }
  0x90   :  { %v43_v4 = vpop.xlane.xlu0 %42 }
  0x91   :  { %v48_v5 = vmul.f32 0.03125, %v43_v4  ;;  %v4871_v4 = vld [vmem:[%s5580_s1] sm:$0xff] }
  0x93   :  { %v50_v6 = vsub.f32 %v36_v0, %v48_v5  ;;  %v4521_v0 = vld [vmem:[%s5582_s3 + $0x18] sm:$0xff]  }
  0x94   :  { %v46_v7 = vpop.xlane.xlu0 %45 }
  0x95   :  { %v49_v8 = vmul.f32 0.03125, %v46_v7  ;;  %v52_v9 = vmul.f32 %v50_v6, %v50_v6 }
  0x97   :  { %v51_v10 = vsub.f32 %v37_v1, %v49_v8  ;;  %v54_v11 = vsel %vm40_vm0, %v52_v9, 0.0  ;;  %v4522_v1 = vld [vmem:[%s5582_s3 + $0x90] sm:$0xff]   ;;  %v4876_v8 = vld [vmem:[%s5580_s1 + $0x8] sm:$0xff] }
  0x98   :  { %55 = vadd.xlane.f32.xlu1 %v54_v11 }
  0x99   :  { %v53_v12 = vmul.f32 %v51_v10, %v51_v10 }
  0x9b   :  { %v57_v13 = vsel %vm40_vm0, %v53_v12, 0.0 }
  0x9c   :  { %58 = vadd.xlane.f32.xlu1 %v57_v13 }
 0x125   :  { %v56_v19 = vpop.xlane.xlu1 %55 }
 0x126   :  { %v60_v20 = vmul.f32 0.03125, %v56_v19 }
 0x128   :  { %v62_v21 = vadd.f32 1e-12, %v60_v20 }
 0x129   :  { %v59_v22 = vpop.xlane.xlu1 %58 }
 0x12a   :  { %4578 = vrsqrt.f32 %v62_v21  ;;  %v61_v23 = vmul.f32 0.03125, %v59_v22 }
 0x12c   :  { %v63_v24 = vadd.f32 1e-12, %v61_v23 }
 0x12e   :  { %4580 = vrsqrt.f32 %v63_v24  ;;  %v3746_v24 = vld [vmem:[%s5581_s2 + $0xb] ss:$0 sm:$0xff] }
 0x134   :  { %v4579_v25 = vpop.eup %4578 }
 0x135   :  { %v66_v26 = vmul.f32 %v4579_v25, %v50_v6 }
 0x137   :  { %v72_v29 = vmul.f32 %v3702_v27, %v66_v26 }
 0x138   :  { %v4581_v28 = vpop.eup %4580 }
 0x139   :  { %v67_v30 = vmul.f32 %v4581_v28, %v51_v10  ;;  %v4801_v33 = vadd.f32 %v3703_v31, %v72_v29 }
 0x13b   :  { %v73_v32 = vmul.f32 %v3702_v27, %v67_v30 }
 0x13d   :  { %v4803_v34 = vadd.f32 %v3703_v31, %v73_v32 }
 0x13f   :  { %v4810_v36 = vpack.c.bf16 %v4803_v34, %v4801_v33 }
 0x141   :  { %4122 = vmatmul.mubr.msk.bf16.vlgmr.msra.gmra.mrb[0].mxu0 %vm40_vm0, %v4810_v36  ;;  %4130 = vmatmul.mubr.msk.bf16.vlgmr.msra.gmra.mrb[0].mxu1 %vm40_vm0, %v4810_v36 }
 0x142   :  { %4134 = vmatpush3.bf16.msra.mxu0 %v4518_v35  ;;  %4137 = vmatprep.mubr.msk.bf16.mxu0 %vm4709_vm1, %v4708_v16 }
 0x143   :  { %4135 = vmatprep.subr.bf16.mxu0 %v4708_v16  ;;  %4143 = vmatprep.mubr.msk.bf16.mxu1 %vm4709_vm1, %v4708_v16 }
 0x146   :  { %4136 = vmatpush3.bf16.msra.mxu0 %v4519_v37 }
 0x147   :  { %4147 = vmatprep.subr.bf16.mxu0 %v4708_v16 }
 0x149   :  { %4138 = vmatmul.mubr.msk.bf16.vlgmr.msra.gmra.mrb[4].mxu0 %vm40_vm0, %v4810_v36 }
 0x14a   :  { %4149 = vmatprep.mubr.msk.bf16.mxu0 %vm4709_vm1, %v4708_v16 }
 0x214   :  { %v149_v39 = vpop.f32.mrb[0].mxu0  ;;  %v207_v41 = vpop.f32.mrb[0].mxu1 }
 0x215   :  { %v4123_v42 = vpop.f32.mrb[1].mxu0  ;;  %v4131_v43 = vpop.f32.mrb[1].mxu1  ;;  %v150_v46 = vadd.f32 %v3712_v38, %v149_v39  ;;  %v208_v47 = vadd.f32 %v3716_v40, %v207_v41 }
 0x216   :  { %v152_v44 = vpop.f32.mrb[2].mxu0  ;;  %v210_v45 = vpop.f32.mrb[2].mxu1 }
 0x217   :  { %v153_v48 = vadd.f32 %v3712_v38, %v152_v44  ;;  %v211_v49 = vadd.f32 %v3716_v40, %v210_v45  ;;  %v4124_v50 = vpop.f32.mrb[3].mxu0  ;;  %v4132_v51 = vpop.f32.mrb[3].mxu1 }
 0x218   :  { %v4524_v51 = vld [vmem:[%s5582_s3 + $0x50] sm:$0xff]  }
 0x219   :  { %v272_v52 = vpack.c.bf16 %v153_v48, %v150_v46  ;;  %v273_v53 = vpack.c.bf16 %v211_v49, %v208_v47 }
 0x21b   :  { %v279_v54 = vsel %vm274_vm2, %v273_v53, 0  ;;  %v4525_v53 = vld [vmem:[%s5582_s3 + $0x58] sm:$0xff]  }
 0x21c   :  { %v265_v56 = vpop.f32.mrb[4].mxu0  ;;  %4142 = vmatpush3.bf16.xpose.msra.mxu1 %v279_v54 }
 0x21d   :  { %v4139_v57 = vpop.f32.mrb[5].mxu0  ;;  %4153 = vmatprep.subr.bf16.mxu1 %v4708_v16  ;;  %v266_v59 = vadd.f32 %v3720_v55, %v265_v56 }
 0x21e   :  { %v268_v58 = vpop.f32.mrb[6].mxu0 }
 0x21f   :  { %v269_v60 = vadd.f32 %v3720_v55, %v268_v58  ;;  %v4140_v61 = vpop.f32.mrb[7].mxu0 }
 0x221   :  { %v350_v63 = vpack.c.bf16 %v269_v60, %v266_v59  ;;  %v3742_v59 = vld [vmem:[%s5581_s2 + $0x7] ss:$0 sm:$0xff] }
 0x223   :  { %4144 = vmatmul.mubr.msk.bf16.vlgmr.msra.gmra.mrb[4].mxu1 %vm274_vm2, %v272_v52  ;;  %4148 = vmatpush3.bf16.msra.mxu0 %v350_v63 }
 0x224   :  { %4154 = vmatpush3.bf16.msra.mxu1 %v4520_v62  ;;  %4157 = vmatprep.mubr.msk.bf16.mxu1 %vm4709_vm1, %v4708_v16 }
 0x225   :  { %4155 = vmatprep.subr.bf16.mxu1 %v4708_v16  ;;  %4161 = vmatprep.subr.bf16.mxu0 %v4708_v16 }
 0x228   :  { %4156 = vmatpush3.bf16.msra.mxu1 %v4521_v0 }
 0x229   :  { %4169 = vmatprep.subr.bf16.mxu1 %v4708_v16 }
 0x22b   :  { %4158 = vmatmul.mubr.msk.bf16.vlgmr.msra.gmra.mrb[8].mxu1 %vm40_vm0, %v4810_v36 }
 0x22c   :  { %4170 = vmatpush3.bf16.msra.mxu1 %v4522_v1  ;;  %4173 = vmatprep.mubr.msk.bf16.mxu1 %vm4709_vm1, %v4708_v16 }
 0x22d   :  { %4171 = vmatprep.subr.bf16.mxu1 %v4708_v16 }
 0x230   :  { %4172 = vmatpush3.bf16.msra.mxu1 %v4523_v2 }
 0x231   :  { %4183 = vmatprep.subr.bf16.mxu1 %v4708_v16 }
 0x233   :  { %4174 = vmatmul.mubr.msk.bf16.vlgmr.msra.gmra.mrb[12].mxu1 %vm40_vm0, %v4810_v36 }
 0x234   :  { %4185 = vmatprep.mubr.msk.bf16.mxu1 %vm4709_vm1, %v4708_v16 }
 0x2f6   :  { %v315_v3 = vpop.f32.mrb[4].mxu1 }
 0x2f7   :  { %v322_v5 = vmul.f32 0.35355338, %v315_v3  ;;  %v4145_v6 = vpop.f32.mrb[5].mxu1 }
 0x2f8   :  { %v318_v7 = vpop.f32.mrb[6].mxu1 }
 0x2f9   :  { %v323_v9 = vmul.f32 0.35355338, %v318_v7  ;;  %v4146_v10 = vpop.f32.mrb[7].mxu1  ;;  %v324_v11 = vadd.f32 %v322_v5, %v4871_v4 }
 0x2fb   :  { %v327_v12 = vsel %vm326_vm3, %v324_v11, -inf  ;;  %v325_v13 = vadd.f32 %v323_v9, %v4876_v8 }
 0x2fc   :  { %328 = vmax.xlane.f32.xlu0 %v327_v12 }
 0x2fd   :  { %v330_v14 = vsel %vm326_vm3, %v325_v13, -inf }
 0x2fe   :  { %v463_v17 = vpop.f32.mrb[8].mxu1  ;;  %331 = vmax.xlane.f32.xlu1 %v330_v14 }
 0x2ff   :  { %v4159_v18 = vpop.f32.mrb[9].mxu1  ;;  %v4885_v20 = vadd.f32 %v3738_v15, %v463_v17 }
 0x300   :  { %v466_v19 = vpop.f32.mrb[10].mxu1 }
 0x301   :  { %v4887_v21 = vadd.f32 %v3738_v15, %v466_v19  ;;  %v4160_v22 = vpop.f32.mrb[11].mxu1 }
 0x303   :  { %v586_v23 = vpack.c.bf16 %v4887_v21, %v4885_v20 }
 0x306   :  { %v579_v25 = vpop.f32.mrb[12].mxu1 }
 0x307   :  { %v4175_v26 = vpop.f32.mrb[13].mxu1  ;;  %v580_v28 = vadd.f32 %v3746_v24, %v579_v25 }
 0x308   :  { %v582_v27 = vpop.f32.mrb[14].mxu1 }
 0x309   :  { %v583_v29 = vadd.f32 %v3746_v24, %v582_v27  ;;  %v4176_v30 = vpop.f32.mrb[15].mxu1  ;;  %v3752_v27 = vld [vmem:[%s5583_s4 + $0x4] sm:$0xf] }
 0x30b   :  { %v662_v31 = vpack.c.bf16 %v583_v29, %v580_v28  ;;  %v715_v28 = vsel %vm713_vm4, %v3752_v27, 0 }
 0x30d   :  { %4184 = vmatpush3.bf16.msra.mxu1 %v662_v31 }
 0x30e   :  { %4195 = vmatprep.subr.bf16.mxu1 %v4708_v16 }
 0x389   :  { %v329_v32 = vpop.xlane.xlu0 %328 }
 0x38a   :  { %v333_v35 = vsub.f32 %v324_v11, %v329_v32 }
 0x38b   :  { %v332_v37 = vpop.xlane.xlu1 %331 }
 0x38c   :  { %v335_v38 = vmul.f32 1.442695, %v333_v35  ;;  %v334_v39 = vsub.f32 %v325_v13, %v332_v37  ;;  %v396_v35 = vld [vmem:[%s5583_s4] sm:$0xf] }
 0x38e   :  { %4582 = vpow2.f32 %v335_v38  ;;  %v337_v40 = vmul.f32 1.442695, %v334_v39 }
 0x390   :  { %4584 = vpow2.f32 %v337_v40  ;;  %v762_v40 = vsel %vm713_vm4, %v396_v35, 0 }
 0x398   :  { %v4583_v41 = vpop.eup %4582 }
 0x399   :  { %v339_v42 = vsel %vm326_vm3, %v4583_v41, 0.0 }
 0x39a   :  { %v4585_v43 = vpop.eup %4584  ;;  %340 = vadd.xlane.f32.xlu0 %v339_v42  ;;  %v4527_v42 = vld [vmem:[%s5582_s3 + $0x68] sm:$0xff]  }
 0x39b   :  { %v342_v44 = vsel %vm326_vm3, %v4585_v43, 0.0 }
 0x39c   :  { %343 = vadd.xlane.f32.xlu1 %v342_v44 }
 0x427   :  { %v341_v45 = vpop.xlane.xlu0 %340 }
 0x428   :  { %4586 = vrcp.f32 %v341_v45 }
 0x429   :  { %v344_v46 = vpop.xlane.xlu1 %343 }
 0x42a   :  { %4588 = vrcp.f32 %v344_v46  ;;  %v4528_v46 = vld [vmem:[%s5582_s3 + $0x20] sm:$0xff]  }
 0x432   :  { %v4587_v47 = vpop.eup %4586 }
 0x433   :  { %v347_v49 = vmul.f32 %v4587_v47, %v4583_v41  ;;  %v4526_v41 = vld [vmem:[%s5582_s3 + $0x60] sm:$0xff]  }
 0x434   :  { %v4589_v48 = vpop.eup %4588 }
 0x435   :  { %v348_v50 = vmul.f32 %v4589_v48, %v4585_v43 }
 0x437   :  { %v349_v52 = vpack.c.bf16 %v348_v50, %v347_v49  ;;  %v4529_v49 = vld [vmem:[%s5582_s3 + $0x28] sm:$0xff]  }
 0x439   :  { %4150 = vmatmul.mubr.msk.bf16.vlgmr.msra.gmra.mrb[8].mxu0 %vm326_vm3, %v349_v52 }
 0x43a   :  { %4162 = vmatpush3.bf16.msra.mxu0 %v4524_v51  ;;  %4165 = vmatprep.mubr.msk.bf16.mxu0 %vm4709_vm1, %v4708_v16 }
 0x43b   :  { %4163 = vmatprep.subr.bf16.mxu0 %v4708_v16 }
 0x43e   :  { %4164 = vmatpush3.bf16.msra.mxu0 %v4525_v53  ;;  %v4530_v53 = vld [vmem:[%s5582_s3 + $0xa0] sm:$0xff]  }
 0x43f   :  { %4177 = vmatprep.subr.bf16.mxu0 %v4708_v16 }
 0x441   :  { %4166 = vmatmul.mubr.msk.bf16.vlgmr.msra.gmra.mrb[12].mxu0 %vm40_vm0, %v4810_v36 }
 0x442   :  { %4179 = vmatprep.mubr.msk.bf16.mxu0 %vm4709_vm1, %v4708_v16 }
 0x50c   :  { %v4912_v54 = vpop.f32.mrb[8].mxu0 }
 0x50d   :  { %v4151_v55 = vpop.f32.mrb[9].mxu0 }
 0x50e   :  { %v4914_v56 = vpop.f32.mrb[10].mxu0  ;;  %v4531_v55 = vld [vmem:[%s5582_s3 + $0xa8] sm:$0xff]  }
 0x50f   :  { %v395_v57 = vpack.c.bf16 %v4914_v56, %v4912_v54  ;;  %v4152_v58 = vpop.f32.mrb[11].mxu0  ;;  %v3771_v56 = vld [vmem:[%s5581_s2 + $0x8] ss:$0 sm:$0xff] }
 0x514   :  { %v521_v60 = vpop.f32.mrb[12].mxu0 }
 0x515   :  { %v4167_v61 = vpop.f32.mrb[13].mxu0  ;;  %v522_v63 = vadd.f32 %v3742_v59, %v521_v60 }
 0x516   :  { %v524_v62 = vpop.f32.mrb[14].mxu0 }
 0x517   :  { %v525_v0 = vadd.f32 %v3742_v59, %v524_v62  ;;  %v4168_v1 = vpop.f32.mrb[15].mxu0 }
 0x519   :  { %v587_v2 = vpack.c.bf16 %v525_v0, %v522_v63 }
 0x51b   :  { %v592_v3 = vsel %vm274_vm2, %v587_v2, 0 }
 0x51c   :  { %4178 = vmatpush3.bf16.xpose.msra.mxu0 %v592_v3 }
 0x51d   :  { %4189 = vmatprep.subr.bf16.mxu0 %v4708_v16 }
 0x523   :  { %4180 = vmatmul.mubr.msk.bf16.vlgmr.msra.gmra.mrb[16].mxu0 %vm274_vm2, %v586_v23 }
 0x524   :  { %4191 = vmatprep.mubr.msk.bf16.mxu0 %vm4709_vm1, %v4708_v16  ;;  %4190 = vmatpush3.bf16.msra.mxu0 %v715_v28 }
 0x525   :  { %4201 = vmatprep.subr.bf16.mxu0 %v4708_v16 }
 0x5f6   :  { %v628_v5 = vpop.f32.mrb[16].mxu0 }
 0x5f7   :  { %v635_v6 = vmul.f32 0.35355338, %v628_v5  ;;  %v4181_v7 = vpop.f32.mrb[17].mxu0 }
 0x5f8   :  { %v631_v9 = vpop.f32.mrb[18].mxu0 }
 0x5f9   :  { %v636_v10 = vmul.f32 0.35355338, %v631_v9  ;;  %v4182_v11 = vpop.f32.mrb[19].mxu0  ;;  %v637_v12 = vadd.f32 %v635_v6, %v4871_v4  ;;  %v3767_v9 = vld [vmem:[%s5581_s2 + $0x4] ss:$0 sm:$0xff] }
 0x5fb   :  { %v639_v13 = vsel %vm326_vm3, %v637_v12, -inf  ;;  %v638_v14 = vadd.f32 %v636_v10, %v4876_v8 }
 0x5fc   :  { %640 = vmax.xlane.f32.xlu0 %v639_v13 }
 0x5fd   :  { %v642_v15 = vsel %vm326_vm3, %v638_v14, -inf }
 0x5fe   :  { %643 = vmax.xlane.f32.xlu1 %v642_v15 }
 0x689   :  { %v641_v17 = vpop.xlane.xlu0 %640 }
 0x68a   :  { %v645_v18 = vsub.f32 %v637_v12, %v641_v17 }
 0x68b   :  { %v644_v19 = vpop.xlane.xlu1 %643 }
 0x68c   :  { %v647_v20 = vmul.f32 1.442695, %v645_v18  ;;  %v646_v21 = vsub.f32 %v638_v14, %v644_v19  ;;  %v3775_v18 = vld [vmem:[%s5581_s2 + $0xc] ss:$0 sm:$0xff] }
 0x68e   :  { %4590 = vpow2.f32 %v647_v20  ;;  %v649_v22 = vmul.f32 1.442695, %v646_v21 }
 0x690   :  { %4592 = vpow2.f32 %v649_v22 }
 0x698   :  { %v4591_v23 = vpop.eup %4590 }
 0x699   :  { %v651_v24 = vsel %vm326_vm3, %v4591_v23, 0.0 }
 0x69a   :  { %v4593_v25 = vpop.eup %4592  ;;  %652 = vadd.xlane.f32.xlu0 %v651_v24 }
 0x69b   :  { %v654_v26 = vsel %vm326_vm3, %v4593_v25, 0.0 }
 0x69c   :  { %655 = vadd.xlane.f32.xlu1 %v654_v26 }
 0x727   :  { %v653_v29 = vpop.xlane.xlu0 %652 }
 0x728   :  { %4594 = vrcp.f32 %v653_v29 }
 0x729   :  { %v656_v30 = vpop.xlane.xlu1 %655 }
 0x72a   :  { %4596 = vrcp.f32 %v656_v30 }
 0x732   :  { %v4595_v31 = vpop.eup %4594 }
 0x733   :  { %v659_v37 = vmul.f32 %v4595_v31, %v4591_v23 }
 0x734   :  { %v4597_v32 = vpop.eup %4596 }
 0x735   :  { %v660_v38 = vmul.f32 %v4597_v32, %v4593_v25 }
 0x737   :  { %v661_v39 = vpack.c.bf16 %v660_v38, %v659_v37 }
 0x739   :  { %4186 = vmatmul.mubr.msk.bf16.vlgmr.msra.gmra.mrb[16].mxu1 %vm326_vm3, %v661_v39 }
 0x73a   :  { %4196 = vmatpush3.bf16.msra.mxu1 %v762_v40  ;;  %4197 = vmatprep.mubr.msk.bf16.mxu1 %vm4709_vm1, %v4708_v16 }
 0x73b   :  { %4209 = vmatprep.subr.bf16.mxu1 %v4708_v16 }
 0x741   :  { %4198 = vmatmul.mubr.msk.bf16.vlgmr.msra.gmra.mrb[20].mxu1 %vm274_vm2, %v395_v57 }
 0x742   :  { %4210 = vmatpush3.bf16.msra.mxu1 %v4526_v41  ;;  %4213 = vmatprep.mubr.msk.bf16.mxu1 %vm4709_vm1, %v4708_v16 }
 0x743   :  { %4211 = vmatprep.subr.bf16.mxu1 %v4708_v16 }
 0x746   :  { %4212 = vmatpush3.bf16.msra.mxu1 %v4527_v42 }
 0x747   :  { %4225 = vmatprep.subr.bf16.mxu1 %v4708_v16 }
 0x749   :  { %4214 = vmatmul.mubr.msk.bf16.vlgmr.msra.gmra.mrb[24].mxu1 %vm40_vm0, %v4810_v36 }
 0x74a   :  { %4227 = vmatprep.mubr.msk.bf16.mxu1 %vm4709_vm1, %v4708_v16 }
 0x80c   :  { %v700_v43 = vpop.f32.mrb[16].mxu1 }
 0x80d   :  { %v4187_v44 = vpop.f32.mrb[17].mxu1 }
 0x80e   :  { %v703_v45 = vpop.f32.mrb[18].mxu1 }
 0x80f   :  { %v707_v47 = vpack.c.bf16 %v703_v45, %v700_v43  ;;  %v4188_v48 = vpop.f32.mrb[19].mxu1 }
 0x811   :  { %4192 = vmatmul.mubr.msk.bf16.vlgmr.msra.gmra.mrb[20].mxu0 %vm274_vm2, %v707_v47 }
 0x812   :  { %4202 = vmatpush3.bf16.msra.mxu0 %v4528_v46  ;;  %4205 = vmatprep.mubr.msk.bf16.mxu0 %vm4709_vm1, %v4708_v16 }
 0x813   :  { %4203 = vmatprep.subr.bf16.mxu0 %v4708_v16 }
 0x814   :  { %v798_v50 = vpop.f32.mrb[20].mxu1 }
 0x815   :  { %v4199_v51 = vpop.f32.mrb[21].mxu1 }
 0x816   :  { %v801_v52 = vpop.f32.mrb[22].mxu1  ;;  %4204 = vmatpush3.bf16.msra.mxu0 %v4529_v49  ;;  %v3781_v49 = vld [vmem:[%s5583_s4 + $0x8] sm:$0xf] }
 0x817   :  { %v4200_v54 = vpop.f32.mrb[23].mxu1  ;;  %4217 = vmatprep.subr.bf16.mxu0 %v4708_v16 }
 0x819   :  { %4206 = vmatmul.mubr.msk.bf16.vlgmr.msra.gmra.mrb[24].mxu0 %vm40_vm0, %v4810_v36 }
 0x81a   :  { %4218 = vmatpush3.bf16.msra.mxu0 %v4530_v53  ;;  %4221 = vmatprep.mubr.msk.bf16.mxu0 %vm4709_vm1, %v4708_v16 }
 0x81b   :  { %4219 = vmatprep.subr.bf16.mxu0 %v4708_v16 }
 0x81c   :  { %v929_v57 = vpop.f32.mrb[24].mxu1 }
 0x81d   :  { %v4215_v58 = vpop.f32.mrb[25].mxu1  ;;  %v930_v60 = vadd.f32 %v3771_v56, %v929_v57  ;;  %v4532_v57 = vld [vmem:[%s5582_s3 + $0x30] sm:$0xff]  }
 0x81e   :  { %v932_v59 = vpop.f32.mrb[26].mxu1  ;;  %4220 = vmatpush3.bf16.msra.mxu0 %v4531_v55 }
 0x81f   :  { %v933_v61 = vadd.f32 %v3771_v56, %v932_v59  ;;  %v4216_v62 = vpop.f32.mrb[27].mxu1  ;;  %4231 = vmatprep.subr.bf16.mxu0 %v4708_v16  ;;  %v4533_v59 = vld [vmem:[%s5582_s3 + $0x38] sm:$0xff]  }
 0x821   :  { %v995_v63 = vpack.c.bf16 %v933_v61, %v930_v60  ;;  %4222 = vmatmul.mubr.msk.bf16.vlgmr.msra.gmra.mrb[28].mxu0 %vm40_vm0, %v4810_v36  ;;  %v4534_v60 = vld [vmem:[%s5582_s3 + $0xb0] sm:$0xff]   ;;  %v4535_v61 = vld [vmem:[%s5582_s3 + $0xb8] sm:$0xff]  }
 0x822   :  { %4233 = vmatprep.mubr.msk.bf16.mxu0 %vm4709_vm1, %v4708_v16 }
 0x823   :  { %v1000_v0 = vsel %vm274_vm2, %v995_v63, 0 }
 0x824   :  { %4226 = vmatpush3.bf16.xpose.msra.mxu1 %v1000_v0 }
 0x825   :  { %4237 = vmatprep.subr.bf16.mxu1 %v4708_v16 }
 0x8e4   :  { %v751_v1 = vpop.f32.mrb[20].mxu0 }
 0x8e5   :  { %v4992_v2 = vadd.f32 %v798_v50, %v751_v1  ;;  %v4193_v3 = vpop.f32.mrb[21].mxu0  ;;  %v1122_v50 = vsel %vm713_vm4, %v3781_v49, 0  ;;  %v4536_v1 = vld [vmem:[%s5582_s3 + $0x70] sm:$0xff]  }
 0x8e6   :  { %v754_v5 = vpop.f32.mrb[22].mxu0 }
 0x8e7   :  { %v4994_v6 = vadd.f32 %v801_v52, %v754_v5  ;;  %v4194_v7 = vpop.f32.mrb[23].mxu0 }
 0x8e8   :  { %v4537_v7 = vld [vmem:[%s5582_s3 + $0x78] sm:$0xff]  }
 0x8ec   :  { %v871_v10 = vpop.f32.mrb[24].mxu0 }
 0x8ed   :  { %v4207_v11 = vpop.f32.mrb[25].mxu0  ;;  %v872_v13 = vadd.f32 %v3767_v9, %v871_v10 }
 0x8ee   :  { %v874_v12 = vpop.f32.mrb[26].mxu0 }
 0x8ef   :  { %v875_v14 = vadd.f32 %v3767_v9, %v874_v12  ;;  %v4208_v15 = vpop.f32.mrb[27].mxu0  ;;  %v3795_v9 = vld [vmem:[%s5581_s2 + $0x5] ss:$0 sm:$0xff] }
 0x8f1   :  { %v994_v17 = vpack.c.bf16 %v875_v14, %v872_v13 }
 0x8f3   :  { %4228 = vmatmul.mubr.msk.bf16.vlgmr.msra.gmra.mrb[28].mxu1 %vm274_vm2, %v994_v17 }
 0x8f4   :  { %v987_v19 = vpop.f32.mrb[28].mxu0  ;;  %4239 = vmatprep.mubr.msk.bf16.mxu1 %vm4709_vm1, %v4708_v16  ;;  %4238 = vmatpush3.bf16.msra.mxu1 %v1122_v50 }
 0x8f5   :  { %v4223_v20 = vpop.f32.mrb[29].mxu0  ;;  %v988_v22 = vadd.f32 %v3775_v18, %v987_v19  ;;  %4251 = vmatprep.subr.bf16.mxu1 %v4708_v16 }
 0x8f6   :  { %v990_v21 = vpop.f32.mrb[30].mxu0 }
 0x8f7   :  { %v991_v23 = vadd.f32 %v3775_v18, %v990_v21  ;;  %v4224_v24 = vpop.f32.mrb[31].mxu0  ;;  %v3803_v18 = vld [vmem:[%s5581_s2 + $0xd] ss:$0 sm:$0xff] }
 0x8f9   :  { %v1070_v25 = vpack.c.bf16 %v991_v23, %v988_v22 }
 0x8fb   :  { %4232 = vmatpush3.bf16.msra.mxu0 %v1070_v25 }
 0x8fc   :  { %4243 = vmatprep.subr.bf16.mxu0 %v4708_v16 }
 0x9c6   :  { %v1036_v26 = vpop.f32.mrb[28].mxu1 }
 0x9c7   :  { %v1043_v27 = vmul.f32 0.35355338, %v1036_v26  ;;  %v4229_v28 = vpop.f32.mrb[29].mxu1 }
 0x9c8   :  { %v1039_v29 = vpop.f32.mrb[30].mxu1 }
 0x9c9   :  { %v1044_v30 = vmul.f32 0.35355338, %v1039_v29  ;;  %v4230_v31 = vpop.f32.mrb[31].mxu1  ;;  %v1045_v32 = vadd.f32 %v1043_v27, %v4871_v4 }
 0x9ca   :  { %v3799_v31 = vld [vmem:[%s5581_s2 + $0x9] ss:$0 sm:$0xff] }
 0x9cb   :  { %v1047_v35 = vsel %vm326_vm3, %v1045_v32, -inf  ;;  %v1046_v37 = vadd.f32 %v1044_v30, %v4876_v8 }
 0x9cc   :  { %1048 = vmax.xlane.f32.xlu0 %v1047_v35 }
 0x9cd   :  { %v1050_v38 = vsel %vm326_vm3, %v1046_v37, -inf }
 0x9ce   :  { %1051 = vmax.xlane.f32.xlu1 %v1050_v38 }
 0xa59   :  { %v1049_v39 = vpop.xlane.xlu0 %1048 }
 0xa5a   :  { %v1053_v40 = vsub.f32 %v1045_v32, %v1049_v39 }
 0xa5b   :  { %v1052_v41 = vpop.xlane.xlu1 %1051 }
 0xa5c   :  { %v1055_v42 = vmul.f32 1.442695, %v1053_v40  ;;  %v1054_v43 = vsub.f32 %v1046_v37, %v1052_v41 }
 0xa5e   :  { %4598 = vpow2.f32 %v1055_v42  ;;  %v1057_v44 = vmul.f32 1.442695, %v1054_v43 }
 0xa60   :  { %4600 = vpow2.f32 %v1057_v44 }
 0xa68   :  { %v4599_v45 = vpop.eup %4598 }
 0xa69   :  { %v1059_v46 = vsel %vm326_vm3, %v4599_v45, 0.0 }
 0xa6a   :  { %v4601_v47 = vpop.eup %4600  ;;  %1060 = vadd.xlane.f32.xlu0 %v1059_v46 }
 0xa6b   :  { %v1062_v48 = vsel %vm326_vm3, %v4601_v47, 0.0 }
 0xa6c   :  { %1063 = vadd.xlane.f32.xlu1 %v1062_v48 }
 0xaf7   :  { %v1061_v51 = vpop.xlane.xlu0 %1060 }
 0xaf8   :  { %4602 = vrcp.f32 %v1061_v51 }
 0xaf9   :  { %v1064_v52 = vpop.xlane.xlu1 %1063 }
 0xafa   :  { %4604 = vrcp.f32 %v1064_v52 }
 0xb02   :  { %v4603_v53 = vpop.eup %4602 }
 0xb03   :  { %v1067_v55 = vmul.f32 %v4603_v53, %v4599_v45 }
 0xb04   :  { %v4605_v54 = vpop.eup %4604 }
 0xb05   :  { %v1068_v56 = vmul.f32 %v4605_v54, %v4601_v47 }
 0xb07   :  { %v1069_v58 = vpack.c.bf16 %v1068_v56, %v1067_v55 }
 0xb09   :  { %4234 = vmatmul.mubr.msk.bf16.vlgmr.msra.gmra.mrb[32].mxu0 %vm326_vm3, %v1069_v58 }
 0xb0a   :  { %4244 = vmatpush3.bf16.msra.mxu0 %v4532_v57  ;;  %4247 = vmatprep.mubr.msk.bf16.mxu0 %vm4709_vm1, %v4708_v16 }
 0xb0b   :  { %4245 = vmatprep.subr.bf16.mxu0 %v4708_v16 }
 0xb0e   :  { %4246 = vmatpush3.bf16.msra.mxu0 %v4533_v59 }
 0xb0f   :  { %4259 = vmatprep.subr.bf16.mxu0 %v4708_v16 }
 0xb11   :  { %4248 = vmatmul.mubr.msk.bf16.vlgmr.msra.gmra.mrb[36].mxu0 %vm40_vm0, %v4810_v36 }
 0xb12   :  { %4260 = vmatpush3.bf16.msra.mxu0 %v4534_v60  ;;  %4263 = vmatprep.mubr.msk.bf16.mxu0 %vm4709_vm1, %v4708_v16 }
 0xb13   :  { %4261 = vmatprep.subr.bf16.mxu0 %v4708_v16 }
 0xb16   :  { %4262 = vmatpush3.bf16.msra.mxu0 %v4535_v61 }
 0xb17   :  { %4273 = vmatprep.subr.bf16.mxu0 %v4708_v16 }
 0xb19   :  { %4264 = vmatmul.mubr.msk.bf16.vlgmr.msra.gmra.mrb[40].mxu0 %vm40_vm0, %v4810_v36 }
 0xb1a   :  { %4275 = vmatprep.mubr.msk.bf16.mxu0 %vm4709_vm1, %v4708_v16 }
 0xbdc   :  { %v1108_v62 = vpop.f32.mrb[32].mxu0 }
 0xbdd   :  { %v4235_v63 = vpop.f32.mrb[33].mxu0 }
 0xbde   :  { %v1111_v0 = vpop.f32.mrb[34].mxu0 }
 0xbdf   :  { %v1115_v3 = vpack.c.bf16 %v1111_v0, %v1108_v62  ;;  %v4236_v5 = vpop.f32.mrb[35].mxu0 }
 0xbe1   :  { %4240 = vmatmul.mubr.msk.bf16.vlgmr.msra.gmra.mrb[32].mxu1 %vm274_vm2, %v1115_v3 }
 0xbe2   :  { %4252 = vmatpush3.bf16.msra.mxu1 %v4536_v1  ;;  %4255 = vmatprep.mubr.msk.bf16.mxu1 %vm4709_vm1, %v4708_v16 }
 0xbe3   :  { %4253 = vmatprep.subr.bf16.mxu1 %v4708_v16 }
 0xbe4   :  { %v1233_v10 = vpop.f32.mrb[36].mxu0 }
 0xbe5   :  { %v4249_v11 = vpop.f32.mrb[37].mxu0  ;;  %v1234_v13 = vadd.f32 %v3795_v9, %v1233_v10 }
 0xbe6   :  { %v1236_v12 = vpop.f32.mrb[38].mxu0  ;;  %4254 = vmatpush3.bf16.msra.mxu1 %v4537_v7 }
 0xbe7   :  { %v1237_v14 = vadd.f32 %v3795_v9, %v1236_v12  ;;  %v4250_v15 = vpop.f32.mrb[39].mxu0  ;;  %4267 = vmatprep.subr.bf16.mxu1 %v4708_v16 }
 0xbe9   :  { %v1356_v17 = vpack.c.bf16 %v1237_v14, %v1234_v13  ;;  %4256 = vmatmul.mubr.msk.bf16.vlgmr.msra.gmra.mrb[36].mxu1 %vm40_vm0, %v4810_v36  ;;  %v3811_v14 = vld [vmem:[%s5581_s2 + $0xe] ss:$0 sm:$0xff] }
 0xbea   :  { %4269 = vmatprep.mubr.msk.bf16.mxu1 %vm4709_vm1, %v4708_v16 }
 0xbec   :  { %v1349_v19 = vpop.f32.mrb[40].mxu0 }
 0xbed   :  { %v4265_v20 = vpop.f32.mrb[41].mxu0  ;;  %v1350_v22 = vadd.f32 %v3803_v18, %v1349_v19 }
 0xbee   :  { %v1352_v21 = vpop.f32.mrb[42].mxu0 }
 0xbef   :  { %v1353_v23 = vadd.f32 %v3803_v18, %v1352_v21  ;;  %v4266_v24 = vpop.f32.mrb[43].mxu0 }
 0xbf1   :  { %v1432_v25 = vpack.c.bf16 %v1353_v23, %v1350_v22 }
 0xbf3   :  { %4274 = vmatpush3.bf16.msra.mxu0 %v1432_v25 }
 0xbf4   :  { %4285 = vmatprep.subr.bf16.mxu0 %v4708_v16 }
 0xcb4   :  { %v1158_v26 = vpop.f32.mrb[32].mxu1 }
 0xcb5   :  { %v5067_v36 = vadd.f32 %v1158_v26, %v4992_v2  ;;  %v4241_v27 = vpop.f32.mrb[33].mxu1 }
 0xcb6   :  { %v1161_v28 = vpop.f32.mrb[34].mxu1 }
 0xcb7   :  { %v5070_v29 = vadd.f32 %v1161_v28, %v4994_v6  ;;  %v4242_v30 = vpop.f32.mrb[35].mxu1 }
 0xcbc   :  { %v1291_v32 = vpop.f32.mrb[36].mxu1 }
 0xcbd   :  { %v4257_v35 = vpop.f32.mrb[37].mxu1  ;;  %v1292_v38 = vadd.f32 %v3799_v31, %v1291_v32 }
 0xcbe   :  { %v1294_v37 = vpop.f32.mrb[38].mxu1 }
 0xcbf   :  { %v1295_v39 = vadd.f32 %v3799_v31, %v1294_v37  ;;  %v4258_v40 = vpop.f32.mrb[39].mxu1 }
 0xcc1   :  { %v1357_v41 = vpack.c.bf16 %v1295_v39, %v1292_v38  ;;  %v4539_v38 = vld [vmem:[%s5584_s5 + $0x8] sm:$0xff]  }
 0xcc3   :  { %v1362_v2 = vsel %vm274_vm2, %v1357_v41, 0 }
 0xcc4   :  { %4268 = vmatpush3.bf16.xpose.msra.mxu1 %v1362_v2 }
 0xcc5   :  { %4279 = vmatprep.subr.bf16.mxu1 %v4708_v16 }
 0xccb   :  { %4270 = vmatmul.mubr.msk.bf16.vlgmr.msra.gmra.mrb[40].mxu1 %vm274_vm2, %v1356_v17 }
 0xccc   :  { %4281 = vmatprep.mubr.msk.bf16.mxu1 %vm4709_vm1, %v4708_v16 }
 0xd9e   :  { %v1398_v6 = vpop.f32.mrb[40].mxu1 }
 0xd9f   :  { %v1405_v42 = vmul.f32 0.35355338, %v1398_v6  ;;  %v4271_v43 = vpop.f32.mrb[41].mxu1 }
 0xda0   :  { %v1401_v44 = vpop.f32.mrb[42].mxu1 }
 0xda1   :  { %v1406_v45 = vmul.f32 0.35355338, %v1401_v44  ;;  %v4272_v46 = vpop.f32.mrb[43].mxu1  ;;  %v1407_v47 = vadd.f32 %v1405_v42, %v4871_v4  ;;  %v3812_v44 = vld [vmem:[%s5581_s2 + $0xf] ss:$0 sm:$0xff] }
 0xda3   :  { %v1409_v48 = vsel %vm326_vm3, %v1407_v47, -inf  ;;  %v1408_v49 = vadd.f32 %v1406_v45, %v4876_v8  ;;  %v3809_v8 = vld [vmem:[%s5583_s4 + $0xc] sm:$0xf] }
 0xda4   :  { %1410 = vmax.xlane.f32.xlu0 %v1409_v48  ;;  %v1484_v60 = vsel %vm713_vm4, %v3809_v8, 0 }
 0xda5   :  { %v1412_v50 = vsel %vm326_vm3, %v1408_v49, -inf  ;;  %4280 = vmatpush3.bf16.msra.mxu1 %v1484_v60 }
 0xda6   :  { %1413 = vmax.xlane.f32.xlu1 %v1412_v50  ;;  %4293 = vmatprep.subr.bf16.mxu1 %v4708_v16 }
 0xe31   :  { %v1411_v51 = vpop.xlane.xlu0 %1410 }
 0xe32   :  { %v1415_v52 = vsub.f32 %v1407_v47, %v1411_v51 }
 0xe33   :  { %v1414_v53 = vpop.xlane.xlu1 %1413 }
 0xe34   :  { %v1417_v54 = vmul.f32 1.442695, %v1415_v52  ;;  %v1416_v55 = vsub.f32 %v1408_v49, %v1414_v53  ;;  %v3813_v49 = vld [vmem:[%s5581_s2 + $0x10] ss:$0 sm:$0xff] }
 0xe36   :  { %4606 = vpow2.f32 %v1417_v54  ;;  %v1419_v56 = vmul.f32 1.442695, %v1416_v55  ;;  %v4540_v54 = vld [vmem:[%s5585_s6] sm:$0xff]   ;;  %v4541_v55 = vld [vmem:[%s5585_s6 + $0x8] sm:$0xff]  }
 0xe38   :  { %4608 = vpow2.f32 %v1419_v56  ;;  %v4542_v56 = vld [vmem:[%s5585_s6 + $0x10] sm:$0xff]  }
 0xe40   :  { %v4607_v57 = vpop.eup %4606 }
 0xe41   :  { %v1421_v58 = vsel %vm326_vm3, %v4607_v57, 0.0 }
 0xe42   :  { %v4609_v4 = vpop.eup %4608  ;;  %1422 = vadd.xlane.f32.xlu0 %v1421_v58  ;;  %v3814_v58 = vld [vmem:[%s5581_s2 + $0x11] ss:$0 sm:$0xff] }
 0xe43   :  { %v1424_v59 = vsel %vm326_vm3, %v4609_v4, 0.0 }
 0xe44   :  { %1425 = vadd.xlane.f32.xlu1 %v1424_v59 }
 0xecf   :  { %v1423_v61 = vpop.xlane.xlu0 %1422 }
 0xed0   :  { %4610 = vrcp.f32 %v1423_v61 }
 0xed1   :  { %v1426_v62 = vpop.xlane.xlu1 %1425 }
 0xed2   :  { %4612 = vrcp.f32 %v1426_v62 }
 0xeda   :  { %v4611_v63 = vpop.eup %4610 }
 0xedb   :  { %v1429_v1 = vmul.f32 %v4611_v63, %v4607_v57  ;;  %v4543_v57 = vld [vmem:[%s5585_s6 + $0x18] sm:$0xff]  }
 0xedc   :  { %v4613_v0 = vpop.eup %4612 }
 0xedd   :  { %v1430_v3 = vmul.f32 %v4613_v0, %v4609_v4 }
 0xedf   :  { %v1431_v5 = vpack.c.bf16 %v1430_v3, %v1429_v1 }
 0xee1   :  { %4276 = vmatmul.mubr.msk.bf16.vlgmr.msra.gmra.mrb[44].mxu0 %vm326_vm3, %v1431_v5 }
 0xee2   :  { %4289 = vmatprep.mubr.msk.bf16.mxu0 %vm4709_vm1, %v4708_v16 }
 0xfb4   :  { %v1470_v7 = vpop.f32.mrb[44].mxu0 }
 0xfb5   :  { %v4277_v9 = vpop.f32.mrb[45].mxu0 }
 0xfb6   :  { %v1473_v10 = vpop.f32.mrb[46].mxu0 }
 0xfb7   :  { %v1477_v11 = vpack.c.bf16 %v1473_v10, %v1470_v7  ;;  %v4278_v12 = vpop.f32.mrb[47].mxu0 }
 0xfb9   :  { %4282 = vmatmul.mubr.msk.bf16.vlgmr.msra.gmra.mrb[44].mxu1 %vm274_vm2, %v1477_v11 }
 0xfba   :  { %4301 = vmatprep.mubr.msk.bf16.mxu1 %vm4709_vm1, %v4708_v16  ;;  %4294 = vmatpush3.bf16.msra.mxu1 %v4540_v54 }
 0xfbb   :  { %4295 = vmatprep.subr.bf16.mxu1 %v4708_v16 }
 0xfbe   :  { %4296 = vmatpush3.bf16.msra.mxu1 %v4541_v55 }
 0xfbf   :  { %4297 = vmatprep.subr.bf16.mxu1 %v4708_v16 }
 0xfc2   :  { %4298 = vmatpush3.bf16.msra.mxu1 %v4542_v56 }
 0xfc3   :  { %4299 = vmatprep.subr.bf16.mxu1 %v4708_v16 }
 0xfc6   :  { %4300 = vmatpush3.bf16.msra.mxu1 %v4543_v57 }
 0xfc7   :  { %4321 = vmatprep.subr.bf16.mxu1 %v4708_v16 }
0x108c   :  { %v1520_v13 = vpop.f32.mrb[44].mxu1 }
0x108d   :  { %v1527_v15 = vadd.f32 %v1520_v13, %v5067_v36  ;;  %v4283_v17 = vpop.f32.mrb[45].mxu1 }
0x108e   :  { %v1523_v18 = vpop.f32.mrb[46].mxu1 }
0x108f   :  { %v1534_v19 = vadd.f32 %v3811_v14, %v1527_v15  ;;  %v1528_v20 = vadd.f32 %v1523_v18, %v5070_v29  ;;  %v4284_v21 = vpop.f32.mrb[47].mxu1 }
0x1091   :  { %v1535_v22 = vadd.f32 %v3811_v14, %v1528_v20  ;;  %v1536_v23 = vadd.f32 %v1534_v19, %v4801_v33 }
0x1093   :  { %v1540_v24 = vsel %vm40_vm0, %v1536_v23, 0.0  ;;  %v1537_v25 = vadd.f32 %v1535_v22, %v4803_v34  ;;  %v4538_v34 = vld [vmem:[%s5584_s5] sm:$0xff]  }
0x1094   :  { %1541 = vadd.xlane.f32.xlu0 %v1540_v24  ;;  %4286 = vmatpush3.bf16.msra.mxu0 %v4538_v34 }
0x1095   :  { %v1543_v26 = vsel %vm40_vm0, %v1537_v25, 0.0  ;;  %4287 = vmatprep.subr.bf16.mxu0 %v4708_v16 }
0x1096   :  { %1544 = vadd.xlane.f32.xlu1 %v1543_v26 }
0x1098   :  { %4288 = vmatpush3.bf16.msra.mxu0 %v4539_v38 }
0x1099   :  { %4305 = vmatprep.subr.bf16.mxu0 %v4708_v16 }
0x1121   :  { %v1542_v27 = vpop.xlane.xlu0 %1541 }
0x1122   :  { %v1546_v28 = vmul.f32 0.03125, %v1542_v27 }
0x1123   :  { %v1545_v36 = vpop.xlane.xlu1 %1544 }
0x1124   :  { %v1548_v30 = vsub.f32 %v1536_v23, %v1546_v28  ;;  %v1547_v31 = vmul.f32 0.03125, %v1545_v36  ;;  %v3818_v23 = vld [vmem:[%s5581_s2 + $0x12] ss:$0 sm:$0xff] }
0x1126   :  { %v1549_v32 = vsub.f32 %v1537_v25, %v1547_v31  ;;  %v1550_v35 = vmul.f32 %v1548_v30, %v1548_v30 }
0x1128   :  { %v1552_v29 = vsel %vm40_vm0, %v1550_v35, 0.0  ;;  %v1551_v37 = vmul.f32 %v1549_v32, %v1549_v32 }
0x1129   :  { %1553 = vadd.xlane.f32.xlu0 %v1552_v29 }
0x112a   :  { %v1555_v33 = vsel %vm40_vm0, %v1551_v37, 0.0 }
0x112b   :  { %1556 = vadd.xlane.f32.xlu1 %v1555_v33 }
0x11b6   :  { %v1554_v39 = vpop.xlane.xlu0 %1553 }
0x11b7   :  { %v1558_v40 = vmul.f32 0.03125, %v1554_v39 }
0x11b8   :  { %v1557_v41 = vpop.xlane.xlu1 %1556 }
0x11b9   :  { %v1560_v2 = vadd.f32 1e-12, %v1558_v40  ;;  %v1559_v6 = vmul.f32 0.03125, %v1557_v41 }
0x11bb   :  { %4614 = vrsqrt.f32 %v1560_v2  ;;  %v1561_v42 = vadd.f32 1e-12, %v1559_v6 }
0x11bd   :  { %4616 = vrsqrt.f32 %v1561_v42  ;;  %v4544_v42 = vld [vmem:[%s5582_s3 + $0xc0] sm:$0xff]  }
0x11c5   :  { %v4615_v43 = vpop.eup %4614 }
0x11c6   :  { %v1564_v45 = vmul.f32 %v4615_v43, %v1548_v30  ;;  %v4545_v43 = vld [vmem:[%s5582_s3 + $0x140] sm:$0xff]  }
0x11c7   :  { %v4617_v46 = vpop.eup %4616 }
0x11c8   :  { %v1570_v47 = vmul.f32 %v3812_v44, %v1564_v45  ;;  %v1565_v48 = vmul.f32 %v4617_v46, %v1549_v32  ;;  %v4547_v45 = vld [vmem:[%s5582_s3 + $0x148] sm:$0xff]  }
0x11ca   :  { %v1571_v50 = vmul.f32 %v3812_v44, %v1565_v48  ;;  %v1576_v51 = vadd.f32 %v3813_v49, %v1570_v47  ;;  %v4546_v44 = vld [vmem:[%s5582_s3 + $0xc8] sm:$0xff]  }
0x11cc   :  { %v1577_v52 = vadd.f32 %v3813_v49, %v1571_v50 }
0x11ce   :  { %v1578_v53 = vpack.c.bf16 %v1577_v52, %v1576_v51 }
0x11d0   :  { %4290 = vmatmul.mubr.msk.bf16.vlgmr.msra.gmra.mrb[48].mxu0 %vm40_vm0, %v1578_v53  ;;  %v3824_v53 = vld [vmem:[%s5581_s2 + $0x13] ss:$0 sm:$0xff] }
0x11d1   :  { %4309 = vmatprep.mubr.msk.bf16.mxu0 %vm4709_vm1, %v4708_v16  ;;  %4306 = vmatpush3.bf16.msra.mxu0 %v4544_v42 }
0x11d2   :  { %4307 = vmatprep.subr.bf16.mxu0 %v4708_v16 }
0x11d5   :  { %4308 = vmatpush3.bf16.msra.mxu0 %v4546_v44 }
0x11d6   :  { %4313 = vmatprep.subr.bf16.mxu0 %v4708_v16 }
0x12a3   :  { %v1637_v4 = vpop.f32.mrb[48].mxu0 }
0x12a4   :  { %v1638_v59 = vadd.f32 %v3814_v58, %v1637_v4  ;;  %v4291_v8 = vpop.f32.mrb[49].mxu0 }
0x12a5   :  { %v1640_v60 = vpop.f32.mrb[50].mxu0 }
0x12a6   :  { %v1644_v61 = vmul.f32 %v1638_v59, %v1638_v59  ;;  %v1641_v62 = vadd.f32 %v3814_v58, %v1640_v60  ;;  %v4292_v63 = vpop.f32.mrb[51].mxu0  ;;  %v3825_v58 = vld [vmem:[%s5581_s2 + $0x14] ss:$0 sm:$0xff]  ;;  %v4548_v60 = vld [vmem:[%s5582_s3 + $0x100] sm:$0xff]  }
0x12a7   :  { %v3838_v63 = vld [vmem:[%s5581_s2 + $0x15] ss:$0 sm:$0xff] }
0x12a8   :  { %v1646_v0 = vmul.f32 %v1644_v61, %v1638_v59  ;;  %v1645_v1 = vmul.f32 %v1641_v62, %v1641_v62 }
0x12aa   :  { %v1648_v3 = vmul.f32 0.044715, %v1646_v0  ;;  %v1647_v5 = vmul.f32 %v1645_v1, %v1641_v62  ;;  %v3846_v1 = vld [vmem:[%s5581_s2 + $0x1d] ss:$0 sm:$0xff] }
0x12ac   :  { %v1650_v7 = vadd.f32 %v1648_v3, %v1638_v59  ;;  %v1649_v9 = vmul.f32 0.044715, %v1647_v5 }
0x12ae   :  { %v1652_v10 = vmul.f32 0.7978846, %v1650_v7  ;;  %v1651_v11 = vadd.f32 %v1649_v9, %v1641_v62 }
0x12b0   :  { %4618 = vtanh.f32 %v1652_v10  ;;  %v1653_v12 = vmul.f32 0.7978846, %v1651_v11 }
0x12b2   :  { %4620 = vtanh.f32 %v1653_v12 }
0x12ba   :  { %v4619_v13 = vpop.eup %4618 }
0x12bb   :  { %v1656_v14 = vadd.f32 1.0, %v4619_v13 }
0x12bc   :  { %v4621_v15 = vpop.eup %4620 }
0x12bd   :  { %v1658_v17 = vmul.f32 0.5, %v1656_v14  ;;  %v1657_v18 = vadd.f32 1.0, %v4621_v15 }
0x12bf   :  { %v1659_v19 = vmul.f32 0.5, %v1657_v18  ;;  %v1660_v20 = vmul.f32 %v1658_v17, %v1638_v59 }
0x12c1   :  { %v1661_v21 = vmul.f32 %v1659_v19, %v1641_v62  ;;  %v4549_v62 = vld [vmem:[%s5582_s3 + $0x108] sm:$0xff]  }
0x12c3   :  { %v1662_v22 = vpack.c.bf16 %v1661_v21, %v1660_v20  ;;  %v3842_v20 = vld [vmem:[%s5581_s2 + $0x19] ss:$0 sm:$0xff] }
0x12c5   :  { %4302 = vmatmul.mubr.msk.bf16.vlgmr.msra.gmra.mrb[48].mxu1 %vm1700_vm5, %v1662_v22 }
0x12c6   :  { %4325 = vmatprep.mubr.msk.bf16.mxu1 %vm4709_vm1, %v4708_v16  ;;  %4322 = vmatpush3.bf16.msra.mxu1 %v4545_v43  ;;  %v3865_v43 = vld [vmem:[%s5581_s2 + $0x16] ss:$0 sm:$0xff] }
0x12c7   :  { %4323 = vmatprep.subr.bf16.mxu1 %v4708_v16 }
0x12ca   :  { %4324 = vmatpush3.bf16.msra.mxu1 %v4547_v45 }
0x12cb   :  { %4335 = vmatprep.subr.bf16.mxu1 %v4708_v16 }
0x1398   :  { %v1738_v24 = vpop.f32.mrb[48].mxu1 }
0x1399   :  { %v1739_v25 = vadd.f32 %v3818_v23, %v1738_v24  ;;  %v4303_v26 = vpop.f32.mrb[49].mxu1 }
0x139a   :  { %v1741_v27 = vpop.f32.mrb[50].mxu1 }
0x139b   :  { %v1742_v28 = vadd.f32 %v3818_v23, %v1741_v27  ;;  %v4304_v36 = vpop.f32.mrb[51].mxu1  ;;  %v1745_v30 = vadd.f32 %v1739_v25, %v1576_v51 }
0x139c   :  { %v4550_v36 = vld [vmem:[%s5582_s3 + $0xd0] sm:$0xff]  }
0x139d   :  { %v1749_v31 = vsel %vm40_vm0, %v1745_v30, 0.0  ;;  %v1746_v32 = vadd.f32 %v1742_v28, %v1577_v52 }
0x139e   :  { %1750 = vadd.xlane.f32.xlu0 %v1749_v31  ;;  %v4552_v31 = vld [vmem:[%s5582_s3 + $0x150] sm:$0xff]  }
0x139f   :  { %v1752_v35 = vsel %vm40_vm0, %v1746_v32, 0.0 }
0x13a0   :  { %1753 = vadd.xlane.f32.xlu1 %v1752_v35 }
0x142b   :  { %v1751_v29 = vpop.xlane.xlu0 %1750 }
0x142c   :  { %v1755_v37 = vmul.f32 0.03125, %v1751_v29 }
0x142d   :  { %v1754_v33 = vpop.xlane.xlu1 %1753 }
0x142e   :  { %v1757_v34 = vsub.f32 %v1745_v30, %v1755_v37  ;;  %v1756_v38 = vmul.f32 0.03125, %v1754_v33  ;;  %v4551_v30 = vld [vmem:[%s5582_s3 + $0xd8] sm:$0xff]  }
0x1430   :  { %v1758_v39 = vsub.f32 %v1746_v32, %v1756_v38  ;;  %v1759_v40 = vmul.f32 %v1757_v34, %v1757_v34  ;;  %v4553_v32 = vld [vmem:[%s5582_s3 + $0x158] sm:$0xff]  }
0x1432   :  { %v1761_v41 = vsel %vm40_vm0, %v1759_v40, 0.0  ;;  %v1760_v2 = vmul.f32 %v1758_v39, %v1758_v39 }
0x1433   :  { %1762 = vadd.xlane.f32.xlu0 %v1761_v41 }
0x1434   :  { %v1764_v6 = vsel %vm40_vm0, %v1760_v2, 0.0  ;;  %v5253_v2 = vld [vmem:[%s5580_s1 + $0x8] sm:$0xff] }
0x1435   :  { %1765 = vadd.xlane.f32.xlu1 %v1764_v6 }
0x14c0   :  { %v1763_v46 = vpop.xlane.xlu0 %1762 }
0x14c1   :  { %v1767_v47 = vmul.f32 0.03125, %v1763_v46 }
0x14c2   :  { %v1766_v48 = vpop.xlane.xlu1 %1765 }
0x14c3   :  { %v1769_v49 = vadd.f32 1e-12, %v1767_v47  ;;  %v1768_v50 = vmul.f32 0.03125, %v1766_v48 }
0x14c5   :  { %4622 = vrsqrt.f32 %v1769_v49  ;;  %v1770_v51 = vadd.f32 1e-12, %v1768_v50 }
0x14c7   :  { %4624 = vrsqrt.f32 %v1770_v51  ;;  %v3873_v51 = vld [vmem:[%s5581_s2 + $0x1e] ss:$0 sm:$0xff] }
0x14cf   :  { %v4623_v52 = vpop.eup %4622 }
0x14d0   :  { %v1773_v54 = vmul.f32 %v4623_v52, %v1757_v34 }
0x14d1   :  { %v4625_v55 = vpop.eup %4624 }
0x14d2   :  { %v1779_v56 = vmul.f32 %v3824_v53, %v1773_v54  ;;  %v1774_v57 = vmul.f32 %v4625_v55, %v1758_v39  ;;  %v5246_v39 = vld [vmem:[%s5580_s1] sm:$0xff] }
0x14d4   :  { %v1780_v4 = vmul.f32 %v3824_v53, %v1774_v57  ;;  %v5176_v59 = vadd.f32 %v3825_v58, %v1779_v56 }
0x14d6   :  { %v5178_v8 = vadd.f32 %v3825_v58, %v1780_v4 }
0x14d8   :  { %v5185_v61 = vpack.c.bf16 %v5178_v8, %v5176_v59 }
0x14da   :  { %4310 = vmatmul.mubr.msk.bf16.vlgmr.msra.gmra.mrb[52].mxu0 %vm40_vm0, %v5185_v61  ;;  %4326 = vmatmul.mubr.msk.bf16.vlgmr.msra.gmra.mrb[52].mxu1 %vm40_vm0, %v5185_v61 }
0x14db   :  { %4314 = vmatpush3.bf16.msra.mxu0 %v4548_v60  ;;  %4317 = vmatprep.mubr.msk.bf16.mxu0 %vm4709_vm1, %v4708_v16 }
0x14dc   :  { %4315 = vmatprep.subr.bf16.mxu0 %v4708_v16  ;;  %4337 = vmatprep.mubr.msk.bf16.mxu1 %vm4709_vm1, %v4708_v16 }
0x14df   :  { %4316 = vmatpush3.bf16.msra.mxu0 %v4549_v62 }
0x14e0   :  { %4329 = vmatprep.subr.bf16.mxu0 %v4708_v16 }
0x14e2   :  { %4318 = vmatmul.mubr.msk.bf16.vlgmr.msra.gmra.mrb[56].mxu0 %vm40_vm0, %v5185_v61 }
0x14e3   :  { %4331 = vmatprep.mubr.msk.bf16.mxu0 %vm4709_vm1, %v4708_v16 }
0x15ad   :  { %v1857_v0 = vpop.f32.mrb[52].mxu0  ;;  %v1973_v3 = vpop.f32.mrb[52].mxu1 }
0x15ae   :  { %v4311_v5 = vpop.f32.mrb[53].mxu0  ;;  %v4327_v7 = vpop.f32.mrb[53].mxu1  ;;  %v1858_v11 = vadd.f32 %v3838_v63, %v1857_v0  ;;  %v1974_v12 = vadd.f32 %v3846_v1, %v1973_v3 }
0x15af   :  { %v1860_v9 = vpop.f32.mrb[54].mxu0  ;;  %v1976_v10 = vpop.f32.mrb[54].mxu1 }
0x15b0   :  { %v1861_v13 = vadd.f32 %v3838_v63, %v1860_v9  ;;  %v1977_v14 = vadd.f32 %v3846_v1, %v1976_v10  ;;  %v4312_v15 = vpop.f32.mrb[55].mxu0  ;;  %v4328_v17 = vpop.f32.mrb[55].mxu1 }
0x15b1   :  { %v4554_v17 = vld [vmem:[%s5582_s3 + $0x110] sm:$0xff]  }
0x15b2   :  { %v1980_v18 = vpack.c.bf16 %v1861_v13, %v1858_v11  ;;  %v2056_v19 = vpack.c.bf16 %v1977_v14, %v1974_v12 }
0x15b4   :  { %4336 = vmatpush3.bf16.msra.mxu1 %v2056_v19  ;;  %v4555_v19 = vld [vmem:[%s5582_s3 + $0x118] sm:$0xff]  }
0x15b5   :  { %v1915_v21 = vpop.f32.mrb[56].mxu0  ;;  %4349 = vmatprep.subr.bf16.mxu1 %v4708_v16 }
0x15b6   :  { %v4319_v22 = vpop.f32.mrb[57].mxu0  ;;  %v1916_v24 = vadd.f32 %v3842_v20, %v1915_v21 }
0x15b7   :  { %v1918_v23 = vpop.f32.mrb[58].mxu0 }
0x15b8   :  { %v1919_v25 = vadd.f32 %v3842_v20, %v1918_v23  ;;  %v4320_v26 = vpop.f32.mrb[59].mxu0 }
0x15ba   :  { %v1981_v27 = vpack.c.bf16 %v1919_v25, %v1916_v24  ;;  %v3869_v25 = vld [vmem:[%s5581_s2 + $0x1a] ss:$0 sm:$0xff] }
0x15bc   :  { %v1986_v28 = vsel %vm274_vm2, %v1981_v27, 0 }
0x15bd   :  { %4330 = vmatpush3.bf16.xpose.msra.mxu0 %v1986_v28 }
0x15be   :  { %4341 = vmatprep.subr.bf16.mxu0 %v4708_v16 }
0x15c4   :  { %4332 = vmatmul.mubr.msk.bf16.vlgmr.msra.gmra.mrb[60].mxu0 %vm274_vm2, %v1980_v18 }
0x15c5   :  { %4342 = vmatpush3.bf16.msra.mxu0 %v4550_v36  ;;  %4345 = vmatprep.mubr.msk.bf16.mxu0 %vm4709_vm1, %v4708_v16 }
0x15c6   :  { %4343 = vmatprep.subr.bf16.mxu0 %v4708_v16 }
0x15c9   :  { %4344 = vmatpush3.bf16.msra.mxu0 %v4551_v30 }
0x15ca   :  { %4357 = vmatprep.subr.bf16.mxu0 %v4708_v16 }
0x15cc   :  { %4346 = vmatmul.mubr.msk.bf16.vlgmr.msra.gmra.mrb[64].mxu0 %vm40_vm0, %v5185_v61 }
0x15cd   :  { %4358 = vmatpush3.bf16.msra.mxu0 %v4552_v31  ;;  %4361 = vmatprep.mubr.msk.bf16.mxu0 %vm4709_vm1, %v4708_v16 }
0x15ce   :  { %4359 = vmatprep.subr.bf16.mxu0 %v4708_v16 }
0x15d1   :  { %4360 = vmatpush3.bf16.msra.mxu0 %v4553_v32 }
0x15d2   :  { %4371 = vmatprep.subr.bf16.mxu0 %v4708_v16 }
0x15d4   :  { %4362 = vmatmul.mubr.msk.bf16.vlgmr.msra.gmra.mrb[68].mxu0 %vm40_vm0, %v5185_v61 }
0x15d5   :  { %4373 = vmatprep.mubr.msk.bf16.mxu0 %vm4709_vm1, %v4708_v16 }
0x1697   :  { %v2022_v35 = vpop.f32.mrb[60].mxu0 }
0x1698   :  { %v2029_v29 = vmul.f32 0.35355338, %v2022_v35  ;;  %v4333_v37 = vpop.f32.mrb[61].mxu0 }
0x1699   :  { %v2025_v33 = vpop.f32.mrb[62].mxu0 }
0x169a   :  { %v2030_v34 = vmul.f32 0.35355338, %v2025_v33  ;;  %v4334_v38 = vpop.f32.mrb[63].mxu0  ;;  %v2031_v40 = vadd.f32 %v5246_v39, %v2029_v29 }
0x169c   :  { %v2033_v41 = vsel %vm326_vm3, %v2031_v40, -inf  ;;  %v2032_v6 = vadd.f32 %v5253_v2, %v2030_v34 }
0x169d   :  { %2034 = vmax.xlane.f32.xlu0 %v2033_v41 }
0x169e   :  { %v2036_v42 = vsel %vm326_vm3, %v2032_v6, -inf }
0x169f   :  { %2037 = vmax.xlane.f32.xlu1 %v2036_v42  ;;  %v2170_v44 = vpop.f32.mrb[64].mxu0 }
0x16a0   :  { %v4347_v45 = vpop.f32.mrb[65].mxu0  ;;  %v5260_v47 = vadd.f32 %v3865_v43, %v2170_v44 }
0x16a1   :  { %v2173_v46 = vpop.f32.mrb[66].mxu0 }
0x16a2   :  { %v5262_v48 = vadd.f32 %v3865_v43, %v2173_v46  ;;  %v4348_v49 = vpop.f32.mrb[67].mxu0 }
0x16a4   :  { %v2293_v50 = vpack.c.bf16 %v5262_v48, %v5260_v47 }
0x16a7   :  { %v2286_v52 = vpop.f32.mrb[68].mxu0 }
0x16a8   :  { %v4363_v53 = vpop.f32.mrb[69].mxu0  ;;  %v2287_v55 = vadd.f32 %v3873_v51, %v2286_v52 }
0x16a9   :  { %v2289_v54 = vpop.f32.mrb[70].mxu0 }
0x16aa   :  { %v2290_v56 = vadd.f32 %v3873_v51, %v2289_v54  ;;  %v4364_v57 = vpop.f32.mrb[71].mxu0  ;;  %v3879_v54 = vld [vmem:[%s5583_s4 + $0x14] sm:$0xf] }
0x16ac   :  { %v2369_v58 = vpack.c.bf16 %v2290_v56, %v2287_v55  ;;  %v2421_v55 = vsel %vm713_vm4, %v3879_v54, 0 }
0x16ae   :  { %4372 = vmatpush3.bf16.msra.mxu0 %v2369_v58 }
0x16af   :  { %4383 = vmatprep.subr.bf16.mxu0 %v4708_v16 }
0x172a   :  { %v2035_v4 = vpop.xlane.xlu0 %2034 }
0x172b   :  { %v2039_v60 = vsub.f32 %v2031_v40, %v2035_v4 }
0x172c   :  { %v2038_v62 = vpop.xlane.xlu1 %2037 }
0x172d   :  { %v2041_v63 = vmul.f32 1.442695, %v2039_v60  ;;  %v2040_v0 = vsub.f32 %v2032_v6, %v2038_v62  ;;  %v3852_v60 = vld [vmem:[%s5583_s4 + $0x10] sm:$0xf] }
0x172f   :  { %4626 = vpow2.f32 %v2041_v63  ;;  %v2043_v1 = vmul.f32 1.442695, %v2040_v0 }
0x1731   :  { %4628 = vpow2.f32 %v2043_v1  ;;  %v2468_v1 = vsel %vm713_vm4, %v3852_v60, 0 }
0x1739   :  { %v4627_v3 = vpop.eup %4626 }
0x173a   :  { %v2045_v5 = vsel %vm326_vm3, %v4627_v3, 0.0 }
0x173b   :  { %v4629_v7 = vpop.eup %4628  ;;  %2046 = vadd.xlane.f32.xlu0 %v2045_v5  ;;  %v4557_v5 = vld [vmem:[%s5582_s3 + $0x128] sm:$0xff]  }
0x173c   :  { %v2048_v9 = vsel %vm326_vm3, %v4629_v7, 0.0 }
0x173d   :  { %2049 = vadd.xlane.f32.xlu1 %v2048_v9 }
0x17c8   :  { %v2047_v10 = vpop.xlane.xlu0 %2046 }
0x17c9   :  { %4630 = vrcp.f32 %v2047_v10 }
0x17ca   :  { %v2050_v11 = vpop.xlane.xlu1 %2049 }
0x17cb   :  { %4632 = vrcp.f32 %v2050_v11  ;;  %v4558_v11 = vld [vmem:[%s5582_s3 + $0xe0] sm:$0xff]  }
0x17d3   :  { %v4631_v12 = vpop.eup %4630 }
0x17d4   :  { %v2053_v14 = vmul.f32 %v4631_v12, %v4627_v3  ;;  %v4556_v3 = vld [vmem:[%s5582_s3 + $0x120] sm:$0xff]  }
0x17d5   :  { %v4633_v13 = vpop.eup %4632 }
0x17d6   :  { %v2054_v15 = vmul.f32 %v4633_v13, %v4629_v7 }
0x17d8   :  { %v2055_v18 = vpack.c.bf16 %v2054_v15, %v2053_v14  ;;  %v4559_v14 = vld [vmem:[%s5582_s3 + $0xe8] sm:$0xff]  }
0x17da   :  { %4338 = vmatmul.mubr.msk.bf16.vlgmr.msra.gmra.mrb[56].mxu1 %vm326_vm3, %v2055_v18 }
0x17db   :  { %4350 = vmatpush3.bf16.msra.mxu1 %v4554_v17  ;;  %4353 = vmatprep.mubr.msk.bf16.mxu1 %vm4709_vm1, %v4708_v16 }
0x17dc   :  { %4351 = vmatprep.subr.bf16.mxu1 %v4708_v16 }
0x17df   :  { %4352 = vmatpush3.bf16.msra.mxu1 %v4555_v19  ;;  %v4560_v19 = vld [vmem:[%s5582_s3 + $0x160] sm:$0xff]  }
0x17e0   :  { %4365 = vmatprep.subr.bf16.mxu1 %v4708_v16 }
0x17e2   :  { %4354 = vmatmul.mubr.msk.bf16.vlgmr.msra.gmra.mrb[60].mxu1 %vm40_vm0, %v5185_v61 }
0x17e3   :  { %4367 = vmatprep.mubr.msk.bf16.mxu1 %vm4709_vm1, %v4708_v16 }
0x18ad   :  { %v5287_v20 = vpop.f32.mrb[56].mxu1 }
0x18ae   :  { %v4339_v21 = vpop.f32.mrb[57].mxu1 }
0x18af   :  { %v5289_v22 = vpop.f32.mrb[58].mxu1  ;;  %v4561_v21 = vld [vmem:[%s5582_s3 + $0x168] sm:$0xff]  }
0x18b0   :  { %v2101_v23 = vpack.c.bf16 %v5289_v22, %v5287_v20  ;;  %v4340_v24 = vpop.f32.mrb[59].mxu1  ;;  %v3898_v22 = vld [vmem:[%s5581_s2 + $0x1b] ss:$0 sm:$0xff] }
0x18b5   :  { %v2228_v26 = vpop.f32.mrb[60].mxu1 }
0x18b6   :  { %v4355_v27 = vpop.f32.mrb[61].mxu1  ;;  %v2229_v36 = vadd.f32 %v3869_v25, %v2228_v26 }
0x18b7   :  { %v2231_v28 = vpop.f32.mrb[62].mxu1 }
0x18b8   :  { %v2232_v30 = vadd.f32 %v3869_v25, %v2231_v28  ;;  %v4356_v31 = vpop.f32.mrb[63].mxu1 }
0x18ba   :  { %v2294_v32 = vpack.c.bf16 %v2232_v30, %v2229_v36 }
0x18bc   :  { %v2299_v35 = vsel %vm274_vm2, %v2294_v32, 0 }
0x18bd   :  { %4366 = vmatpush3.bf16.xpose.msra.mxu1 %v2299_v35 }
0x18be   :  { %4377 = vmatprep.subr.bf16.mxu1 %v4708_v16 }
0x18c4   :  { %4368 = vmatmul.mubr.msk.bf16.vlgmr.msra.gmra.mrb[64].mxu1 %vm274_vm2, %v2293_v50 }
0x18c5   :  { %4379 = vmatprep.mubr.msk.bf16.mxu1 %vm4709_vm1, %v4708_v16  ;;  %4378 = vmatpush3.bf16.msra.mxu1 %v2421_v55 }
0x18c6   :  { %4389 = vmatprep.subr.bf16.mxu1 %v4708_v16 }
0x1997   :  { %v2335_v29 = vpop.f32.mrb[64].mxu1 }
0x1998   :  { %v2342_v37 = vmul.f32 0.35355338, %v2335_v29  ;;  %v4369_v33 = vpop.f32.mrb[65].mxu1 }
0x1999   :  { %v2338_v34 = vpop.f32.mrb[66].mxu1 }
0x199a   :  { %v2343_v38 = vmul.f32 0.35355338, %v2338_v34  ;;  %v4370_v40 = vpop.f32.mrb[67].mxu1  ;;  %v2344_v41 = vadd.f32 %v5246_v39, %v2342_v37  ;;  %v3894_v34 = vld [vmem:[%s5581_s2 + $0x17] ss:$0 sm:$0xff] }
0x199c   :  { %v2346_v6 = vsel %vm326_vm3, %v2344_v41, -inf  ;;  %v2345_v42 = vadd.f32 %v5253_v2, %v2343_v38 }
0x199d   :  { %2347 = vmax.xlane.f32.xlu0 %v2346_v6 }
0x199e   :  { %v2349_v43 = vsel %vm326_vm3, %v2345_v42, -inf }
0x199f   :  { %2350 = vmax.xlane.f32.xlu1 %v2349_v43 }
0x1a2a   :  { %v2348_v44 = vpop.xlane.xlu0 %2347 }
0x1a2b   :  { %v2352_v45 = vsub.f32 %v2344_v41, %v2348_v44 }
0x1a2c   :  { %v2351_v46 = vpop.xlane.xlu1 %2350 }
0x1a2d   :  { %v2354_v47 = vmul.f32 1.442695, %v2352_v45  ;;  %v2353_v48 = vsub.f32 %v2345_v42, %v2351_v46  ;;  %v3902_v45 = vld [vmem:[%s5581_s2 + $0x1f] ss:$0 sm:$0xff] }
0x1a2f   :  { %4634 = vpow2.f32 %v2354_v47  ;;  %v2356_v49 = vmul.f32 1.442695, %v2353_v48 }
0x1a31   :  { %4636 = vpow2.f32 %v2356_v49 }
0x1a39   :  { %v4635_v50 = vpop.eup %4634 }
0x1a3a   :  { %v2358_v51 = vsel %vm326_vm3, %v4635_v50, 0.0 }
0x1a3b   :  { %v4637_v52 = vpop.eup %4636  ;;  %2359 = vadd.xlane.f32.xlu0 %v2358_v51 }
0x1a3c   :  { %v2361_v53 = vsel %vm326_vm3, %v4637_v52, 0.0 }
0x1a3d   :  { %2362 = vadd.xlane.f32.xlu1 %v2361_v53 }
0x1ac8   :  { %v2360_v56 = vpop.xlane.xlu0 %2359 }
0x1ac9   :  { %4638 = vrcp.f32 %v2360_v56 }
0x1aca   :  { %v2363_v57 = vpop.xlane.xlu1 %2362 }
0x1acb   :  { %4640 = vrcp.f32 %v2363_v57 }
0x1ad3   :  { %v4639_v58 = vpop.eup %4638 }
0x1ad4   :  { %v2366_v62 = vmul.f32 %v4639_v58, %v4635_v50 }
0x1ad5   :  { %v4641_v4 = vpop.eup %4640 }
0x1ad6   :  { %v2367_v63 = vmul.f32 %v4641_v4, %v4637_v52 }
0x1ad8   :  { %v2368_v0 = vpack.c.bf16 %v2367_v63, %v2366_v62 }
0x1ada   :  { %4374 = vmatmul.mubr.msk.bf16.vlgmr.msra.gmra.mrb[72].mxu0 %vm326_vm3, %v2368_v0 }
0x1adb   :  { %4384 = vmatpush3.bf16.msra.mxu0 %v2468_v1  ;;  %4385 = vmatprep.mubr.msk.bf16.mxu0 %vm4709_vm1, %v4708_v16 }
0x1adc   :  { %4397 = vmatprep.subr.bf16.mxu0 %v4708_v16 }
0x1ae2   :  { %4386 = vmatmul.mubr.msk.bf16.vlgmr.msra.gmra.mrb[76].mxu0 %vm274_vm2, %v2101_v23 }
0x1ae3   :  { %4398 = vmatpush3.bf16.msra.mxu0 %v4556_v3  ;;  %4401 = vmatprep.mubr.msk.bf16.mxu0 %vm4709_vm1, %v4708_v16 }
0x1ae4   :  { %4399 = vmatprep.subr.bf16.mxu0 %v4708_v16 }
0x1ae7   :  { %4400 = vmatpush3.bf16.msra.mxu0 %v4557_v5 }
0x1ae8   :  { %4413 = vmatprep.subr.bf16.mxu0 %v4708_v16 }
0x1aea   :  { %4402 = vmatmul.mubr.msk.bf16.vlgmr.msra.gmra.mrb[80].mxu0 %vm40_vm0, %v5185_v61 }
0x1aeb   :  { %4415 = vmatprep.mubr.msk.bf16.mxu0 %vm4709_vm1, %v4708_v16 }
0x1bad   :  { %v2407_v7 = vpop.f32.mrb[72].mxu0 }
0x1bae   :  { %v4375_v9 = vpop.f32.mrb[73].mxu0 }
0x1baf   :  { %v2410_v10 = vpop.f32.mrb[74].mxu0 }
0x1bb0   :  { %v2414_v12 = vpack.c.bf16 %v2410_v10, %v2407_v7  ;;  %v4376_v13 = vpop.f32.mrb[75].mxu0 }
0x1bb2   :  { %4380 = vmatmul.mubr.msk.bf16.vlgmr.msra.gmra.mrb[68].mxu1 %vm274_vm2, %v2414_v12 }
0x1bb3   :  { %4390 = vmatpush3.bf16.msra.mxu1 %v4558_v11  ;;  %4393 = vmatprep.mubr.msk.bf16.mxu1 %vm4709_vm1, %v4708_v16 }
0x1bb4   :  { %4391 = vmatprep.subr.bf16.mxu1 %v4708_v16 }
0x1bb5   :  { %v2504_v15 = vpop.f32.mrb[76].mxu0 }
0x1bb6   :  { %v4387_v17 = vpop.f32.mrb[77].mxu0 }
0x1bb7   :  { %v2507_v18 = vpop.f32.mrb[78].mxu0  ;;  %4392 = vmatpush3.bf16.msra.mxu1 %v4559_v14  ;;  %v3908_v14 = vld [vmem:[%s5583_s4 + $0x18] sm:$0xf] }
0x1bb8   :  { %v4388_v20 = vpop.f32.mrb[79].mxu0  ;;  %4405 = vmatprep.subr.bf16.mxu1 %v4708_v16 }
0x1bba   :  { %4394 = vmatmul.mubr.msk.bf16.vlgmr.msra.gmra.mrb[72].mxu1 %vm40_vm0, %v5185_v61 }
0x1bbb   :  { %4406 = vmatpush3.bf16.msra.mxu1 %v4560_v19  ;;  %4409 = vmatprep.mubr.msk.bf16.mxu1 %vm4709_vm1, %v4708_v16 }
0x1bbc   :  { %4407 = vmatprep.subr.bf16.mxu1 %v4708_v16 }
0x1bbd   :  { %v2635_v23 = vpop.f32.mrb[80].mxu0 }
0x1bbe   :  { %v4403_v24 = vpop.f32.mrb[81].mxu0  ;;  %v2636_v26 = vadd.f32 %v3898_v22, %v2635_v23  ;;  %v4562_v23 = vld [vmem:[%s5582_s3 + $0xf0] sm:$0xff]  }
0x1bbf   :  { %v2638_v25 = vpop.f32.mrb[82].mxu0  ;;  %4408 = vmatpush3.bf16.msra.mxu1 %v4561_v21 }
0x1bc0   :  { %v2639_v27 = vadd.f32 %v3898_v22, %v2638_v25  ;;  %v4404_v28 = vpop.f32.mrb[83].mxu0  ;;  %4419 = vmatprep.subr.bf16.mxu1 %v4708_v16  ;;  %v4563_v25 = vld [vmem:[%s5582_s3 + $0xf8] sm:$0xff]  }
0x1bc2   :  { %v2701_v36 = vpack.c.bf16 %v2639_v27, %v2636_v26  ;;  %4410 = vmatmul.mubr.msk.bf16.vlgmr.msra.gmra.mrb[76].mxu1 %vm40_vm0, %v5185_v61  ;;  %v4564_v26 = vld [vmem:[%s5582_s3 + $0x170] sm:$0xff]   ;;  %v4565_v27 = vld [vmem:[%s5582_s3 + $0x178] sm:$0xff]  }
0x1bc3   :  { %4421 = vmatprep.mubr.msk.bf16.mxu1 %vm4709_vm1, %v4708_v16 }
0x1bc4   :  { %v2706_v30 = vsel %vm274_vm2, %v2701_v36, 0 }
0x1bc5   :  { %4414 = vmatpush3.bf16.xpose.msra.mxu0 %v2706_v30 }
0x1bc6   :  { %4425 = vmatprep.subr.bf16.mxu0 %v4708_v16 }
0x1c85   :  { %v2457_v31 = vpop.f32.mrb[68].mxu1 }
0x1c86   :  { %v5367_v32 = vadd.f32 %v2504_v15, %v2457_v31  ;;  %v4381_v35 = vpop.f32.mrb[69].mxu1  ;;  %v2828_v15 = vsel %vm713_vm4, %v3908_v14, 0  ;;  %v4566_v31 = vld [vmem:[%s5582_s3 + $0x130] sm:$0xff]  }
0x1c87   :  { %v2460_v29 = vpop.f32.mrb[70].mxu1 }
0x1c88   :  { %v5369_v37 = vadd.f32 %v2507_v18, %v2460_v29  ;;  %v4382_v33 = vpop.f32.mrb[71].mxu1 }
0x1c89   :  { %v4567_v33 = vld [vmem:[%s5582_s3 + $0x138] sm:$0xff]  }
0x1c8d   :  { %v2577_v38 = vpop.f32.mrb[72].mxu1 }
0x1c8e   :  { %v4395_v40 = vpop.f32.mrb[73].mxu1  ;;  %v2578_v6 = vadd.f32 %v3894_v34, %v2577_v38 }
0x1c8f   :  { %v2580_v41 = vpop.f32.mrb[74].mxu1 }
0x1c90   :  { %v2581_v42 = vadd.f32 %v3894_v34, %v2580_v41  ;;  %v4396_v43 = vpop.f32.mrb[75].mxu1  ;;  %v3922_v34 = vld [vmem:[%s5581_s2 + $0x18] ss:$0 sm:$0xff] }
0x1c92   :  { %v2700_v44 = vpack.c.bf16 %v2581_v42, %v2578_v6 }
0x1c94   :  { %4416 = vmatmul.mubr.msk.bf16.vlgmr.msra.gmra.mrb[84].mxu0 %vm274_vm2, %v2700_v44 }
0x1c95   :  { %v2693_v46 = vpop.f32.mrb[76].mxu1  ;;  %4427 = vmatprep.mubr.msk.bf16.mxu0 %vm4709_vm1, %v4708_v16  ;;  %4426 = vmatpush3.bf16.msra.mxu0 %v2828_v15 }
0x1c96   :  { %v4411_v47 = vpop.f32.mrb[77].mxu1  ;;  %v2694_v49 = vadd.f32 %v3902_v45, %v2693_v46  ;;  %4439 = vmatprep.subr.bf16.mxu0 %v4708_v16 }
0x1c97   :  { %v2696_v48 = vpop.f32.mrb[78].mxu1 }
0x1c98   :  { %v2697_v50 = vadd.f32 %v3902_v45, %v2696_v48  ;;  %v4412_v51 = vpop.f32.mrb[79].mxu1  ;;  %v3930_v45 = vld [vmem:[%s5581_s2 + $0x20] ss:$0 sm:$0xff] }
0x1c9a   :  { %v2776_v52 = vpack.c.bf16 %v2697_v50, %v2694_v49 }
0x1c9c   :  { %4420 = vmatpush3.bf16.msra.mxu1 %v2776_v52 }
0x1c9d   :  { %4431 = vmatprep.subr.bf16.mxu1 %v4708_v16 }
0x1d67   :  { %v2742_v53 = vpop.f32.mrb[84].mxu0 }
0x1d68   :  { %v2749_v54 = vmul.f32 0.35355338, %v2742_v53  ;;  %v4417_v55 = vpop.f32.mrb[85].mxu0 }
0x1d69   :  { %v2745_v56 = vpop.f32.mrb[86].mxu0 }
0x1d6a   :  { %v2750_v57 = vmul.f32 0.35355338, %v2745_v56  ;;  %v4418_v58 = vpop.f32.mrb[87].mxu0  ;;  %v2751_v4 = vadd.f32 %v5246_v39, %v2749_v54 }
0x1d6b   :  { %v3926_v58 = vld [vmem:[%s5581_s2 + $0x1c] ss:$0 sm:$0xff] }
0x1d6c   :  { %v2753_v60 = vsel %vm326_vm3, %v2751_v4, -inf  ;;  %v2752_v62 = vadd.f32 %v5253_v2, %v2750_v57 }
0x1d6d   :  { %2754 = vmax.xlane.f32.xlu0 %v2753_v60 }
0x1d6e   :  { %v2756_v63 = vsel %vm326_vm3, %v2752_v62, -inf }
0x1d6f   :  { %2757 = vmax.xlane.f32.xlu1 %v2756_v63 }
0x1dfa   :  { %v2755_v0 = vpop.xlane.xlu0 %2754 }
0x1dfb   :  { %v2759_v1 = vsub.f32 %v2751_v4, %v2755_v0 }
0x1dfc   :  { %v2758_v3 = vpop.xlane.xlu1 %2757 }
0x1dfd   :  { %v2761_v5 = vmul.f32 1.442695, %v2759_v1  ;;  %v2760_v7 = vsub.f32 %v2752_v62, %v2758_v3 }
0x1dff   :  { %4642 = vpow2.f32 %v2761_v5  ;;  %v2763_v9 = vmul.f32 1.442695, %v2760_v7 }
0x1e01   :  { %4644 = vpow2.f32 %v2763_v9 }
0x1e09   :  { %v4643_v10 = vpop.eup %4642 }
0x1e0a   :  { %v2765_v11 = vsel %vm326_vm3, %v4643_v10, 0.0 }
0x1e0b   :  { %v4645_v12 = vpop.eup %4644  ;;  %2766 = vadd.xlane.f32.xlu0 %v2765_v11 }
0x1e0c   :  { %v2768_v13 = vsel %vm326_vm3, %v4645_v12, 0.0 }
0x1e0d   :  { %2769 = vadd.xlane.f32.xlu1 %v2768_v13 }
0x1e98   :  { %v2767_v17 = vpop.xlane.xlu0 %2766 }
0x1e99   :  { %4646 = vrcp.f32 %v2767_v17 }
0x1e9a   :  { %v2770_v18 = vpop.xlane.xlu1 %2769 }
0x1e9b   :  { %4648 = vrcp.f32 %v2770_v18 }
0x1ea3   :  { %v4647_v19 = vpop.eup %4646 }
0x1ea4   :  { %v2773_v21 = vmul.f32 %v4647_v19, %v4643_v10 }
0x1ea5   :  { %v4649_v20 = vpop.eup %4648 }
0x1ea6   :  { %v2774_v22 = vmul.f32 %v4649_v20, %v4645_v12 }
0x1ea8   :  { %v2775_v24 = vpack.c.bf16 %v2774_v22, %v2773_v21 }
0x1eaa   :  { %4422 = vmatmul.mubr.msk.bf16.vlgmr.msra.gmra.mrb[80].mxu1 %vm326_vm3, %v2775_v24 }
0x1eab   :  { %4432 = vmatpush3.bf16.msra.mxu1 %v4562_v23  ;;  %4435 = vmatprep.mubr.msk.bf16.mxu1 %vm4709_vm1, %v4708_v16 }
0x1eac   :  { %4433 = vmatprep.subr.bf16.mxu1 %v4708_v16 }
0x1eaf   :  { %4434 = vmatpush3.bf16.msra.mxu1 %v4563_v25 }
0x1eb0   :  { %4447 = vmatprep.subr.bf16.mxu1 %v4708_v16 }
0x1eb2   :  { %4436 = vmatmul.mubr.msk.bf16.vlgmr.msra.gmra.mrb[84].mxu1 %vm40_vm0, %v5185_v61 }
0x1eb3   :  { %4448 = vmatpush3.bf16.msra.mxu1 %v4564_v26  ;;  %4451 = vmatprep.mubr.msk.bf16.mxu1 %vm4709_vm1, %v4708_v16 }
0x1eb4   :  { %4449 = vmatprep.subr.bf16.mxu1 %v4708_v16 }
0x1eb7   :  { %4450 = vmatpush3.bf16.msra.mxu1 %v4565_v27 }
0x1eb8   :  { %4461 = vmatprep.subr.bf16.mxu1 %v4708_v16 }
0x1eba   :  { %4452 = vmatmul.mubr.msk.bf16.vlgmr.msra.gmra.mrb[88].mxu1 %vm40_vm0, %v5185_v61 }
0x1ebb   :  { %4463 = vmatprep.mubr.msk.bf16.mxu1 %vm4709_vm1, %v4708_v16 }
0x1f7d   :  { %v2814_v28 = vpop.f32.mrb[80].mxu1 }
0x1f7e   :  { %v4423_v36 = vpop.f32.mrb[81].mxu1 }
0x1f7f   :  { %v2817_v30 = vpop.f32.mrb[82].mxu1 }
0x1f80   :  { %v2821_v35 = vpack.c.bf16 %v2817_v30, %v2814_v28  ;;  %v4424_v29 = vpop.f32.mrb[83].mxu1 }
0x1f82   :  { %4428 = vmatmul.mubr.msk.bf16.vlgmr.msra.gmra.mrb[88].mxu0 %vm274_vm2, %v2821_v35 }
0x1f83   :  { %4440 = vmatpush3.bf16.msra.mxu0 %v4566_v31  ;;  %4443 = vmatprep.mubr.msk.bf16.mxu0 %vm4709_vm1, %v4708_v16 }
0x1f84   :  { %4441 = vmatprep.subr.bf16.mxu0 %v4708_v16 }
0x1f85   :  { %v2939_v38 = vpop.f32.mrb[84].mxu1 }
0x1f86   :  { %v4437_v40 = vpop.f32.mrb[85].mxu1  ;;  %v2940_v6 = vadd.f32 %v3922_v34, %v2939_v38 }
0x1f87   :  { %v2942_v41 = vpop.f32.mrb[86].mxu1  ;;  %4442 = vmatpush3.bf16.msra.mxu0 %v4567_v33 }
0x1f88   :  { %v2943_v42 = vadd.f32 %v3922_v34, %v2942_v41  ;;  %v4438_v43 = vpop.f32.mrb[87].mxu1  ;;  %4455 = vmatprep.subr.bf16.mxu0 %v4708_v16 }
0x1f8a   :  { %v3062_v44 = vpack.c.bf16 %v2943_v42, %v2940_v6  ;;  %4444 = vmatmul.mubr.msk.bf16.vlgmr.msra.gmra.mrb[92].mxu0 %vm40_vm0, %v5185_v61  ;;  %v3938_v42 = vld [vmem:[%s5581_s2 + $0x21] ss:$0 sm:$0xff] }
0x1f8b   :  { %4457 = vmatprep.mubr.msk.bf16.mxu0 %vm4709_vm1, %v4708_v16 }
0x1f8d   :  { %v3055_v46 = vpop.f32.mrb[88].mxu1 }
0x1f8e   :  { %v4453_v47 = vpop.f32.mrb[89].mxu1  ;;  %v3056_v49 = vadd.f32 %v3930_v45, %v3055_v46 }
0x1f8f   :  { %v3058_v48 = vpop.f32.mrb[90].mxu1 }
0x1f90   :  { %v3059_v50 = vadd.f32 %v3930_v45, %v3058_v48  ;;  %v4454_v51 = vpop.f32.mrb[91].mxu1 }
0x1f92   :  { %v3138_v52 = vpack.c.bf16 %v3059_v50, %v3056_v49 }
0x1f94   :  { %4462 = vmatpush3.bf16.msra.mxu1 %v3138_v52 }
0x1f95   :  { %4473 = vmatprep.subr.bf16.mxu1 %v4708_v16 }
0x2055   :  { %v2864_v53 = vpop.f32.mrb[88].mxu0 }
0x2056   :  { %v5442_v61 = vadd.f32 %v2864_v53, %v5367_v32  ;;  %v4429_v54 = vpop.f32.mrb[89].mxu0 }
0x2057   :  { %v2867_v55 = vpop.f32.mrb[90].mxu0 }
0x2058   :  { %v5445_v56 = vadd.f32 %v2867_v55, %v5369_v37  ;;  %v4430_v57 = vpop.f32.mrb[91].mxu0 }
0x205d   :  { %v2997_v4 = vpop.f32.mrb[92].mxu0 }
0x205e   :  { %v4445_v60 = vpop.f32.mrb[93].mxu0  ;;  %v2998_v63 = vadd.f32 %v3926_v58, %v2997_v4 }
0x205f   :  { %v3000_v62 = vpop.f32.mrb[94].mxu0 }
0x2060   :  { %v3001_v0 = vadd.f32 %v3926_v58, %v3000_v62  ;;  %v4446_v1 = vpop.f32.mrb[95].mxu0 }
0x2062   :  { %v3063_v3 = vpack.c.bf16 %v3001_v0, %v2998_v63  ;;  %v4569_v63 = vld [vmem:[%s5584_s5 + $0x18] sm:$0xff]  }
0x2064   :  { %v3068_v32 = vsel %vm274_vm2, %v3063_v3, 0 }
0x2065   :  { %4456 = vmatpush3.bf16.xpose.msra.mxu0 %v3068_v32 }
0x2066   :  { %4467 = vmatprep.subr.bf16.mxu0 %v4708_v16 }
0x206c   :  { %4458 = vmatmul.mubr.msk.bf16.vlgmr.msra.gmra.mrb[96].mxu0 %vm274_vm2, %v3062_v44 }
0x206d   :  { %4469 = vmatprep.mubr.msk.bf16.mxu0 %vm4709_vm1, %v4708_v16 }
0x213f   :  { %v3104_v37 = vpop.f32.mrb[96].mxu0 }
0x2140   :  { %v3111_v5 = vmul.f32 0.35355338, %v3104_v37  ;;  %v4459_v7 = vpop.f32.mrb[97].mxu0 }
0x2141   :  { %v3107_v9 = vpop.f32.mrb[98].mxu0 }
0x2142   :  { %v3112_v10 = vmul.f32 0.35355338, %v3107_v9  ;;  %v4460_v11 = vpop.f32.mrb[99].mxu0  ;;  %v3113_v12 = vadd.f32 %v5246_v39, %v3111_v5  ;;  %v3939_v9 = vld [vmem:[%s5581_s2 + $0x22] ss:$0 sm:$0xff] }
0x2144   :  { %v3115_v13 = vsel %vm326_vm3, %v3113_v12, -inf  ;;  %v3114_v14 = vadd.f32 %v5253_v2, %v3112_v10  ;;  %v3936_v2 = vld [vmem:[%s5583_s4 + $0x1c] sm:$0xf] }
0x2145   :  { %3116 = vmax.xlane.f32.xlu0 %v3115_v13  ;;  %v3190_v26 = vsel %vm713_vm4, %v3936_v2, 0 }
0x2146   :  { %v3118_v15 = vsel %vm326_vm3, %v3114_v14, -inf  ;;  %4468 = vmatpush3.bf16.msra.mxu0 %v3190_v26 }
0x2147   :  { %3119 = vmax.xlane.f32.xlu1 %v3118_v15  ;;  %4481 = vmatprep.subr.bf16.mxu0 %v4708_v16 }
0x21d2   :  { %v3117_v17 = vpop.xlane.xlu0 %3116 }
0x21d3   :  { %v3121_v18 = vsub.f32 %v3113_v12, %v3117_v17 }
0x21d4   :  { %v3120_v19 = vpop.xlane.xlu1 %3119 }
0x21d5   :  { %v3123_v20 = vmul.f32 1.442695, %v3121_v18  ;;  %v3122_v21 = vsub.f32 %v3114_v14, %v3120_v19  ;;  %v3940_v14 = vld [vmem:[%s5581_s2 + $0x23] ss:$0 sm:$0xff] }
0x21d7   :  { %4650 = vpow2.f32 %v3123_v20  ;;  %v3125_v22 = vmul.f32 1.442695, %v3122_v21  ;;  %v4570_v20 = vld [vmem:[%s5585_s6 + $0x20] sm:$0xff]   ;;  %v4571_v21 = vld [vmem:[%s5585_s6 + $0x28] sm:$0xff]  }
0x21d9   :  { %4652 = vpow2.f32 %v3125_v22  ;;  %v4572_v22 = vld [vmem:[%s5585_s6 + $0x30] sm:$0xff]  }
0x21e1   :  { %v4651_v23 = vpop.eup %4650 }
0x21e2   :  { %v3127_v24 = vsel %vm326_vm3, %v4651_v23, 0.0 }
0x21e3   :  { %v4653_v39 = vpop.eup %4652  ;;  %3128 = vadd.xlane.f32.xlu0 %v3127_v24  ;;  %v3945_v24 = vld [vmem:[%s5581_s2 + $0x24] ss:$0 sm:$0xff] }
0x21e4   :  { %v3130_v25 = vsel %vm326_vm3, %v4653_v39, 0.0 }
0x21e5   :  { %3131 = vadd.xlane.f32.xlu1 %v3130_v25 }
0x2270   :  { %v3129_v27 = vpop.xlane.xlu0 %3128 }
0x2271   :  { %4654 = vrcp.f32 %v3129_v27 }
0x2272   :  { %v3132_v28 = vpop.xlane.xlu1 %3131 }
0x2273   :  { %4656 = vrcp.f32 %v3132_v28 }
0x227b   :  { %v4655_v36 = vpop.eup %4654 }
0x227c   :  { %v3135_v31 = vmul.f32 %v4655_v36, %v4651_v23  ;;  %v4573_v23 = vld [vmem:[%s5585_s6 + $0x38] sm:$0xff]  }
0x227d   :  { %v4657_v30 = vpop.eup %4656 }
0x227e   :  { %v3136_v35 = vmul.f32 %v4657_v30, %v4653_v39 }
0x2280   :  { %v3137_v29 = vpack.c.bf16 %v3136_v35, %v3135_v31 }
0x2282   :  { %4464 = vmatmul.mubr.msk.bf16.vlgmr.msra.gmra.mrb[92].mxu1 %vm326_vm3, %v3137_v29 }
0x2283   :  { %4477 = vmatprep.mubr.msk.bf16.mxu1 %vm4709_vm1, %v4708_v16 }
0x2355   :  { %v3176_v33 = vpop.f32.mrb[92].mxu1 }
0x2356   :  { %v4465_v34 = vpop.f32.mrb[93].mxu1 }
0x2357   :  { %v3179_v38 = vpop.f32.mrb[94].mxu1 }
0x2358   :  { %v3183_v40 = vpack.c.bf16 %v3179_v38, %v3176_v33  ;;  %v4466_v41 = vpop.f32.mrb[95].mxu1 }
0x235a   :  { %4470 = vmatmul.mubr.msk.bf16.vlgmr.msra.gmra.mrb[100].mxu0 %vm274_vm2, %v3183_v40 }
0x235b   :  { %4489 = vmatprep.mubr.msk.bf16.mxu0 %vm4709_vm1, %v4708_v16  ;;  %4482 = vmatpush3.bf16.msra.mxu0 %v4570_v20 }
0x235c   :  { %4483 = vmatprep.subr.bf16.mxu0 %v4708_v16 }
0x235f   :  { %4484 = vmatpush3.bf16.msra.mxu0 %v4571_v21 }
0x2360   :  { %4485 = vmatprep.subr.bf16.mxu0 %v4708_v16 }
0x2363   :  { %4486 = vmatpush3.bf16.msra.mxu0 %v4572_v22  ;;  %v3964_v22 = vld [vmem:[%s5581_s2 + $0x27] ss:$0 sm:$0xff] }
0x2364   :  { %4487 = vmatprep.subr.bf16.mxu0 %v4708_v16 }
0x2367   :  { %4488 = vmatpush3.bf16.msra.mxu0 %v4573_v23 }
0x242d   :  { %v3226_v6 = vpop.f32.mrb[100].mxu0 }
0x242e   :  { %v3233_v43 = vadd.f32 %v3226_v6, %v5442_v61  ;;  %v4471_v44 = vpop.f32.mrb[101].mxu0 }
0x242f   :  { %v3229_v45 = vpop.f32.mrb[102].mxu0 }
0x2430   :  { %v3240_v46 = vadd.f32 %v3938_v42, %v3233_v43  ;;  %v3234_v47 = vadd.f32 %v3229_v45, %v5445_v56  ;;  %v4472_v48 = vpop.f32.mrb[103].mxu0 }
0x2432   :  { %v3241_v49 = vadd.f32 %v3938_v42, %v3234_v47  ;;  %v3242_v50 = vadd.f32 %v3240_v46, %v5176_v59 }
0x2434   :  { %v3246_v51 = vsel %vm40_vm0, %v3242_v50, 0.0  ;;  %v3243_v52 = vadd.f32 %v3241_v49, %v5178_v8  ;;  %v4568_v8 = vld [vmem:[%s5584_s5 + $0x10] sm:$0xff]  }
0x2435   :  { %3247 = vadd.xlane.f32.xlu0 %v3246_v51  ;;  %4474 = vmatpush3.bf16.msra.mxu1 %v4568_v8 }
0x2436   :  { %v3249_v53 = vsel %vm40_vm0, %v3243_v52, 0.0  ;;  %4475 = vmatprep.subr.bf16.mxu1 %v4708_v16 }
0x2437   :  { %3250 = vadd.xlane.f32.xlu1 %v3249_v53 }
0x2439   :  { %4476 = vmatpush3.bf16.msra.mxu1 %v4569_v63 }
0x243a   :  { %4493 = vmatprep.subr.bf16.mxu1 %v4708_v16 }
0x24c2   :  { %v3248_v54 = vpop.xlane.xlu0 %3247 }
0x24c3   :  { %v3252_v55 = vmul.f32 0.03125, %v3248_v54 }
0x24c4   :  { %v3251_v61 = vpop.xlane.xlu1 %3250 }
0x24c5   :  { %v3254_v57 = vsub.f32 %v3242_v50, %v3252_v55  ;;  %v3253_v58 = vmul.f32 0.03125, %v3251_v61  ;;  %v3957_v50 = vld [vmem:[%s5581_s2 + $0x25] ss:$0 sm:$0xff] }
0x24c7   :  { %v3255_v4 = vsub.f32 %v3243_v52, %v3253_v58  ;;  %v3256_v60 = vmul.f32 %v3254_v57, %v3254_v57 }
0x24c9   :  { %v3258_v56 = vsel %vm40_vm0, %v3256_v60, 0.0  ;;  %v3257_v62 = vmul.f32 %v3255_v4, %v3255_v4 }
0x24ca   :  { %3259 = vadd.xlane.f32.xlu0 %v3258_v56 }
0x24cb   :  { %v3261_v59 = vsel %vm40_vm0, %v3257_v62, 0.0 }
0x24cc   :  { %3262 = vadd.xlane.f32.xlu1 %v3261_v59 }
0x2557   :  { %v3260_v0 = vpop.xlane.xlu0 %3259 }
0x2558   :  { %v3264_v1 = vmul.f32 0.03125, %v3260_v0 }
0x2559   :  { %v3263_v3 = vpop.xlane.xlu1 %3262 }
0x255a   :  { %v3266_v32 = vadd.f32 1e-12, %v3264_v1  ;;  %v3265_v37 = vmul.f32 0.03125, %v3263_v3 }
0x255c   :  { %4658 = vrsqrt.f32 %v3266_v32  ;;  %v3267_v5 = vadd.f32 1e-12, %v3265_v37 }
0x255e   :  { %4660 = vrsqrt.f32 %v3267_v5  ;;  %v4574_v5 = vld [vmem:[%s5586_s7] sm:$0xff]  }
0x2566   :  { %v4659_v7 = vpop.eup %4658 }
0x2567   :  { %v3270_v10 = vmul.f32 %v4659_v7, %v3254_v57  ;;  %v4575_v7 = vld [vmem:[%s5586_s7 + $0x8] sm:$0xff]  }
0x2568   :  { %v4661_v11 = vpop.eup %4660 }
0x2569   :  { %v3276_v12 = vmul.f32 %v3939_v9, %v3270_v10  ;;  %v3271_v13 = vmul.f32 %v4661_v11, %v3255_v4 }
0x256b   :  { %v3277_v15 = vmul.f32 %v3939_v9, %v3271_v13  ;;  %v3282_v17 = vadd.f32 %v3940_v14, %v3276_v12 }
0x256d   :  { %v3283_v18 = vadd.f32 %v3940_v14, %v3277_v15 }
0x256f   :  { %v3284_v19 = vpack.c.bf16 %v3283_v18, %v3282_v17 }
0x2571   :  { %4478 = vmatmul.mubr.msk.bf16.vlgmr.msra.gmra.mrb[96].mxu1 %vm40_vm0, %v3284_v19 }
0x2572   :  { %4497 = vmatprep.mubr.msk.bf16.mxu1 %vm4709_vm1, %v4708_v16  ;;  %4494 = vmatpush3.bf16.msra.mxu1 %v4574_v5 }
0x2573   :  { %4495 = vmatprep.subr.bf16.mxu1 %v4708_v16 }
0x2576   :  { %4496 = vmatpush3.bf16.msra.mxu1 %v4575_v7 }
0x2577   :  { %4501 = vmatprep.subr.bf16.mxu1 %v4708_v16 }
0x2644   :  { %v3344_v39 = vpop.f32.mrb[96].mxu1 }
0x2645   :  { %v3345_v25 = vadd.f32 %v3945_v24, %v3344_v39  ;;  %v4479_v2 = vpop.f32.mrb[97].mxu1 }
0x2646   :  { %v3347_v26 = vpop.f32.mrb[98].mxu1  ;;  %v3965_v2 = vld [vmem:[%s5581_s2 + $0x28] ss:$0 sm:$0xff] }
0x2647   :  { %v3351_v27 = vmul.f32 %v3345_v25, %v3345_v25  ;;  %v3348_v28 = vadd.f32 %v3945_v24, %v3347_v26  ;;  %v4480_v36 = vpop.f32.mrb[99].mxu1 }
0x2649   :  { %v3353_v30 = vmul.f32 %v3351_v27, %v3345_v25  ;;  %v3352_v31 = vmul.f32 %v3348_v28, %v3348_v28 }
0x264b   :  { %v3355_v35 = vmul.f32 0.044715, %v3353_v30  ;;  %v3354_v29 = vmul.f32 %v3352_v31, %v3348_v28 }
0x264d   :  { %v3357_v33 = vadd.f32 %v3355_v35, %v3345_v25  ;;  %v3356_v34 = vmul.f32 0.044715, %v3354_v29 }
0x264f   :  { %v3359_v38 = vmul.f32 0.7978846, %v3357_v33  ;;  %v3358_v40 = vadd.f32 %v3356_v34, %v3348_v28 }
0x2651   :  { %4662 = vtanh.f32 %v3359_v38  ;;  %v3360_v41 = vmul.f32 0.7978846, %v3358_v40 }
0x2653   :  { %4664 = vtanh.f32 %v3360_v41 }
0x265b   :  { %v4663_v6 = vpop.eup %4662 }
0x265c   :  { %v3363_v42 = vadd.f32 1.0, %v4663_v6 }
0x265d   :  { %v4665_v43 = vpop.eup %4664 }
0x265e   :  { %v3365_v44 = vmul.f32 0.5, %v3363_v42  ;;  %v3364_v45 = vadd.f32 1.0, %v4665_v43 }
0x2660   :  { %v3366_v46 = vmul.f32 0.5, %v3364_v45  ;;  %v3367_v47 = vmul.f32 %v3365_v44, %v3345_v25 }
0x2662   :  { %v3368_v48 = vmul.f32 %v3366_v46, %v3348_v28  ;;  %v4576_v46 = vld [vmem:[%s5587_s8] sm:$0xff]  }
0x2664   :  { %v3369_v49 = vpack.c.bf16 %v3368_v48, %v3367_v47  ;;  %v4577_v47 = vld [vmem:[%s5587_s8 + $0x8] sm:$0xff]  }
0x2666   :  { %4490 = vmatmul.mubr.msk.bf16.vlgmr.msra.gmra.mrb[104].mxu0 %vm1700_vm5, %v3369_v49 }
0x2739   :  { %v3445_v51 = vpop.f32.mrb[104].mxu0 }
0x273a   :  { %v3446_v52 = vadd.f32 %v3957_v50, %v3445_v51  ;;  %v4491_v53 = vpop.f32.mrb[105].mxu0 }
0x273b   :  { %v3448_v54 = vpop.f32.mrb[106].mxu0 }
0x273c   :  { %v3449_v55 = vadd.f32 %v3957_v50, %v3448_v54  ;;  %v4492_v61 = vpop.f32.mrb[107].mxu0  ;;  %v3452_v57 = vadd.f32 %v3446_v52, %v3282_v17  ;;  %v3963_v17 = vld [vmem:[%s5581_s2 + $0x26] ss:$0 sm:$0xff] }
0x273e   :  { %v3456_v58 = vsel %vm40_vm0, %v3452_v57, 0.0  ;;  %v3453_v4 = vadd.f32 %v3449_v55, %v3283_v18  ;;  %v3969_v55 = vld [vmem:[%s5581_s2 + $0x29] ss:$0 sm:$0xff] }
0x273f   :  { %3457 = vadd.xlane.f32.xlu0 %v3456_v58 }
0x2740   :  { %v3459_v60 = vsel %vm40_vm0, %v3453_v4, 0.0 }
0x2741   :  { %3460 = vadd.xlane.f32.xlu1 %v3459_v60 }
0x27cc   :  { %v3458_v56 = vpop.xlane.xlu0 %3457 }
0x27cd   :  { %v3462_v62 = vmul.f32 0.03125, %v3458_v56 }
0x27ce   :  { %v3461_v59 = vpop.xlane.xlu1 %3460 }
0x27cf   :  { %v3464_v8 = vsub.f32 %v3452_v57, %v3462_v62  ;;  %v3463_v63 = vmul.f32 0.03125, %v3461_v59 }
0x27d1   :  { %v3465_v0 = vsub.f32 %v3453_v4, %v3463_v63  ;;  %v3466_v1 = vmul.f32 %v3464_v8, %v3464_v8  ;;  %v3970_v4 = vld [vmem:[%s5581_s2 + $0x2a] ss:$0 sm:$0xff] }
0x27d3   :  { %v3468_v3 = vsel %vm40_vm0, %v3466_v1, 0.0  ;;  %v3467_v32 = vmul.f32 %v3465_v0, %v3465_v0 }
0x27d4   :  { %3469 = vadd.xlane.f32.xlu0 %v3468_v3 }
0x27d5   :  { %v3471_v37 = vsel %vm40_vm0, %v3467_v32, 0.0 }
0x27d6   :  { %3472 = vadd.xlane.f32.xlu1 %v3471_v37 }
0x2861   :  { %v3470_v9 = vpop.xlane.xlu0 %3469 }
0x2862   :  { %v3474_v10 = vmul.f32 0.03125, %v3470_v9 }
0x2863   :  { %v3473_v11 = vpop.xlane.xlu1 %3472 }
0x2864   :  { %v3476_v12 = vadd.f32 1e-12, %v3474_v10  ;;  %v3475_v13 = vmul.f32 0.03125, %v3473_v11 }
0x2866   :  { %4666 = vrsqrt.f32 %v3476_v12  ;;  %v3477_v14 = vadd.f32 1e-12, %v3475_v13 }
0x2868   :  { %4668 = vrsqrt.f32 %v3477_v14 }
0x2870   :  { %v4667_v15 = vpop.eup %4666 }
0x2871   :  { %v3480_v18 = vmul.f32 %v4667_v15, %v3464_v8  ;;  %v3971_v8 = vld [vmem:[%s5581_s2 + $0x2b] ss:$0 sm:$0xff]  ;;  %s4710_s2 = smov [#allocation2]  }
0x2872   :  { %v4669_v19 = vpop.eup %4668  ;;  %s3691_s19 = sshll.u32 %s4710_s2, 4  ;;  %s3692_s19 = int_to_ptr.vmem [resolvable:$true] %s3691_s19 }
0x2873   :  { %v3486_v20 = vmul.f32 %v3963_v17, %v3480_v18  ;;  %v3481_v21 = vmul.f32 %v4669_v19, %v3465_v0  ;;  %s4684_s20 = scalar_lea.vmem %s3692_s19, 256  ;;  %p4689_p1 = scmp.lt.s32.totalorder %s3692_s19, %s3692_s19 }
0x2874   :  { %p4685_p0 = scmp.ne.s32.totalorder %s3692_s19, %s4684_s20  ;;  %p4690_p2 = scmp.lt.s32.totalorder %s4684_s20, %s4684_s20 }
0x2875   :  { %v3487_v23 = vmul.f32 %v3963_v17, %v3481_v21  ;;  %v3492_v24 = vadd.f32 %v3964_v22, %v3486_v20 }
0x2876   :  { %p4691_p3 = por %p4690_p2, %p4689_p1 }
0x2877   :  { %v3493_v39 = vadd.f32 %v3964_v22, %v3487_v23 }
0x2878   :  { %p4692_p4 = pnand %p4691_p3, %p4685_p0 }
0x2879   :  { %v3494_v25 = vpack.c.bf16 %v3493_v39, %v3492_v24 }
0x287b   :  { %4498 = vmatmul.mubr.msk.bf16.vlgmr.msra.gmra.mrb[100].mxu1 %vm40_vm0, %v3494_v25 }
0x287c   :  { %4505 = vmatprep.mubr.msk.bf16.mxu1 %vm4709_vm1, %v4708_v16  ;;  %4502 = vmatpush3.bf16.msra.mxu1 %v4576_v46 }
0x287d   :  { %4503 = vmatprep.subr.bf16.mxu1 %v4708_v16 }
0x2880   :  { %4504 = vmatpush3.bf16.msra.mxu1 %v4577_v47 }
0x294e   :  { %v3553_v26 = vpop.f32.mrb[100].mxu1 }
0x294f   :  { %v3554_v27 = vadd.f32 %v3965_v2, %v3553_v26  ;;  %v4499_v28 = vpop.f32.mrb[101].mxu1 }
0x2950   :  { %v3556_v36 = vpop.f32.mrb[102].mxu1 }
0x2951   :  { %v3557_v30 = vadd.f32 %v3965_v2, %v3556_v36  ;;  %v4500_v31 = vpop.f32.mrb[103].mxu1  ;;  %v3562_v35 = vsel %vm40_vm0, %v3554_v27, 0.0 }
0x2952   :  { %3563 = vadd.xlane.f32.xlu0 %v3562_v35 }
0x2953   :  { %v3565_v29 = vsel %vm40_vm0, %v3557_v30, 0.0 }
0x2954   :  { %3566 = vadd.xlane.f32.xlu1 %v3565_v29 }
0x29df   :  { %v3564_v33 = vpop.xlane.xlu0 %3563 }
0x29e0   :  { %v3568_v34 = vmul.f32 0.03125, %v3564_v33 }
0x29e1   :  { %v3567_v38 = vpop.xlane.xlu1 %3566 }
0x29e2   :  { %v3570_v40 = vsub.f32 %v3554_v27, %v3568_v34  ;;  %v3569_v41 = vmul.f32 0.03125, %v3567_v38 }
0x29e4   :  { %v3571_v6 = vsub.f32 %v3557_v30, %v3569_v41  ;;  %v3572_v42 = vmul.f32 %v3570_v40, %v3570_v40 }
0x29e6   :  { %v3574_v43 = vsel %vm40_vm0, %v3572_v42, 0.0  ;;  %v3573_v44 = vmul.f32 %v3571_v6, %v3571_v6 }
0x29e7   :  { %3575 = vadd.xlane.f32.xlu0 %v3574_v43 }
0x29e8   :  { %v3577_v45 = vsel %vm40_vm0, %v3573_v44, 0.0 }
0x29e9   :  { %3578 = vadd.xlane.f32.xlu1 %v3577_v45 }
0x2a74   :  { %v3576_v48 = vpop.xlane.xlu0 %3575 }
0x2a75   :  { %v3580_v49 = vmul.f32 0.03125, %v3576_v48 }
0x2a76   :  { %v3579_v50 = vpop.xlane.xlu1 %3578 }
0x2a77   :  { %v3582_v51 = vadd.f32 1e-12, %v3580_v49  ;;  %v3581_v52 = vmul.f32 0.03125, %v3579_v50 }
0x2a79   :  { %4670 = vrsqrt.f32 %v3582_v51  ;;  %v3583_v53 = vadd.f32 1e-12, %v3581_v52 }
0x2a7b   :  { %4672 = vrsqrt.f32 %v3583_v53 }
0x2a83   :  { %v4671_v54 = vpop.eup %4670 }
0x2a84   :  { %v3586_v61 = vmul.f32 %v4671_v54, %v3570_v40 }
0x2a85   :  { %v4673_v16 = vpop.eup %4672 }
0x2a86   :  { %v3592_v57 = vmul.f32 %v3969_v55, %v3586_v61  ;;  %v3587_v58 = vmul.f32 %v4673_v16, %v3571_v6 }
0x2a88   :  { %v3593_v60 = vmul.f32 %v3969_v55, %v3587_v58  ;;  %v3598_v56 = vadd.f32 %v3970_v4, %v3592_v57 }
0x2a8a   :  { %v3599_v62 = vadd.f32 %v3970_v4, %v3593_v60 }
0x2a8c   :  { %v3600_v59 = vpack.c.bf16 %v3599_v62, %v3598_v56 }
0x2a8e   :  { %4506 = vmatmul.mubr.msk.bf16.vlgmr.msra.gmra.mrb[104].mxu1 %vm40_vm0, %v3600_v59 }
0x2b61   :  { %v3659_v63 = vpop.f32.mrb[104].mxu1 }
0x2b62   :  { %v3660_v0 = vadd.f32 %v3971_v8, %v3659_v63  ;;  %v4507_v1 = vpop.f32.mrb[105].mxu1 }
0x2b63   :  { %v3662_v3 = vpop.f32.mrb[106].mxu1 }
0x2b64   :  { %v3663_v32 = vadd.f32 %v3971_v8, %v3662_v3  ;;  %3666 = vmax.xlane.f32.xlu0 %v3660_v0  ;;  %v4508_v37 = vpop.f32.mrb[107].mxu1 }
0x2b66   :  { %3668 = vmax.xlane.f32.xlu1 %v3663_v32 }
0x2bf1   :  { %v3667_v5 = vpop.xlane.xlu0 %3666 }
0x2bf2   :  { %v3670_v7 = vsub.f32 %v3660_v0, %v3667_v5 }
0x2bf3   :  { %v3669_v9 = vpop.xlane.xlu1 %3668 }
0x2bf4   :  { %v3672_v10 = vmul.f32 1.442695, %v3670_v7  ;;  %v3671_v11 = vsub.f32 %v3663_v32, %v3669_v9 }
0x2bf6   :  { %4674 = vpow2.f32 %v3672_v10  ;;  %v3674_v12 = vmul.f32 1.442695, %v3671_v11 }
0x2bf8   :  { %4676 = vpow2.f32 %v3674_v12 }
0x2c00   :  { %v4675_v13 = vpop.eup %4674 }
0x2c01   :  { %3676 = vadd.xlane.f32.xlu0 %v4675_v13 }
0x2c02   :  { %v4677_v14 = vpop.eup %4676 }
0x2c03   :  { %3678 = vadd.xlane.f32.xlu1 %v4677_v14 }
0x2c8e   :  { %v3677_v15 = vpop.xlane.xlu0 %3676 }
0x2c8f   :  { %4678 = vrcp.f32 %v3677_v15 }
0x2c90   :  { %v3679_v17 = vpop.xlane.xlu1 %3678 }
0x2c91   :  { %4680 = vrcp.f32 %v3679_v17 }
0x2c99   :  { %v4679_v18 = vpop.eup %4678 }
0x2c9a   :  { %v3682_v19 = vmul.f32 %v4679_v18, %v4675_v13 }
0x2c9b   :  { %v4681_v20 = vpop.eup %4680 }
0x2c9c   :  { %v3683_v21 = vmul.f32 %v4681_v20, %v4677_v14  ;;  %3684 = vst [vmem:[#allocation2] sm:$0xff] %v3682_v19 }
0x2c9e   :  { %3685 = vst [vmem:[#allocation2 + $0x8] sm:$0xff] %v3683_v21 }
0x2c9f   :  { %4695 = shalt.err (!%p4692_p4)
}
0x2ca0   :  { %s4696_s23 = scalar_lea.hbm %s5588_s9, 256 }
0x2ca1   :  { %p4697_p5 = scmp.ne.s32.totalorder %s5588_s9, %s4696_s23  ;;  %p4700_p6 = scmp.lt.u32.totalorder %s4696_s23, %s5588_s9 }
0x2ca3   :  { %p4702_p7 = pnand %p4700_p6, %p4697_p5 }
0x2ca5   :  { %4705 = shalt.err (!%p4702_p7)
}
0x2ca6   :  { %s4711_s1 = smov 128   ;;  %s4712_s26 = smov 8  }
0x2ca7   :  { %3697 = dma.vmem_to_hbm [thread:$0]  %s3692_s19, 256, %s5588_s9, [#allocation3], %s4711_s1, %s4711_s1, %s4712_s26  }
0x2ca8   :  { %4706 = dma.done.wait [#allocation3], 256  }
0x2ca9   :  { %4707 = vsyncadd [#allocation3], 4294967040 }
0x2caa   :  { %3701 = vsyncpa [#allocation3], 1 }

</bundles_post_ra>
